<compile_context>
chip_gen: v6e
topology: v6e:2x2x1
jax: 0.10.0
libtpu: 0.0.40
codegen_flags: <defaults>
</compile_context>

<pallas_src>
import re

import jax
import jax.numpy as jnp
import numpy as np
from jax.experimental import pallas as pl
from jax.experimental.pallas import tpu as pltpu

BN_EPS = 1e-5


# ----------------------------------------------------------------------------
# Parameter init (mirrors the PyTorch module structure)
# ----------------------------------------------------------------------------
def _dw_block_params(key, cin, cout):
    ks = jax.random.split(key, 12)
    n = lambda k, shape, s=0.1: s * jax.random.normal(k, shape, jnp.float32)
    return dict(
        dw_w=n(ks[0], (3, 3, cin)),                 # depthwise 3x3 weight (kh, kw, c)
        dw_b=n(ks[1], (cin,)),
        bn1_g=1.0 + n(ks[2], (cin,)),
        bn1_b=n(ks[3], (cin,)),
        bn1_m=n(ks[4], (cin,)),
        bn1_v=0.5 + jax.random.uniform(ks[5], (cin,), jnp.float32),
        pw_w=n(ks[6], (cin, cout)),                 # pointwise 1x1 weight
        pw_b=n(ks[7], (cout,)),
        bn2_g=1.0 + n(ks[8], (cout,)),
        bn2_b=n(ks[9], (cout,)),
        bn2_m=n(ks[10], (cout,)),
        bn2_v=0.5 + jax.random.uniform(ks[11], (cout,), jnp.float32),
    )


def init_params(key):
    k1, k2, k3, k4, k5, k6 = jax.random.split(key, 6)
    n = lambda k, shape, s=0.1: s * jax.random.normal(k, shape, jnp.float32)
    return {
        'w1': n(k1, (3, 3, 3, 32)),                 # conv_s1, HWIO
        'b1': n(k2, (32,)),
        'dw1': _dw_block_params(k3, 32, 64),
        'dw2': _dw_block_params(k4, 64, 128),
        'w3': n(k5, (128, 10)),                     # conv_s3 (1x1)
        'b3': n(k6, (10,)),
    }


def _tpu_generation():
    """Best-effort TPU generation from device_kind (0 if unknown)."""
    try:
        kind = jax.devices()[0].device_kind
    except Exception:
        return 0
    m = re.search(r"(\d+)", kind)
    return int(m.group(1)) if m else 0


# ----------------------------------------------------------------------------
# Pallas forward pass
# ----------------------------------------------------------------------------
def mobilenet_forward(x_nchw, params, *, batch_tile=None, mxu_dtype=None):
    """MobileNet forward pass as one Pallas TPU kernel.  x_nchw: (N, 3, H, W)."""
    x = jnp.transpose(x_nchw, (0, 2, 3, 1)).astype(jnp.float32)   # NCHW -> NHWC
    N, H, W, Cin = x.shape

    gen = _tpu_generation()
    if mxu_dtype is None:
        mxu_dtype = jnp.bfloat16          # MXU-native dtype on v5e/v6e/v7x
    if batch_tile is None:
        # v7x: 64 MiB VMEM (half of v5e/v6e) and 2 TensorCores -> smaller tile so the
        # ('parallel',) batch grid can still shard across both cores for larger N.
        batch_tile = 16 if gen >= 7 else 32

    WP = -(-W // 8) * 8                    # width padded to a sublane (8) multiple
    Ha, Hb, Hc = H - 2, H - 4, H - 6       # rows/sample after conv_s1 / dw1 / dw2
    WV = W - 6                             # valid width of the final feature map
    BT = max(1, min(batch_tile, N))        # samples per grid step
    NP = -(-N // BT) * BT                  # batch padded to a multiple of BT

    C1 = params['w1'].shape[-1]            # 32
    C2 = params['dw1']['pw_w'].shape[-1]   # 64
    C3 = params['dw2']['pw_w'].shape[-1]   # 128
    NCLS = params['w3'].shape[-1]          # 10
    K1 = 9 * Cin                           # 27
    LANES = 128
    R1 = BT * Ha * WP                      # rows of the conv_s1-output / dw1-input slab
    HALO = 2 * WP + 8                      # zeroed scratch tail (covers max shift 2*WP+2)
    RS = R1 + HALO                         # scratch rows

    # --- im2col for conv_s1 (layout plumbing only; only the Ha valid H rows) -----
    xp = jnp.pad(x, ((0, NP - N), (0, 0), (0, WP + 2 - W), (0, 0)))
    patches = jnp.concatenate(
        [xp[:, kh:kh + Ha, kw:kw + WP, :] for kh in range(3) for kw in range(3)],
        axis=-1).astype(mxu_dtype)                                 # (NP, Ha, WP, 27)

    # --- fold conv bias + eval-mode BN into per-channel scale/shift --------------
    def fold_bn(bias, g, b, m, v):
        s = g / jnp.sqrt(v + BN_EPS)
        return s, (bias - m) * s + b

    d1, d2 = params['dw1'], params['dw2']
    s_dw1, t_dw1 = fold_bn(d1['dw_b'], d1['bn1_g'], d1['bn1_b'], d1['bn1_m'], d1['bn1_v'])
    s_pw1, t_pw1 = fold_bn(d1['pw_b'], d1['bn2_g'], d1['bn2_b'], d1['bn2_m'], d1['bn2_v'])
    s_dw2, t_dw2 = fold_bn(d2['dw_b'], d2['bn1_g'], d2['bn1_b'], d2['bn1_m'], d2['bn1_v'])
    s_pw2, t_pw2 = fold_bn(d2['pw_b'], d2['bn2_g'], d2['bn2_b'], d2['bn2_m'], d2['bn2_v'])

    def row(v):
        return jnp.pad(v, (0, LANES - v.shape[0])).reshape(1, LANES)

    consts = jnp.concatenate([
        row(params['b1']),                        # 0: conv_s1 bias          (:C1)
        row(s_dw1), row(t_dw1),                   # 1,2: dw1 folded BN       (:C1)
        row(s_pw1), row(t_pw1),                   # 3,4: pw1 folded BN       (:C2)
        row(s_dw2), row(t_dw2),                   # 5,6: dw2 folded BN       (:C2)
        row(s_pw2), row(t_pw2),                   # 7,8: pw2 folded BN       (:C3)
        row(params['b3'] * float(Hc * WV)),       # 9: conv_s3 bias * Hf*Wf  (:NCLS)
    ], axis=0).astype(jnp.float32)                # (10, 128)

    w1_2d = params['w1'].reshape(K1, C1).astype(mxu_dtype)          # (27, 32)
    dwt1 = d1['dw_w'].reshape(9, C1).astype(jnp.float32)            # depthwise taps (VPU)
    pw1 = d1['pw_w'].astype(mxu_dtype)                              # (32, 64)
    dwt2 = d2['dw_w'].reshape(9, C2).astype(jnp.float32)            # (9, 64)
    pw2 = d2['pw_w'].astype(mxu_dtype)                              # (64, 128)
    w3 = jnp.pad(params['w3'],
                 ((0, 0), (0, LANES - NCLS))).astype(mxu_dtype)     # (128, 128), lane-dense

    # W-validity mask for the final reduce (all H rows are valid after the trims).
    wmask = (jnp.arange(WP) < WV).astype(jnp.float32)
    mask = jnp.tile(wmask, (Hc,)).reshape(Hc * WP, 1)               # (Hc*WP, 1)

    # --- explicit VMEM budget (review item 1/2) ----------------------------------
    itemsize = jnp.dtype(mxu_dtype).itemsize
    vmem_est = (2 * BT * Ha * WP * LANES * itemsize     # double-buffered, lane-padded patches
                + RS * LANES * 4                        # depthwise scratch slab
                + 4 * R1 * LANES * 4                    # live f32 activation values / spills
                + (4 << 20))                            # weights, consts, internal headroom
    vmem_cap = (56 << 20) if gen >= 7 else (100 << 20)
    vmem_limit = int(min(max(vmem_est, 32 << 20), vmem_cap))

    def kernel(p_ref, w1_ref, dwt1_ref, pw1_ref, dwt2_ref, pw2_ref, w3_ref,
               c_ref, mask_ref, out_ref, dw_scratch):
        c = c_ref[...]                                              # (10, 128) packed consts

        def dw_pw(y_in, h_in, c_in, taps_ref, pw_ref, s_dw, t_dw, s_pw, t_pw):
            rows_in = BT * h_in * WP
            h_out = h_in - 2
            rows_out = BT * h_out * WP
            # Stage the depthwise input slab into VMEM scratch and zero the halo
            # tail: every 3x3 tap becomes a shifted (load-slot) read instead of a
            # full-slab XLU roll.  Wrap-around reads only ever feed the invalid
            # halo rows, which are trimmed / masked downstream.
            dw_scratch[pl.ds(0, rows_in), :c_in] = y_in
            dw_scratch[pl.ds(rows_in, HALO), :c_in] = jnp.zeros((HALO, c_in),
                                                                jnp.float32)
            taps = taps_ref[...]                                    # (9, c_in)
            acc = jnp.zeros((rows_in, c_in), jnp.float32)
            for kh in range(3):
                for kw in range(3):
                    q = 3 * kh + kw
                    v = dw_scratch[pl.ds(kh * WP + kw, rows_in), :c_in]
                    acc = acc + v * taps[q:q + 1, :]
            # Trim the (now invalid) last 2 H rows of every sample before BN/ReLU
            # and the pointwise matmul; both strides are sublane-aligned (WP % 8 == 0)
            # so the slice is layout-free.
            acc = acc.reshape(BT, h_in, WP, c_in)[:, :h_out].reshape(rows_out, c_in)
            z = jnp.maximum(acc * s_dw + t_dw, 0.0)
            z2 = jnp.dot(z.astype(mxu_dtype), pw_ref[...],
                         preferred_element_type=jnp.float32)
            return jnp.maximum(z2 * s_pw + t_pw, 0.0)

        # conv_s1: one im2col matmul (M = R1, K = 27) + bias.
        p = p_ref[...].reshape(R1, K1)
        y = jnp.dot(p, w1_ref[...], preferred_element_type=jnp.float32)
        y = y + c[0:1, :C1]                                         # (R1, C1)

        y = dw_pw(y, Ha, C1, dwt1_ref, pw1_ref,
                  c[1:2, :C1], c[2:3, :C1], c[3:4, :C2], c[4:5, :C2])  # (BT*Hb*WP, C2)
        y = dw_pw(y, Hb, C2, dwt2_ref, pw2_ref,
                  c[5:6, :C2], c[6:7, :C2], c[7:8, :C3], c[8:9, :C3])  # (BT*Hc*WP, C3)

        # conv_s3 as masked reduce -> matmul (bias pre-scaled by Hc*WV in the wrapper).
        y3 = y.reshape(BT, Hc * WP, C3) * mask_ref[...][None, :, :]
        s = jnp.sum(y3, axis=1)                                     # (BT, C3)
        out_ref[...] = (jnp.dot(s.astype(mxu_dtype), w3_ref[...],
                                preferred_element_type=jnp.float32)
                        + c[9:10, :])                               # (BT, 128) lane-dense

    weights = [w1_2d, dwt1, pw1, dwt2, pw2, w3, consts, mask]
    full_spec = lambda a: pl.BlockSpec(a.shape, (lambda n, _nd=a.ndim: (0,) * _nd))
    in_specs = ([pl.BlockSpec((BT, Ha, WP, K1), lambda n: (n, 0, 0, 0))]
                + [full_spec(a) for a in weights])

    out = pl.pallas_call(
        kernel,
        out_shape=jax.ShapeDtypeStruct((NP, LANES), jnp.float32),
        grid_spec=pltpu.PrefetchScalarGridSpec(
            num_scalar_prefetch=0,
            grid=(NP // BT,),
            in_specs=in_specs,
            out_specs=pl.BlockSpec((BT, LANES), lambda n: (n, 0)),
            scratch_shapes=[pltpu.VMEM((RS, LANES), jnp.float32)],
        ),
        compiler_params=pltpu.CompilerParams(
            dimension_semantics=("parallel",),
            vmem_limit_bytes=vmem_limit),
    )(patches, *weights)
    return out[:N, :NCLS]


# ----------------------------------------------------------------------------
# Pure-JAX reference (lax.conv) for a correctness check
# ----------------------------------------------------------------------------
def mobilenet_reference(x_nchw, params):
    x = jnp.transpose(x_nchw, (0, 2, 3, 1)).astype(jnp.float32)

    def conv(x, w, b):
        y = jax.lax.conv_general_dilated(
            x, w, window_strides=(1, 1), padding='VALID',
            dimension_numbers=('NHWC', 'HWIO', 'NHWC'))
        return y + b

    def depthwise(x, w, b):
        C = w.shape[-1]
        y = jax.lax.conv_general_dilated(
            x, w.reshape(3, 3, 1, C), window_strides=(1, 1), padding='VALID',
            dimension_numbers=('NHWC', 'HWIO', 'NHWC'),
            feature_group_count=C)
        return y + b

    def bn(x, g, b, m, v):
        return (x - m) / jnp.sqrt(v + BN_EPS) * g + b

    def dw_block(x, p):
        x = depthwise(x, p['dw_w'], p['dw_b'])
        x = jax.nn.relu(bn(x, p['bn1_g'], p['bn1_b'], p['bn1_m'], p['bn1_v']))
        x = jnp.einsum('nhwc,cd->nhwd', x, p['pw_w']) + p['pw_b']
        x = jax.nn.relu(bn(x, p['bn2_g'], p['bn2_b'], p['bn2_m'], p['bn2_v']))
        return x

    y = conv(x, params['w1'], params['b1'])
    y = dw_block(y, params['dw1'])
    y = dw_block(y, params['dw2'])
    y = jnp.einsum('nhwc,cd->nhwd', y, params['w3']) + params['b3']
    return jnp.sum(y, axis=(1, 2))


if __name__ == "__main__":
    key = jax.random.PRNGKey(0)
    kx, kp = jax.random.split(key)
    # PyTorch-style NCHW input (CIFAR-like, small): batch=2, C=3, H=W=16
    x = jax.random.normal(kx, (2, 3, 16, 16), jnp.float32)
    params = init_params(kp)

    ref = jax.block_until_ready(mobilenet_reference(x, params))

    # Strict check: f32 MXU path.
    out_f32 = jax.block_until_ready(
        mobilenet_forward(x, params, mxu_dtype=jnp.float32))
    assert out_f32.shape == (2, 10), out_f32.shape
    np.testing.assert_allclose(np.asarray(out_f32), np.asarray(ref),
                               rtol=2e-3, atol=2e-3)

    # Fast path with generation-aware defaults (bf16 MXU + bf16 im2col patches).
    out_fast = jax.block_until_ready(mobilenet_forward(x, params))
    assert out_fast.shape == (2, 10), out_fast.shape
    scale = max(1.0, float(np.max(np.abs(np.asarray(ref)))))
    np.testing.assert_allclose(np.asarray(out_fast), np.asarray(ref),
                               rtol=5e-2, atol=5e-2 * scale)

    print("KERNEL_OK")
</pallas_src>

<mosaic_0001>
module attributes {stable_mosaic.version = 11 : i64} {
  func.func @kernel(%arg0: i32, %arg1: memref<2x14x16x27xf32, #tpu.memory_space<vmem>>, %arg2: memref<27x32xf32, #tpu.memory_space<vmem>>, %arg3: memref<9x32xf32, #tpu.memory_space<vmem>>, %arg4: memref<32x64xf32, #tpu.memory_space<vmem>>, %arg5: memref<9x64xf32, #tpu.memory_space<vmem>>, %arg6: memref<64x128xf32, #tpu.memory_space<vmem>>, %arg7: memref<128x128xf32, #tpu.memory_space<vmem>>, %arg8: memref<10x128xf32, #tpu.memory_space<vmem>>, %arg9: memref<160x1xf32, #tpu.memory_space<vmem>>, %arg10: memref<2x128xf32, #tpu.memory_space<vmem>>, %arg11: memref<488x128xf32, #tpu.memory_space<vmem>>) attributes {dimension_semantics = [#tpu.dimension_semantics<parallel>], iteration_bounds = array<i64: 1>, scalar_prefetch = 0 : i64, scratch_operands = 1 : i64, tpu.core_type = #tpu.core_type<tc>, window_params = [{transform_indices = @transform_0, window_bounds = array<i64: 2, 14, 16, 27>}, {pipeline_mode = #tpu.pipeline_mode<synchronous>, transform_indices = @transform_1, window_bounds = array<i64: 27, 32>}, {pipeline_mode = #tpu.pipeline_mode<synchronous>, transform_indices = @transform_2, window_bounds = array<i64: 9, 32>}, {pipeline_mode = #tpu.pipeline_mode<synchronous>, transform_indices = @transform_3, window_bounds = array<i64: 32, 64>}, {pipeline_mode = #tpu.pipeline_mode<synchronous>, transform_indices = @transform_4, window_bounds = array<i64: 9, 64>}, {pipeline_mode = #tpu.pipeline_mode<synchronous>, transform_indices = @transform_5, window_bounds = array<i64: 64, 128>}, {pipeline_mode = #tpu.pipeline_mode<synchronous>, transform_indices = @transform_6, window_bounds = array<i64: 128, 128>}, {pipeline_mode = #tpu.pipeline_mode<synchronous>, transform_indices = @transform_7, window_bounds = array<i64: 10, 128>}, {pipeline_mode = #tpu.pipeline_mode<synchronous>, transform_indices = @transform_8, window_bounds = array<i64: 160, 1>}, {transform_indices = @transform_9, window_bounds = array<i64: 2, 128>}]} {
    %c0 = arith.constant 0 : index
    %c0_0 = arith.constant 0 : index
    %0 = vector.load %arg8[%c0, %c0_0] : memref<10x128xf32, #tpu.memory_space<vmem>>, vector<10x128xf32>
    %c0_1 = arith.constant 0 : index
    %c0_2 = arith.constant 0 : index
    %c0_3 = arith.constant 0 : index
    %c0_4 = arith.constant 0 : index
    %1 = vector.load %arg1[%c0_1, %c0_2, %c0_3, %c0_4] : memref<2x14x16x27xf32, #tpu.memory_space<vmem>>, vector<2x14x16x27xf32>
    %2 = vector.shape_cast %1 : vector<2x14x16x27xf32> to vector<448x27xf32>
    %c0_5 = arith.constant 0 : index
    %c0_6 = arith.constant 0 : index
    %3 = vector.load %arg2[%c0_5, %c0_6] : memref<27x32xf32, #tpu.memory_space<vmem>>, vector<27x32xf32>
    %cst = arith.constant dense<0.000000e+00> : vector<448x32xf32>
    %4 = tpu.matmul %2, %3, %cst {dimension_numbers = #tpu.dot_dimension_numbers<[1], [0], [0], [1], [0, 0, 1, 1], [], []>} : vector<448x27xf32>, vector<27x32xf32>, vector<448x32xf32> -> vector<448x32xf32>
    %5 = vector.extract_strided_slice %0 {offsets = [0, 0], sizes = [1, 32], strides = [1, 1]} : vector<10x128xf32> to vector<1x32xf32>
    %6 = vector.broadcast %5 : vector<1x32xf32> to vector<448x32xf32>
    %7 = arith.addf %4, %6 : vector<448x32xf32>
    %8 = vector.extract_strided_slice %0 {offsets = [1, 0], sizes = [1, 32], strides = [1, 1]} : vector<10x128xf32> to vector<1x32xf32>
    %9 = vector.extract_strided_slice %0 {offsets = [2, 0], sizes = [1, 32], strides = [1, 1]} : vector<10x128xf32> to vector<1x32xf32>
    %10 = vector.extract_strided_slice %0 {offsets = [3, 0], sizes = [1, 64], strides = [1, 1]} : vector<10x128xf32> to vector<1x64xf32>
    %11 = vector.extract_strided_slice %0 {offsets = [4, 0], sizes = [1, 64], strides = [1, 1]} : vector<10x128xf32> to vector<1x64xf32>
    %c0_7 = arith.constant 0 : index
    %c0_8 = arith.constant 0 : index
    %12 = vector.load %arg11[%c0_7, %c0_8] : memref<488x128xf32, #tpu.memory_space<vmem>>, vector<448x32xf32>
    tpu.vector_store %arg11[%c0_7, %c0_8], %7 {strides = array<i32>} : memref<488x128xf32, #tpu.memory_space<vmem>>, vector<448x32xf32>,
    %cst_9 = arith.constant 0.000000e+00 : f32
    %13 = vector.broadcast %cst_9 : f32 to vector<40x32xf32>
    %c448 = arith.constant 448 : index
    %c0_10 = arith.constant 0 : index
    %14 = vector.load %arg11[%c448, %c0_10] : memref<488x128xf32, #tpu.memory_space<vmem>>, vector<40x32xf32>
    tpu.vector_store %arg11[%c448, %c0_10], %13 {strides = array<i32>} : memref<488x128xf32, #tpu.memory_space<vmem>>, vector<40x32xf32>,
    %c0_11 = arith.constant 0 : index
    %c0_12 = arith.constant 0 : index
    %15 = vector.load %arg3[%c0_11, %c0_12] : memref<9x32xf32, #tpu.memory_space<vmem>>, vector<9x32xf32>
    %cst_13 = arith.constant 0.000000e+00 : f32
    %16 = vector.broadcast %cst_13 : f32 to vector<448x32xf32>
    %c0_14 = arith.constant 0 : index
    %c0_15 = arith.constant 0 : index
    %17 = vector.load %arg11[%c0_14, %c0_15] : memref<488x128xf32, #tpu.memory_space<vmem>>, vector<448x32xf32>
    %18 = vector.extract_strided_slice %15 {offsets = [0, 0], sizes = [1, 32], strides = [1, 1]} : vector<9x32xf32> to vector<1x32xf32>
    %19 = vector.broadcast %18 : vector<1x32xf32> to vector<448x32xf32>
    %20 = arith.mulf %17, %19 : vector<448x32xf32>
    %21 = arith.addf %16, %20 : vector<448x32xf32>
    %c1 = arith.constant 1 : index
    %c0_16 = arith.constant 0 : index
    %22 = vector.load %arg11[%c1, %c0_16] : memref<488x128xf32, #tpu.memory_space<vmem>>, vector<448x32xf32>
    %23 = vector.extract_strided_slice %15 {offsets = [1, 0], sizes = [1, 32], strides = [1, 1]} : vector<9x32xf32> to vector<1x32xf32>
    %24 = vector.broadcast %23 : vector<1x32xf32> to vector<448x32xf32>
    %25 = arith.mulf %22, %24 : vector<448x32xf32>
    %26 = arith.addf %21, %25 : vector<448x32xf32>
    %c2 = arith.constant 2 : index
    %c0_17 = arith.constant 0 : index
    %27 = vector.load %arg11[%c2, %c0_17] : memref<488x128xf32, #tpu.memory_space<vmem>>, vector<448x32xf32>
    %28 = vector.extract_strided_slice %15 {offsets = [2, 0], sizes = [1, 32], strides = [1, 1]} : vector<9x32xf32> to vector<1x32xf32>
    %29 = vector.broadcast %28 : vector<1x32xf32> to vector<448x32xf32>
    %30 = arith.mulf %27, %29 : vector<448x32xf32>
    %31 = arith.addf %26, %30 : vector<448x32xf32>
    %c16 = arith.constant 16 : index
    %c0_18 = arith.constant 0 : index
    %32 = vector.load %arg11[%c16, %c0_18] : memref<488x128xf32, #tpu.memory_space<vmem>>, vector<448x32xf32>
    %33 = vector.extract_strided_slice %15 {offsets = [3, 0], sizes = [1, 32], strides = [1, 1]} : vector<9x32xf32> to vector<1x32xf32>
    %34 = vector.broadcast %33 : vector<1x32xf32> to vector<448x32xf32>
    %35 = arith.mulf %32, %34 : vector<448x32xf32>
    %36 = arith.addf %31, %35 : vector<448x32xf32>
    %c17 = arith.constant 17 : index
    %c0_19 = arith.constant 0 : index
    %37 = vector.load %arg11[%c17, %c0_19] : memref<488x128xf32, #tpu.memory_space<vmem>>, vector<448x32xf32>
    %38 = vector.extract_strided_slice %15 {offsets = [4, 0], sizes = [1, 32], strides = [1, 1]} : vector<9x32xf32> to vector<1x32xf32>
    %39 = vector.broadcast %38 : vector<1x32xf32> to vector<448x32xf32>
    %40 = arith.mulf %37, %39 : vector<448x32xf32>
    %41 = arith.addf %36, %40 : vector<448x32xf32>
    %c18 = arith.constant 18 : index
    %c0_20 = arith.constant 0 : index
    %42 = vector.load %arg11[%c18, %c0_20] : memref<488x128xf32, #tpu.memory_space<vmem>>, vector<448x32xf32>
    %43 = vector.extract_strided_slice %15 {offsets = [5, 0], sizes = [1, 32], strides = [1, 1]} : vector<9x32xf32> to vector<1x32xf32>
    %44 = vector.broadcast %43 : vector<1x32xf32> to vector<448x32xf32>
    %45 = arith.mulf %42, %44 : vector<448x32xf32>
    %46 = arith.addf %41, %45 : vector<448x32xf32>
    %c32 = arith.constant 32 : index
    %c0_21 = arith.constant 0 : index
    %47 = vector.load %arg11[%c32, %c0_21] : memref<488x128xf32, #tpu.memory_space<vmem>>, vector<448x32xf32>
    %48 = vector.extract_strided_slice %15 {offsets = [6, 0], sizes = [1, 32], strides = [1, 1]} : vector<9x32xf32> to vector<1x32xf32>
    %49 = vector.broadcast %48 : vector<1x32xf32> to vector<448x32xf32>
    %50 = arith.mulf %47, %49 : vector<448x32xf32>
    %51 = arith.addf %46, %50 : vector<448x32xf32>
    %c33 = arith.constant 33 : index
    %c0_22 = arith.constant 0 : index
    %52 = vector.load %arg11[%c33, %c0_22] : memref<488x128xf32, #tpu.memory_space<vmem>>, vector<448x32xf32>
    %53 = vector.extract_strided_slice %15 {offsets = [7, 0], sizes = [1, 32], strides = [1, 1]} : vector<9x32xf32> to vector<1x32xf32>
    %54 = vector.broadcast %53 : vector<1x32xf32> to vector<448x32xf32>
    %55 = arith.mulf %52, %54 : vector<448x32xf32>
    %56 = arith.addf %51, %55 : vector<448x32xf32>
    %c34 = arith.constant 34 : index
    %c0_23 = arith.constant 0 : index
    %57 = vector.load %arg11[%c34, %c0_23] : memref<488x128xf32, #tpu.memory_space<vmem>>, vector<448x32xf32>
    %58 = vector.extract_strided_slice %15 {offsets = [8, 0], sizes = [1, 32], strides = [1, 1]} : vector<9x32xf32> to vector<1x32xf32>
    %59 = vector.broadcast %58 : vector<1x32xf32> to vector<448x32xf32>
    %60 = arith.mulf %57, %59 : vector<448x32xf32>
    %61 = arith.addf %56, %60 : vector<448x32xf32>
    %62 = vector.shape_cast %61 : vector<448x32xf32> to vector<2x14x16x32xf32>
    %63 = vector.extract_strided_slice %62 {offsets = [0, 0, 0, 0], sizes = [2, 12, 16, 32], strides = [1, 1, 1, 1]} : vector<2x14x16x32xf32> to vector<2x12x16x32xf32>
    %64 = vector.shape_cast %63 : vector<2x12x16x32xf32> to vector<384x32xf32>
    %65 = vector.broadcast %8 : vector<1x32xf32> to vector<384x32xf32>
    %66 = arith.mulf %64, %65 : vector<384x32xf32>
    %67 = vector.broadcast %9 : vector<1x32xf32> to vector<384x32xf32>
    %68 = arith.addf %66, %67 : vector<384x32xf32>
    %cst_24 = arith.constant 0.000000e+00 : f32
    %69 = vector.broadcast %cst_24 : f32 to vector<384x32xf32>
    %70 = arith.maximumf %68, %69 : vector<384x32xf32>
    %c0_25 = arith.constant 0 : index
    %c0_26 = arith.constant 0 : index
    %71 = vector.load %arg4[%c0_25, %c0_26] : memref<32x64xf32, #tpu.memory_space<vmem>>, vector<32x64xf32>
    %cst_27 = arith.constant dense<0.000000e+00> : vector<384x64xf32>
    %72 = tpu.matmul %70, %71, %cst_27 {dimension_numbers = #tpu.dot_dimension_numbers<[1], [0], [0], [1], [0, 0, 1, 1], [], []>} : vector<384x32xf32>, vector<32x64xf32>, vector<384x64xf32> -> vector<384x64xf32>
    %73 = vector.broadcast %10 : vector<1x64xf32> to vector<384x64xf32>
    %74 = arith.mulf %72, %73 : vector<384x64xf32>
    %75 = vector.broadcast %11 : vector<1x64xf32> to vector<384x64xf32>
    %76 = arith.addf %74, %75 : vector<384x64xf32>
    %cst_28 = arith.constant 0.000000e+00 : f32
    %77 = vector.broadcast %cst_28 : f32 to vector<384x64xf32>
    %78 = arith.maximumf %76, %77 : vector<384x64xf32>
    %79 = vector.extract_strided_slice %0 {offsets = [5, 0], sizes = [1, 64], strides = [1, 1]} : vector<10x128xf32> to vector<1x64xf32>
    %80 = vector.extract_strided_slice %0 {offsets = [6, 0], sizes = [1, 64], strides = [1, 1]} : vector<10x128xf32> to vector<1x64xf32>
    %81 = vector.extract_strided_slice %0 {offsets = [7, 0], sizes = [1, 128], strides = [1, 1]} : vector<10x128xf32> to vector<1x128xf32>
    %82 = vector.extract_strided_slice %0 {offsets = [8, 0], sizes = [1, 128], strides = [1, 1]} : vector<10x128xf32> to vector<1x128xf32>
    %c0_29 = arith.constant 0 : index
    %c0_30 = arith.constant 0 : index
    %83 = vector.load %arg11[%c0_29, %c0_30] : memref<488x128xf32, #tpu.memory_space<vmem>>, vector<384x64xf32>
    tpu.vector_store %arg11[%c0_29, %c0_30], %78 {strides = array<i32>} : memref<488x128xf32, #tpu.memory_space<vmem>>, vector<384x64xf32>,
    %cst_31 = arith.constant 0.000000e+00 : f32
    %84 = vector.broadcast %cst_31 : f32 to vector<40x64xf32>
    %c384 = arith.constant 384 : index
    %c0_32 = arith.constant 0 : index
    %85 = vector.load %arg11[%c384, %c0_32] : memref<488x128xf32, #tpu.memory_space<vmem>>, vector<40x64xf32>
    tpu.vector_store %arg11[%c384, %c0_32], %84 {strides = array<i32>} : memref<488x128xf32, #tpu.memory_space<vmem>>, vector<40x64xf32>,
    %c0_33 = arith.constant 0 : index
    %c0_34 = arith.constant 0 : index
    %86 = vector.load %arg5[%c0_33, %c0_34] : memref<9x64xf32, #tpu.memory_space<vmem>>, vector<9x64xf32>
    %cst_35 = arith.constant 0.000000e+00 : f32
    %87 = vector.broadcast %cst_35 : f32 to vector<384x64xf32>
    %c0_36 = arith.constant 0 : index
    %c0_37 = arith.constant 0 : index
    %88 = vector.load %arg11[%c0_36, %c0_37] : memref<488x128xf32, #tpu.memory_space<vmem>>, vector<384x64xf32>
    %89 = vector.extract_strided_slice %86 {offsets = [0, 0], sizes = [1, 64], strides = [1, 1]} : vector<9x64xf32> to vector<1x64xf32>
    %90 = vector.broadcast %89 : vector<1x64xf32> to vector<384x64xf32>
    %91 = arith.mulf %88, %90 : vector<384x64xf32>
    %92 = arith.addf %87, %91 : vector<384x64xf32>
    %c1_38 = arith.constant 1 : index
    %c0_39 = arith.constant 0 : index
    %93 = vector.load %arg11[%c1_38, %c0_39] : memref<488x128xf32, #tpu.memory_space<vmem>>, vector<384x64xf32>
    %94 = vector.extract_strided_slice %86 {offsets = [1, 0], sizes = [1, 64], strides = [1, 1]} : vector<9x64xf32> to vector<1x64xf32>
    %95 = vector.broadcast %94 : vector<1x64xf32> to vector<384x64xf32>
    %96 = arith.mulf %93, %95 : vector<384x64xf32>
    %97 = arith.addf %92, %96 : vector<384x64xf32>
    %c2_40 = arith.constant 2 : index
    %c0_41 = arith.constant 0 : index
    %98 = vector.load %arg11[%c2_40, %c0_41] : memref<488x128xf32, #tpu.memory_space<vmem>>, vector<384x64xf32>
    %99 = vector.extract_strided_slice %86 {offsets = [2, 0], sizes = [1, 64], strides = [1, 1]} : vector<9x64xf32> to vector<1x64xf32>
    %100 = vector.broadcast %99 : vector<1x64xf32> to vector<384x64xf32>
    %101 = arith.mulf %98, %100 : vector<384x64xf32>
    %102 = arith.addf %97, %101 : vector<384x64xf32>
    %c16_42 = arith.constant 16 : index
    %c0_43 = arith.constant 0 : index
    %103 = vector.load %arg11[%c16_42, %c0_43] : memref<488x128xf32, #tpu.memory_space<vmem>>, vector<384x64xf32>
    %104 = vector.extract_strided_slice %86 {offsets = [3, 0], sizes = [1, 64], strides = [1, 1]} : vector<9x64xf32> to vector<1x64xf32>
    %105 = vector.broadcast %104 : vector<1x64xf32> to vector<384x64xf32>
    %106 = arith.mulf %103, %105 : vector<384x64xf32>
    %107 = arith.addf %102, %106 : vector<384x64xf32>
    %c17_44 = arith.constant 17 : index
    %c0_45 = arith.constant 0 : index
    %108 = vector.load %arg11[%c17_44, %c0_45] : memref<488x128xf32, #tpu.memory_space<vmem>>, vector<384x64xf32>
    %109 = vector.extract_strided_slice %86 {offsets = [4, 0], sizes = [1, 64], strides = [1, 1]} : vector<9x64xf32> to vector<1x64xf32>
    %110 = vector.broadcast %109 : vector<1x64xf32> to vector<384x64xf32>
    %111 = arith.mulf %108, %110 : vector<384x64xf32>
    %112 = arith.addf %107, %111 : vector<384x64xf32>
    %c18_46 = arith.constant 18 : index
    %c0_47 = arith.constant 0 : index
    %113 = vector.load %arg11[%c18_46, %c0_47] : memref<488x128xf32, #tpu.memory_space<vmem>>, vector<384x64xf32>
    %114 = vector.extract_strided_slice %86 {offsets = [5, 0], sizes = [1, 64], strides = [1, 1]} : vector<9x64xf32> to vector<1x64xf32>
    %115 = vector.broadcast %114 : vector<1x64xf32> to vector<384x64xf32>
    %116 = arith.mulf %113, %115 : vector<384x64xf32>
    %117 = arith.addf %112, %116 : vector<384x64xf32>
    %c32_48 = arith.constant 32 : index
    %c0_49 = arith.constant 0 : index
    %118 = vector.load %arg11[%c32_48, %c0_49] : memref<488x128xf32, #tpu.memory_space<vmem>>, vector<384x64xf32>
    %119 = vector.extract_strided_slice %86 {offsets = [6, 0], sizes = [1, 64], strides = [1, 1]} : vector<9x64xf32> to vector<1x64xf32>
    %120 = vector.broadcast %119 : vector<1x64xf32> to vector<384x64xf32>
    %121 = arith.mulf %118, %120 : vector<384x64xf32>
    %122 = arith.addf %117, %121 : vector<384x64xf32>
    %c33_50 = arith.constant 33 : index
    %c0_51 = arith.constant 0 : index
    %123 = vector.load %arg11[%c33_50, %c0_51] : memref<488x128xf32, #tpu.memory_space<vmem>>, vector<384x64xf32>
    %124 = vector.extract_strided_slice %86 {offsets = [7, 0], sizes = [1, 64], strides = [1, 1]} : vector<9x64xf32> to vector<1x64xf32>
    %125 = vector.broadcast %124 : vector<1x64xf32> to vector<384x64xf32>
    %126 = arith.mulf %123, %125 : vector<384x64xf32>
    %127 = arith.addf %122, %126 : vector<384x64xf32>
    %c34_52 = arith.constant 34 : index
    %c0_53 = arith.constant 0 : index
    %128 = vector.load %arg11[%c34_52, %c0_53] : memref<488x128xf32, #tpu.memory_space<vmem>>, vector<384x64xf32>
    %129 = vector.extract_strided_slice %86 {offsets = [8, 0], sizes = [1, 64], strides = [1, 1]} : vector<9x64xf32> to vector<1x64xf32>
    %130 = vector.broadcast %129 : vector<1x64xf32> to vector<384x64xf32>
    %131 = arith.mulf %128, %130 : vector<384x64xf32>
    %132 = arith.addf %127, %131 : vector<384x64xf32>
    %133 = vector.shape_cast %132 : vector<384x64xf32> to vector<2x12x16x64xf32>
    %134 = vector.extract_strided_slice %133 {offsets = [0, 0, 0, 0], sizes = [2, 10, 16, 64], strides = [1, 1, 1, 1]} : vector<2x12x16x64xf32> to vector<2x10x16x64xf32>
    %135 = vector.shape_cast %134 : vector<2x10x16x64xf32> to vector<320x64xf32>
    %136 = vector.broadcast %79 : vector<1x64xf32> to vector<320x64xf32>
    %137 = arith.mulf %135, %136 : vector<320x64xf32>
    %138 = vector.broadcast %80 : vector<1x64xf32> to vector<320x64xf32>
    %139 = arith.addf %137, %138 : vector<320x64xf32>
    %cst_54 = arith.constant 0.000000e+00 : f32
    %140 = vector.broadcast %cst_54 : f32 to vector<320x64xf32>
    %141 = arith.maximumf %139, %140 : vector<320x64xf32>
    %c0_55 = arith.constant 0 : index
    %c0_56 = arith.constant 0 : index
    %142 = vector.load %arg6[%c0_55, %c0_56] : memref<64x128xf32, #tpu.memory_space<vmem>>, vector<64x128xf32>
    %cst_57 = arith.constant dense<0.000000e+00> : vector<320x128xf32>
    %143 = tpu.matmul %141, %142, %cst_57 {dimension_numbers = #tpu.dot_dimension_numbers<[1], [0], [0], [1], [0, 0, 1, 1], [], []>} : vector<320x64xf32>, vector<64x128xf32>, vector<320x128xf32> -> vector<320x128xf32>
    %144 = vector.broadcast %81 : vector<1x128xf32> to vector<320x128xf32>
    %145 = arith.mulf %143, %144 : vector<320x128xf32>
    %146 = vector.broadcast %82 : vector<1x128xf32> to vector<320x128xf32>
    %147 = arith.addf %145, %146 : vector<320x128xf32>
    %cst_58 = arith.constant 0.000000e+00 : f32
    %148 = vector.broadcast %cst_58 : f32 to vector<320x128xf32>
    %149 = arith.maximumf %147, %148 : vector<320x128xf32>
    %150 = vector.shape_cast %149 : vector<320x128xf32> to vector<2x160x128xf32>
    %c0_59 = arith.constant 0 : index
    %c0_60 = arith.constant 0 : index
    %151 = vector.load %arg9[%c0_59, %c0_60] : memref<160x1xf32, #tpu.memory_space<vmem>>, vector<160x1xf32>
    %152 = vector.shape_cast %151 : vector<160x1xf32> to vector<1x160x1xf32>
    %153 = vector.broadcast %152 : vector<1x160x1xf32> to vector<2x160x128xf32>
    %154 = arith.mulf %150, %153 : vector<2x160x128xf32>
    %cst_61 = arith.constant dense<0.000000e+00> : vector<2x128xf32>
    %155 = vector.multi_reduction <add>, %154, %cst_61 [1] : vector<2x160x128xf32> to vector<2x128xf32>
    %c0_62 = arith.constant 0 : index
    %c0_63 = arith.constant 0 : index
    %156 = vector.load %arg7[%c0_62, %c0_63] : memref<128x128xf32, #tpu.memory_space<vmem>>, vector<128x128xf32>
    %cst_64 = arith.constant dense<0.000000e+00> : vector<2x128xf32>
    %157 = tpu.matmul %155, %156, %cst_64 {dimension_numbers = #tpu.dot_dimension_numbers<[1], [0], [0], [1], [0, 0, 1, 1], [], []>} : vector<2x128xf32>, vector<128x128xf32>, vector<2x128xf32> -> vector<2x128xf32>
    %158 = vector.extract_strided_slice %0 {offsets = [9, 0], sizes = [1, 128], strides = [1, 1]} : vector<10x128xf32> to vector<1x128xf32>
    %159 = vector.broadcast %158 : vector<1x128xf32> to vector<2x128xf32>
    %160 = arith.addf %157, %159 : vector<2x128xf32>
    %c0_65 = arith.constant 0 : index
    %c0_66 = arith.constant 0 : index
    %161 = vector.load %arg10[%c0_65, %c0_66] : memref<2x128xf32, #tpu.memory_space<vmem>>, vector<2x128xf32>
    tpu.vector_store %arg10[%c0_65, %c0_66], %160 {strides = array<i32>} : memref<2x128xf32, #tpu.memory_space<vmem>>, vector<2x128xf32>,
    return
  }
  func.func @transform_0(%arg0: i32) -> (i32, i32, i32, i32) {
    %c0_i32 = arith.constant 0 : i32
    %c0_i32_0 = arith.constant 0 : i32
    %c0_i32_1 = arith.constant 0 : i32
    %c0_i32_2 = arith.constant 0 : i32
    return %arg0, %c0_i32, %c0_i32_0, %c0_i32_1 : i32, i32, i32, i32
  }
  func.func @transform_1(%arg0: i32) -> (i32, i32) {
    %c0_i32 = arith.constant 0 : i32
    %c0_i32_0 = arith.constant 0 : i32
    %c0_i32_1 = arith.constant 0 : i32
    return %c0_i32, %c0_i32_0 : i32, i32
  }
  func.func @transform_2(%arg0: i32) -> (i32, i32) {
    %c0_i32 = arith.constant 0 : i32
    %c0_i32_0 = arith.constant 0 : i32
    %c0_i32_1 = arith.constant 0 : i32
    return %c0_i32, %c0_i32_0 : i32, i32
  }
  func.func @transform_3(%arg0: i32) -> (i32, i32) {
    %c0_i32 = arith.constant 0 : i32
    %c0_i32_0 = arith.constant 0 : i32
    %c0_i32_1 = arith.constant 0 : i32
    return %c0_i32, %c0_i32_0 : i32, i32
  }
  func.func @transform_4(%arg0: i32) -> (i32, i32) {
    %c0_i32 = arith.constant 0 : i32
    %c0_i32_0 = arith.constant 0 : i32
    %c0_i32_1 = arith.constant 0 : i32
    return %c0_i32, %c0_i32_0 : i32, i32
  }
  func.func @transform_5(%arg0: i32) -> (i32, i32) {
    %c0_i32 = arith.constant 0 : i32
    %c0_i32_0 = arith.constant 0 : i32
    %c0_i32_1 = arith.constant 0 : i32
    return %c0_i32, %c0_i32_0 : i32, i32
  }
  func.func @transform_6(%arg0: i32) -> (i32, i32) {
    %c0_i32 = arith.constant 0 : i32
    %c0_i32_0 = arith.constant 0 : i32
    %c0_i32_1 = arith.constant 0 : i32
    return %c0_i32, %c0_i32_0 : i32, i32
  }
  func.func @transform_7(%arg0: i32) -> (i32, i32) {
    %c0_i32 = arith.constant 0 : i32
    %c0_i32_0 = arith.constant 0 : i32
    %c0_i32_1 = arith.constant 0 : i32
    return %c0_i32, %c0_i32_0 : i32, i32
  }
  func.func @transform_8(%arg0: i32) -> (i32, i32) {
    %c0_i32 = arith.constant 0 : i32
    %c0_i32_0 = arith.constant 0 : i32
    %c0_i32_1 = arith.constant 0 : i32
    return %c0_i32, %c0_i32_0 : i32, i32
  }
  func.func @transform_9(%arg0: i32) -> (i32, i32) {
    %c0_i32 = arith.constant 0 : i32
    %c0_i32_0 = arith.constant 0 : i32
    return %arg0, %c0_i32 : i32, i32
  }
}

</mosaic_0001>

<bundles_post_ra>
// kernel: tpu_custom_call.1
= control target key start
LH: loop header
LB: loop body
LE: loop exit
PB: predicated region body
PF: predicated region fallthrough
CT: control target
= control target key end

     0   :  { %14 = vsyncpa [#allocation4], 0  ;;  %s8111_s0 = inlined_call_operand.hbm [shape: f32[2,14,16,27], index: 0, kind: input, shape index: {}]   ;;  %s8112_s1 = inlined_call_operand.vmem [shape: f32[27,32], index: 1, kind: input, shape index: {}]   ;;  %s8113_s2 = inlined_call_operand.hbm [shape: f32[9,32], index: 2, kind: input, shape index: {}]   ;;  %s8114_s3 = inlined_call_operand.hbm [shape: f32[32,64], index: 3, kind: input, shape index: {}]   ;;  %s8115_s4 = inlined_call_operand.hbm [shape: f32[9,64], index: 4, kind: input, shape index: {}]   ;;  %s8116_s5 = inlined_call_operand.hbm [shape: f32[64,128], index: 5, kind: input, shape index: {}]   ;;  %s8117_s6 = inlined_call_operand.vmem [shape: f32[128,128], index: 6, kind: input, shape index: {}]   ;;  %s8118_s7 = inlined_call_operand.hbm [shape: f32[10,128], index: 7, kind: input, shape index: {}]   ;;  %s8119_s8 = inlined_call_operand.vmem [shape: f32[160,1], index: 8, kind: input, shape index: {}]   ;;  %s8120_s9 = inlined_call_operand.hbm [shape: f32[2,128], index: 9, kind: output, shape index: {}]  }
   0x1   :  { %15 = vsyncpa [#allocation7], 0 }
   0x2   :  { %16 = vsyncpa [#allocation10], 0 }
   0x3   :  { %17 = vsyncpa [#allocation13], 0 }
   0x4   :  { %18 = vsyncpa [#allocation5], 0  ;;  %s5294_s30 = smov [#allocation6]   ;;  %s5295_s11 = smov [#allocation9]  }
   0x5   :  { %s38_s10 = sshll.u32 %s5294_s30, 4  ;;  %s62_s12 = sshll.u32 %s5295_s11, 4  ;;  %s39_s10 = int_to_ptr.vmem [resolvable:$true] %s38_s10  ;;  %s63_s12 = int_to_ptr.vmem [resolvable:$true] %s62_s12 }
   0x6   :  { %s5152_s13 = scalar_lea.vmem %s39_s10, 256  ;;  %p5157_p1 = scmp.lt.s32.totalorder %s39_s10, %s39_s10 }
   0x7   :  { %p5153_p0 = scmp.ne.s32.totalorder %s39_s10, %s5152_s13  ;;  %p5158_p2 = scmp.lt.s32.totalorder %s5152_s13, %s5152_s13 }
   0x9   :  { %p5159_p3 = por %p5158_p2, %p5157_p1 }
   0xb   :  { %p5160_p4 = pnand %p5159_p3, %p5153_p0 }
   0xd   :  { %5163 = shalt.err (!%p5160_p4)
}
   0xe   :  { %s5296_s14 = smov 128   ;;  %s5297_s15 = smov 8  }
   0xf   :  { %44 = dma.hbm_to_vmem [thread:$0]  %s8113_s2, 256, %s39_s10, [#allocation7], %s5296_s14, %s5296_s14, %s5297_s15  }
  0x10   :  { %s5172_s18 = scalar_lea.vmem %s63_s12, 256  ;;  %p5177_p6 = scmp.lt.s32.totalorder %s63_s12, %s63_s12 }
  0x11   :  { %p5173_p5 = scmp.ne.s32.totalorder %s63_s12, %s5172_s18  ;;  %p5178_p7 = scmp.lt.s32.totalorder %s5172_s18, %s5172_s18 }
  0x13   :  { %p5179_p8 = por %p5178_p7, %p5177_p6 }
  0x15   :  { %p5180_p9 = pnand %p5179_p8, %p5173_p5 }
  0x17   :  { %5183 = shalt.err (!%p5180_p9)
}
  0x18   :  { %68 = dma.hbm_to_vmem [thread:$0]  %s8115_s4, 256, %s63_s12, [#allocation10], %s5296_s14, %s5296_s14, %s5297_s15  }
  0x19   :  { %s5298_s21 = smov [#allocation3]   ;;  %s5299_s23 = smov [#allocation8]  }
  0x1a   :  { %s24_s22 = sshll.u32 %s5298_s21, 4  ;;  %s50_s24 = sshll.u32 %s5299_s23, 4  ;;  %s25_s22 = int_to_ptr.vmem [resolvable:$true] %s24_s22  ;;  %s51_s24 = int_to_ptr.vmem [resolvable:$true] %s50_s24 }
  0x1b   :  { %s5192_s2 = scalar_lea.vmem %s25_s22, 7168  ;;  %p5197_p11 = scmp.lt.s32.totalorder %s25_s22, %s25_s22 }
  0x1c   :  { %p5193_p10 = scmp.ne.s32.totalorder %s25_s22, %s5192_s2  ;;  %p5198_p12 = scmp.lt.s32.totalorder %s5192_s2, %s5192_s2 }
  0x1e   :  { %p5199_p13 = por %p5198_p12, %p5197_p11 }
  0x20   :  { %p5200_p0 = pnand %p5199_p13, %p5193_p10 }
  0x22   :  { %5203 = shalt.err (!%p5200_p0)
}
  0x23   :  { %30 = dma.hbm_to_vmem [thread:$0]  %s8111_s0, 7168, %s25_s22, [#allocation4], %s5296_s14, %s5296_s14, %s5297_s15  }
  0x24   :  { %s5212_s4 = scalar_lea.vmem %s51_s24, 512  ;;  %p5217_p2 = scmp.lt.s32.totalorder %s51_s24, %s51_s24 }
  0x25   :  { %p5213_p1 = scmp.ne.s32.totalorder %s51_s24, %s5212_s4  ;;  %p5218_p3 = scmp.lt.s32.totalorder %s5212_s4, %s5212_s4 }
  0x27   :  { %p5219_p4 = por %p5218_p3, %p5217_p2 }
  0x29   :  { %p5220_p5 = pnand %p5219_p4, %p5213_p1 }
  0x2b   :  { %5223 = shalt.err (!%p5220_p5)
}
  0x2c   :  { %56 = dma.hbm_to_vmem [thread:$0]  %s8114_s3, 512, %s51_s24, [#allocation7], %s5296_s14, %s5296_s14, %s5297_s15  }
  0x2d   :  { %s5300_s29 = smov [#allocation11]   ;;  %s5301_s10 = smov [#allocation12]  }
  0x2e   :  { %s74_s30 = sshll.u32 %s5300_s29, 4  ;;  %s88_s11 = sshll.u32 %s5301_s10, 4  ;;  %s75_s30 = int_to_ptr.vmem [resolvable:$true] %s74_s30  ;;  %s89_s11 = int_to_ptr.vmem [resolvable:$true] %s88_s11 }
  0x2f   :  { %s5232_s0 = scalar_lea.vmem %s75_s30, 1024  ;;  %p5237_p7 = scmp.lt.s32.totalorder %s75_s30, %s75_s30 }
  0x30   :  { %p5233_p6 = scmp.ne.s32.totalorder %s75_s30, %s5232_s0  ;;  %p5238_p8 = scmp.lt.s32.totalorder %s5232_s0, %s5232_s0 }
  0x32   :  { %p5239_p9 = por %p5238_p8, %p5237_p7 }
  0x34   :  { %p5240_p10 = pnand %p5239_p9, %p5233_p6 }
  0x36   :  { %5243 = shalt.err (!%p5240_p10)
}
  0x37   :  { %80 = dma.hbm_to_vmem [thread:$0]  %s8116_s5, 1024, %s75_s30, [#allocation10], %s5296_s14, %s5296_s14, %s5297_s15  }
  0x38   :  { %s5252_s3 = scalar_lea.vmem %s89_s11, 256  ;;  %p5257_p12 = scmp.lt.s32.totalorder %s89_s11, %s89_s11 }
  0x39   :  { %p5253_p11 = scmp.ne.s32.totalorder %s89_s11, %s5252_s3  ;;  %p5258_p13 = scmp.lt.s32.totalorder %s5252_s3, %s5252_s3 }
  0x3b   :  { %p5259_p0 = por %p5258_p13, %p5257_p12 }
  0x3d   :  { %p5260_p1 = pnand %p5259_p0, %p5253_p11 }
  0x3f   :  { %5263 = shalt.err (!%p5260_p1)
}
  0x40   :  { %94 = dma.hbm_to_vmem [thread:$0]  %s8118_s7, 256, %s89_s11, [#allocation13], %s5296_s14, %s5296_s14, %s5297_s15  }
  0x41   :  { %5284 = dma.done.wait [#allocation4], 7168  }
  0x42   :  { %5285 = vsyncadd [#allocation4], 4294960128 }
  0x43   :  { %5286 = dma.done.wait [#allocation7], 768  }
  0x44   :  { %5287 = vsyncadd [#allocation7], 4294966528 }
  0x45   :  { %5288 = dma.done.wait [#allocation10], 1280  }
  0x46   :  { %5289 = vsyncadd [#allocation10], 4294966016 }
  0x47   :  { %5290 = dma.done.wait [#allocation13], 256  }
  0x48   :  { %5291 = vsyncadd [#allocation13], 4294967040  ;;  %vm350_vm0 = vcmask 1042432   ;;  %vm181_vm1 = vcmask 220160   ;;  %v176_v0 = vld [vmem:[%s8112_s1 + $0x18] sm:$0x7] }
  0x49   :  { %v175_v1 = vld [vmem:[%s8112_s1 + $0x10] sm:$0xff]  ;;  %4841 = vmatprep.subr.msk.mxu0 %vm350_vm0, %v176_v0  ;;  %v117_v2 = vld [vmem:[#allocation3] sm:$0xff]  ;;  %v173_v4 = vld [vmem:[%s8112_s1] sm:$0xff]  ;;  %vm699_vm2 = vcmask 261120   ;;  %vm2588_vm3 = vcmask 523264   ;;  %vm5304_vm4 = vmmov 0  }
  0x4a   :  { %4842 = vmatpush3.msk.msra.mxu0 %vm350_vm0, %v176_v0  ;;  %v174_v3 = vld [vmem:[%s8112_s1 + $0x8] sm:$0xff]  ;;  %4849 = vmatprep.mubr.msk.f32.mxu0 %vm181_vm1, %v117_v2  ;;  %v118_v5 = vld [vmem:[#allocation3 + $0x8] sm:$0xff]  ;;  %v119_v6 = vld [vmem:[#allocation3 + $0x10] sm:$0xff]  ;;  %v177_v0 = vlaneseq  ;;  %vm4425_vm5 = vcmask 1041409  }
  0x4b   :  { %4843 = vmatprep.subr.mxu0 %v175_v1  ;;  %v120_v7 = vld [vmem:[#allocation3 + $0x18] sm:$0xff]  ;;  %v121_v8 = vld [vmem:[#allocation3 + $0x20] sm:$0xff]  ;;  %v122_v9 = vld [vmem:[#allocation3 + $0x28] sm:$0xff] }
  0x4c   :  { %4844 = vmatpush3.msra.mxu0 %v175_v1  ;;  %v123_v10 = vld [vmem:[#allocation3 + $0x30] sm:$0xff]  ;;  %v124_v11 = vld [vmem:[#allocation3 + $0x38] sm:$0xff]  ;;  %v125_v12 = vld [vmem:[#allocation3 + $0x40] sm:$0xff]  ;;  %v178_v1 = vshrl.u32 %v177_v0, 7 }
  0x4d   :  { %4845 = vmatprep.subr.mxu0 %v174_v3  ;;  %v126_v13 = vld [vmem:[#allocation3 + $0x48] sm:$0xff]  ;;  %v127_v14 = vld [vmem:[#allocation3 + $0x50] sm:$0xff]  ;;  %v128_v15 = vld [vmem:[#allocation3 + $0x58] sm:$0xff] }
  0x4e   :  { %4846 = vmatpush3.msra.mxu0 %v174_v3  ;;  %v129_v16 = vld [vmem:[#allocation3 + $0x60] sm:$0xff]  ;;  %v130_v17 = vld [vmem:[#allocation3 + $0x68] sm:$0xff]  ;;  %v131_v18 = vld [vmem:[#allocation3 + $0x70] sm:$0xff]  ;;  %v5460_v2 = vsub.s32 0, %v178_v1 }
  0x4f   :  { %4847 = vmatprep.subr.mxu0 %v173_v4  ;;  %v132_v19 = vld [vmem:[#allocation3 + $0x78] sm:$0xff]  ;;  %v133_v20 = vld [vmem:[#allocation3 + $0x80] sm:$0xff]  ;;  %v134_v21 = vld [vmem:[#allocation3 + $0x88] sm:$0xff] }
  0x50   :  { %4848 = vmatpush3.msra.mxu0 %v173_v4  ;;  %v135_v22 = vld [vmem:[#allocation3 + $0x90] sm:$0xff]  ;;  %v136_v23 = vld [vmem:[#allocation3 + $0x98] sm:$0xff]  ;;  %v137_v24 = vld [vmem:[#allocation3 + $0xa0] sm:$0xff] }
  0x51   :  { %4850 = vmatmul.mubr.msk.f32.vlgmr.msra.gmra.mxu0 %vm181_vm1, %v118_v5  ;;  %v138_v25 = vld [vmem:[#allocation3 + $0xa8] sm:$0xff]  ;;  %v139_v26 = vld [vmem:[#allocation3 + $0xb0] sm:$0xff]  ;;  %v140_v27 = vld [vmem:[#allocation3 + $0xb8] sm:$0xff] }
  0x52   :  { %4852 = vmatprep.mubr.msk.f32.mxu0 %vm181_vm1, %v119_v6  ;;  %v141_v28 = vld [vmem:[#allocation3 + $0xc0] sm:$0xff]  ;;  %v142_v29 = vld [vmem:[#allocation3 + $0xc8] sm:$0xff]  ;;  %v143_v30 = vld [vmem:[#allocation3 + $0xd0] sm:$0xff] }
  0x53   :  { %v144_v31 = vld [vmem:[#allocation3 + $0xd8] sm:$0xff]  ;;  %v145_v32 = vld [vmem:[#allocation3 + $0xe0] sm:$0xff]  ;;  %v146_v33 = vld [vmem:[#allocation3 + $0xe8] sm:$0xff] }
  0x54   :  { %v147_v34 = vld [vmem:[#allocation3 + $0xf0] sm:$0xff]  ;;  %v148_v35 = vld [vmem:[#allocation3 + $0xf8] sm:$0xff]  ;;  %v149_v36 = vld [vmem:[#allocation3 + $0x100] sm:$0xff] }
  0x55   :  { %4853 = vmatmul.mubr.msk.f32.gmra.mxu0 %vm181_vm1, %v120_v7  ;;  %v150_v37 = vld [vmem:[#allocation3 + $0x108] sm:$0xff]  ;;  %v151_v38 = vld [vmem:[#allocation3 + $0x110] sm:$0xff]  ;;  %v152_v39 = vld [vmem:[#allocation3 + $0x118] sm:$0xff] }
  0x56   :  { %4855 = vmatprep.mubr.msk.f32.mxu0 %vm181_vm1, %v121_v8  ;;  %v153_v40 = vld [vmem:[#allocation3 + $0x120] sm:$0xff]  ;;  %v154_v41 = vld [vmem:[#allocation3 + $0x128] sm:$0xff]  ;;  %v155_v42 = vld [vmem:[#allocation3 + $0x130] sm:$0xff] }
  0x57   :  { %v156_v43 = vld [vmem:[#allocation3 + $0x138] sm:$0xff]  ;;  %v157_v44 = vld [vmem:[#allocation3 + $0x140] sm:$0xff]  ;;  %v158_v45 = vld [vmem:[#allocation3 + $0x148] sm:$0xff] }
  0x58   :  { %v159_v46 = vld [vmem:[#allocation3 + $0x150] sm:$0xff]  ;;  %v160_v47 = vld [vmem:[#allocation3 + $0x158] sm:$0xff]  ;;  %v161_v48 = vld [vmem:[#allocation3 + $0x160] sm:$0xff] }
  0x59   :  { %4856 = vmatmul.mubr.msk.f32.gmra.mxu0 %vm181_vm1, %v122_v9  ;;  %v162_v49 = vld [vmem:[#allocation3 + $0x168] sm:$0xff]  ;;  %v163_v50 = vld [vmem:[#allocation3 + $0x170] sm:$0xff]  ;;  %v164_v51 = vld [vmem:[#allocation3 + $0x178] sm:$0xff] }
  0x5a   :  { %4858 = vmatprep.mubr.msk.f32.mxu0 %vm181_vm1, %v123_v10  ;;  %v165_v52 = vld [vmem:[#allocation3 + $0x180] sm:$0xff]  ;;  %v166_v53 = vld [vmem:[#allocation3 + $0x188] sm:$0xff]  ;;  %v167_v54 = vld [vmem:[#allocation3 + $0x190] sm:$0xff] }
  0x5b   :  { %v1986_v55 = vld [vmem:[#allocation8 + $0x18] sm:$0xff]  ;;  %v168_v56 = vld [vmem:[#allocation3 + $0x198] sm:$0xff]  ;;  %v169_v57 = vld [vmem:[#allocation3 + $0x1a0] sm:$0xff] }
  0x5c   :  { %4933 = vmatprep.subr.mxu1 %v1986_v55  ;;  %v1985_v58 = vld [vmem:[#allocation8 + $0x10] sm:$0xff]  ;;  %v1984_v59 = vld [vmem:[#allocation8 + $0x8] sm:$0xff]  ;;  %v170_v60 = vld [vmem:[#allocation3 + $0x1a8] sm:$0xff] }
  0x5d   :  { %4859 = vmatmul.mubr.msk.f32.gmra.mxu0 %vm181_vm1, %v124_v11  ;;  %4934 = vmatpush3.msra.mxu1 %v1986_v55  ;;  %v171_v61 = vld [vmem:[#allocation3 + $0x1b0] sm:$0xff]  ;;  %v172_v63 = vld [vmem:[#allocation3 + $0x1b8] sm:$0xff]  ;;  %v115_v3 = vld [vmem:[#allocation12] sm:$0xff]  ;;  %v5470_v11 = vsub.s32 1, %v178_v1 }
  0x5e   :  { %4861 = vmatprep.mubr.msk.f32.mxu0 %vm181_vm1, %v125_v12  ;;  %4935 = vmatprep.subr.mxu1 %v1985_v58  ;;  %v1983_v62 = vld [vmem:[#allocation8] sm:$0xff]  ;;  %v5463_v4 = vrot.slane %v115_v3, %v5460_v2 }
  0x5f   :  { %4936 = vmatpush3.msra.mxu1 %v1985_v58 }
  0x60   :  { %4937 = vmatprep.subr.mxu1 %v1984_v59 }
  0x61   :  { %4862 = vmatmul.mubr.msk.f32.gmra.mxu0 %vm181_vm1, %v126_v13  ;;  %4938 = vmatpush3.msra.mxu1 %v1984_v59 }
  0x62   :  { %4864 = vmatprep.mubr.msk.f32.mxu0 %vm181_vm1, %v127_v14  ;;  %4939 = vmatprep.subr.mxu1 %v1983_v62 }
  0x63   :  { %4940 = vmatpush3.msra.mxu1 %v1983_v62 }
  0x65   :  { %4865 = vmatmul.mubr.msk.f32.gmra.mxu0 %vm181_vm1, %v128_v15  ;;  %v761_v15 = vld [vmem:[#allocation6] sm:$0xff] }
  0x66   :  { %4867 = vmatprep.mubr.msk.f32.mxu0 %vm181_vm1, %v129_v16  ;;  %v5474_v16 = vsub.s32 2, %v178_v1 }
  0x69   :  { %4868 = vmatmul.mubr.msk.f32.gmra.mxu0 %vm181_vm1, %v130_v17 }
  0x6a   :  { %4870 = vmatprep.mubr.msk.f32.mxu0 %vm181_vm1, %v131_v18  ;;  %v5479_v18 = vrot.slane %v761_v15, %v5470_v11 }
  0x6d   :  { %4871 = vmatmul.mubr.msk.f32.gmra.mxu0 %vm181_vm1, %v132_v19  ;;  %v5481_v19 = vsub.s32 3, %v178_v1 }
  0x6e   :  { %4873 = vmatprep.mubr.msk.f32.mxu0 %vm181_vm1, %v133_v20 }
  0x71   :  { %4874 = vmatmul.mubr.msk.f32.gmra.mxu0 %vm181_vm1, %v134_v21  ;;  %v5483_v21 = vsub.s32 4, %v178_v1 }
  0x72   :  { %4876 = vmatprep.mubr.msk.f32.mxu0 %vm181_vm1, %v135_v22  ;;  %v5485_v22 = vsub.s32 5, %v178_v1 }
  0x74   :  { %8129 = vst [vmem:[#allocation20_spill] sm:$0xff] %v5485_v22 }
  0x75   :  { %4877 = vmatmul.mubr.msk.f32.gmra.mxu0 %vm181_vm1, %v136_v23 }
  0x76   :  { %4879 = vmatprep.mubr.msk.f32.mxu0 %vm181_vm1, %v137_v24  ;;  %v5490_v24 = vrot.slane %v761_v15, %v5460_v2 }
  0x79   :  { %4880 = vmatmul.mubr.msk.f32.gmra.mxu0 %vm181_vm1, %v138_v25  ;;  %v5492_v25 = vsub.s32 6, %v178_v1 }
  0x7a   :  { %4882 = vmatprep.mubr.msk.f32.mxu0 %vm181_vm1, %v139_v26  ;;  %v5494_v26 = vsub.s32 7, %v178_v1 }
  0x7b   :  { %8130 = vst [vmem:[#allocation21_spill] sm:$0xff] %v5492_v25 }
  0x7c   :  { %8131 = vst [vmem:[#allocation22_spill] sm:$0xff] %v5494_v26 }
  0x7d   :  { %4883 = vmatmul.mubr.msk.f32.gmra.mxu0 %vm181_vm1, %v140_v27 }
  0x7e   :  { %4885 = vmatprep.mubr.msk.f32.mxu0 %vm181_vm1, %v141_v28 }
  0x81   :  { %4886 = vmatmul.mubr.msk.f32.gmra.mxu0 %vm181_vm1, %v142_v29 }
  0x82   :  { %4888 = vmatprep.mubr.msk.f32.mxu0 %vm181_vm1, %v143_v30  ;;  %v5497_v30 = vrot.slane %v761_v15, %v5474_v16 }
  0x85   :  { %4889 = vmatmul.mubr.msk.f32.gmra.mxu0 %vm181_vm1, %v144_v31 }
  0x86   :  { %4891 = vmatprep.mubr.msk.f32.mxu0 %vm181_vm1, %v145_v32 }
  0x89   :  { %4892 = vmatmul.mubr.msk.f32.gmra.mxu0 %vm181_vm1, %v146_v33 }
  0x8a   :  { %4894 = vmatprep.mubr.msk.f32.mxu0 %vm181_vm1, %v147_v34 }
  0x8d   :  { %4895 = vmatmul.mubr.msk.f32.gmra.mxu0 %vm181_vm1, %v148_v35  ;;  %v5504_v35 = vrot.slane %v761_v15, %v5481_v19 }
  0x8e   :  { %4897 = vmatprep.mubr.msk.f32.mxu0 %vm181_vm1, %v149_v36 }
  0x91   :  { %4898 = vmatmul.mubr.msk.f32.gmra.mxu0 %vm181_vm1, %v150_v37 }
  0x92   :  { %4900 = vmatprep.mubr.msk.f32.mxu0 %vm181_vm1, %v151_v38  ;;  %v5507_v38 = vrot.slane %v761_v15, %v5483_v21 }
  0x95   :  { %4901 = vmatmul.mubr.msk.f32.gmra.mxu0 %vm181_vm1, %v152_v39  ;;  %v5510_v39 = vrot.slane %v761_v15, %v5485_v22 }
  0x96   :  { %4903 = vmatprep.mubr.msk.f32.mxu0 %vm181_vm1, %v153_v40 }
  0x99   :  { %4904 = vmatmul.mubr.msk.f32.gmra.mxu0 %vm181_vm1, %v154_v41 }
  0x9a   :  { %4906 = vmatprep.mubr.msk.f32.mxu0 %vm181_vm1, %v155_v42 }
  0x9d   :  { %4907 = vmatmul.mubr.msk.f32.gmra.mxu0 %vm181_vm1, %v156_v43  ;;  %v5515_v43 = vrot.slane %v761_v15, %v5492_v25 }
  0x9e   :  { %4909 = vmatprep.mubr.msk.f32.mxu0 %vm181_vm1, %v157_v44  ;;  %v5518_v44 = vrot.slane %v761_v15, %v5494_v26 }
  0xa1   :  { %4910 = vmatmul.mubr.msk.f32.gmra.mxu0 %vm181_vm1, %v158_v45 }
  0xa2   :  { %4912 = vmatprep.mubr.msk.f32.mxu0 %vm181_vm1, %v159_v46 }
  0xa5   :  { %4913 = vmatmul.mubr.msk.f32.gmra.mxu0 %vm181_vm1, %v160_v47 }
  0xa6   :  { %4915 = vmatprep.mubr.msk.f32.mxu0 %vm181_vm1, %v161_v48 }
  0xa9   :  { %4916 = vmatmul.mubr.msk.f32.gmra.mxu0 %vm181_vm1, %v162_v49 }
  0xaa   :  { %4918 = vmatprep.mubr.msk.f32.mxu0 %vm181_vm1, %v163_v50  ;;  %v5522_v50 = vrot.slane %v115_v3, %v5470_v11 }
  0xad   :  { %4919 = vmatmul.mubr.msk.f32.gmra.mxu0 %vm181_vm1, %v164_v51  ;;  %v5525_v51 = vrot.slane %v115_v3, %v5474_v16 }
  0xae   :  { %4921 = vmatprep.mubr.msk.f32.mxu0 %vm181_vm1, %v165_v52 }
  0xb1   :  { %4922 = vmatmul.mubr.msk.f32.gmra.mxu0 %vm181_vm1, %v166_v53 }
  0xb2   :  { %4924 = vmatprep.mubr.msk.f32.mxu0 %vm181_vm1, %v167_v54 }
  0xb5   :  { %4925 = vmatmul.mubr.msk.f32.gmra.mxu0 %vm181_vm1, %v168_v56 }
  0xb6   :  { %4927 = vmatprep.mubr.msk.f32.mxu0 %vm181_vm1, %v169_v57 }
  0xb9   :  { %4928 = vmatmul.mubr.msk.f32.gmra.mxu0 %vm181_vm1, %v170_v60 }
  0xba   :  { %4930 = vmatprep.mubr.msk.f32.mxu0 %vm181_vm1, %v171_v61 }
  0xbd   :  { %4931 = vmatmul.mubr.msk.f32.gmra.mxu0 %vm181_vm1, %v172_v63 }
 0x111   :  { %v4851_v5 = vpop.f32.mrf.mxu0 }
 0x112   :  { %v426_v6 = vadd.f32 %v4851_v5, %v5463_v4 }
 0x113   :  { %v420_v7 = vpop.f32.mrf.mxu0 }
 0x114   :  { %701 = vst.msk [vmem:[#allocation2 + $0x8] sm:$0xff] %vm699_vm2, %v426_v6  ;;  %v421_v8 = vadd.f32 %v420_v7, %v5463_v4 }
 0x115   :  { %v4854_v9 = vpop.f32.mrf.mxu0 }
 0x116   :  { %700 = vst.msk [vmem:[#allocation2] sm:$0xff] %vm699_vm2, %v421_v8  ;;  %v436_v10 = vadd.f32 %v4854_v9, %v5463_v4 }
 0x117   :  { %v430_v12 = vpop.f32.mrf.mxu0 }
 0x118   :  { %703 = vst.msk [vmem:[#allocation2 + $0x18] sm:$0xff] %vm699_vm2, %v436_v10  ;;  %v431_v13 = vadd.f32 %v430_v12, %v5463_v4 }
 0x119   :  { %v4857_v14 = vpop.f32.mrf.mxu0 }
 0x11a   :  { %702 = vst.msk [vmem:[#allocation2 + $0x10] sm:$0xff] %vm699_vm2, %v431_v13  ;;  %v446_v17 = vadd.f32 %v4857_v14, %v5463_v4 }
 0x11b   :  { %v440_v20 = vpop.f32.mrf.mxu0  ;;  %v764_v36 = vld [vmem:[#allocation2 + $0x8] sm:$0xff] }
 0x11c   :  { %705 = vst.msk [vmem:[#allocation2 + $0x28] sm:$0xff] %vm699_vm2, %v446_v17  ;;  %v441_v23 = vadd.f32 %v440_v20, %v5463_v4  ;;  %v816_v52 = vmul.f32 %v5490_v24, %v764_v36  ;;  %v5549_v20 = vld [vmem:[#allocation6 + $0x8] ss:$0 sm:$0xff] }
 0x11d   :  { %v4860_v27 = vpop.f32.mrf.mxu0  ;;  %v763_v28 = vld [vmem:[#allocation2] sm:$0xff] }
 0x11e   :  { %v911_v29 = vld [vmem:[#allocation2 + $0x1] sm:$0xff]  ;;  %704 = vst.msk [vmem:[#allocation2 + $0x20] sm:$0xff] %vm699_vm2, %v441_v23  ;;  %v456_v31 = vadd.f32 %v4860_v27, %v5463_v4  ;;  %v815_v32 = vmul.f32 %v5490_v24, %v763_v28 }
 0x11f   :  { %v963_v33 = vmul.f32 %v5479_v18, %v911_v29  ;;  %v1059_v34 = vld [vmem:[#allocation2 + $0x2] sm:$0xff]  ;;  %v450_v37 = vpop.f32.mrf.mxu0  ;;  %v766_v40 = vld [vmem:[#allocation2 + $0x18] sm:$0xff] }
 0x120   :  { %707 = vst.msk [vmem:[#allocation2 + $0x38] sm:$0xff] %vm699_vm2, %v456_v31  ;;  %v451_v41 = vadd.f32 %v450_v37, %v5463_v4  ;;  %v1111_v49 = vmul.f32 %v5497_v30, %v1059_v34  ;;  %v1216_v58 = vmul.f32 %v5504_v35, %v766_v40  ;;  %v5536_v0 = vmul.f32 %v5490_v24, %v766_v40 }
 0x121   :  { %v1011_v42 = vadd.f32 %v963_v33, %v815_v32  ;;  %v4863_v45 = vpop.f32.mrf.mxu0  ;;  %v765_v46 = vld [vmem:[#allocation2 + $0x10] sm:$0xff] }
 0x122   :  { %v913_v47 = vld [vmem:[#allocation2 + $0x11] sm:$0xff]  ;;  %706 = vst.msk [vmem:[#allocation2 + $0x30] sm:$0xff] %vm699_vm2, %v451_v41  ;;  %v466_v53 = vadd.f32 %v4863_v45, %v5463_v4  ;;  %v817_v54 = vmul.f32 %v5490_v24, %v765_v46  ;;  %v912_v56 = vld [vmem:[#allocation2 + $0x9] sm:$0xff]  ;;  %v1215_v62 = vmul.f32 %v5504_v35, %v765_v46 }
 0x123   :  { %v1061_v48 = vld [vmem:[#allocation2 + $0x12] sm:$0xff]  ;;  %v965_v55 = vmul.f32 %v5479_v18, %v913_v47  ;;  %v1060_v57 = vld [vmem:[#allocation2 + $0xa] sm:$0xff]  ;;  %v460_v59 = vpop.f32.mrf.mxu0  ;;  %v1159_v61 = vadd.f32 %v1111_v49, %v1011_v42  ;;  %v1319_v3 = vmul.f32 %v5507_v38, %v913_v47  ;;  %v964_v6 = vmul.f32 %v5479_v18, %v912_v56 }
 0x124   :  { %v1113_v60 = vmul.f32 %v5497_v30, %v1061_v48  ;;  %v768_v63 = vld [vmem:[#allocation2 + $0x28] sm:$0xff]  ;;  %709 = vst.msk [vmem:[#allocation2 + $0x48] sm:$0xff] %vm699_vm2, %v466_v53  ;;  %v461_v1 = vadd.f32 %v460_v59, %v5463_v4  ;;  %v1423_v5 = vmul.f32 %v5510_v39, %v1061_v48  ;;  %v1112_v15 = vmul.f32 %v5497_v30, %v1060_v57 }
 0x125   :  { %v4866_v7 = vpop.f32.mrf.mxu0  ;;  %v767_v8 = vld [vmem:[#allocation2 + $0x20] sm:$0xff]  ;;  %v1013_v10 = vadd.f32 %v965_v55, %v817_v54  ;;  %v1263_v13 = vadd.f32 %v1215_v62, %v1159_v61  ;;  %v5544_v14 = vmul.f32 %v5490_v24, %v768_v63  ;;  %v5554_v28 = vmul.f32 %v5515_v43, %v768_v63 }
 0x126   :  { %v915_v9 = vld [vmem:[#allocation2 + $0x21] sm:$0xff]  ;;  %708 = vst.msk [vmem:[#allocation2 + $0x40] sm:$0xff] %vm699_vm2, %v461_v1  ;;  %v476_v17 = vadd.f32 %v4866_v7, %v5463_v4  ;;  %v819_v23 = vmul.f32 %v5490_v24, %v767_v8  ;;  %v1217_v32 = vmul.f32 %v5504_v35, %v767_v8  ;;  %v914_v34 = vld [vmem:[#allocation2 + $0x19] sm:$0xff]  ;;  %v5559_v37 = vmul.f32 %v5504_v35, %v768_v63 }
 0x127   :  { %v1063_v12 = vld [vmem:[#allocation2 + $0x22] sm:$0xff]  ;;  %v967_v27 = vmul.f32 %v5479_v18, %v915_v9  ;;  %v470_v29 = vpop.f32.mrf.mxu0  ;;  %v1367_v33 = vadd.f32 %v1319_v3, %v1263_v13  ;;  %v1062_v36 = vld [vmem:[#allocation2 + $0x1a] sm:$0xff]  ;;  %v1527_v42 = vmul.f32 %v5515_v43, %v767_v8  ;;  %v1012_v45 = vadd.f32 %v964_v6, %v816_v52 }
 0x128   :  { %v1115_v31 = vmul.f32 %v5497_v30, %v1063_v12  ;;  %711 = vst.msk [vmem:[#allocation2 + $0x58] sm:$0xff] %vm699_vm2, %v476_v17  ;;  %v471_v40 = vadd.f32 %v470_v29, %v5463_v4  ;;  %v1631_v48 = vmul.f32 %v5518_v44, %v915_v9  ;;  %v1735_v49 = vmul.f32 %v5549_v20, %v1063_v12 }
 0x129   :  { %v1015_v41 = vadd.f32 %v967_v27, %v819_v23  ;;  %v4869_v46 = vpop.f32.mrf.mxu0  ;;  %v1471_v47 = vadd.f32 %v1423_v5, %v1367_v33  ;;  %v5566_v53 = vld [vmem:[#allocation2 + $0x29] sm:$0xff]  ;;  %v1161_v55 = vadd.f32 %v1113_v60, %v1013_v10  ;;  %v1160_v57 = vadd.f32 %v1112_v15, %v1012_v45  ;;  %v5576_v5 = vld [vmem:[#allocation2 + $0x31] sm:$0xff] }
 0x12a   :  { %v5568_v54 = vld [vmem:[#allocation2 + $0x2a] sm:$0xff]  ;;  %710 = vst.msk [vmem:[#allocation2 + $0x50] sm:$0xff] %vm699_vm2, %v471_v40  ;;  %v486_v56 = vadd.f32 %v4869_v46, %v5463_v4  ;;  %v1320_v59 = vmul.f32 %v5507_v38, %v914_v34  ;;  %v1424_v52 = vmul.f32 %v5510_v39, %v1062_v36  ;;  %v1632_v3 = vmul.f32 %v5518_v44, %v5566_v53  ;;  %v5582_v10 = vld [vmem:[#allocation2 + $0x32] sm:$0xff] }
 0x12b   :  { %v769_v61 = vld [vmem:[#allocation2 + $0x30] sm:$0xff]  ;;  %v480_v62 = vpop.f32.mrf.mxu0  ;;  %v1163_v63 = vadd.f32 %v1115_v31, %v1015_v41  ;;  %v1575_v1 = vadd.f32 %v1527_v42, %v1471_v47  ;;  %v1265_v6 = vadd.f32 %v1217_v32, %v1161_v55  ;;  %v1264_v7 = vadd.f32 %v1216_v58, %v1160_v57  ;;  %v5585_v15 = vld [vmem:[#allocation2 + $0x38] sm:$0xff] }
 0x12c   :  { %713 = vst.msk [vmem:[#allocation2 + $0x68] sm:$0xff] %vm699_vm2, %v486_v56  ;;  %v481_v60 = vadd.f32 %v480_v62, %v5463_v4  ;;  %v1736_v8 = vmul.f32 %v5549_v20, %v5568_v54  ;;  %v1321_v13 = vmul.f32 %v5507_v38, %v915_v9  ;;  %v5588_v27 = vmul.f32 %v5490_v24, %v769_v61 }
 0x12d   :  { %v4872_v17 = vpop.f32.mrf.mxu0  ;;  %v1679_v23 = vadd.f32 %v1631_v48, %v1575_v1  ;;  %v1425_v29 = vmul.f32 %v5510_v39, %v1063_v12  ;;  %v1529_v31 = vmul.f32 %v5515_v43, %v769_v61  ;;  %v1368_v32 = vadd.f32 %v1320_v59, %v1264_v7  ;;  %v5605_v55 = vld [vmem:[#allocation2 + $0x39] sm:$0xff] }
 0x12e   :  { %712 = vst.msk [vmem:[#allocation2 + $0x60] sm:$0xff] %vm699_vm2, %v481_v60  ;;  %v496_v58 = vadd.f32 %v4872_v17, %v5463_v4  ;;  %v1369_v33 = vadd.f32 %v1321_v13, %v1265_v6  ;;  %v1633_v9 = vmul.f32 %v5518_v44, %v5576_v5  ;;  %v1737_v42 = vmul.f32 %v5549_v20, %v5582_v10  ;;  %v5610_v62 = vld [vmem:[#allocation2 + $0x3a] sm:$0xff] }
 0x12f   :  { %v490_v40 = vpop.f32.mrf.mxu0  ;;  %v1783_v41 = vadd.f32 %v1735_v49, %v1679_v23  ;;  %v5600_v45 = vmul.f32 %v5490_v24, %v5585_v15  ;;  %v966_v12 = vmul.f32 %v5479_v18, %v914_v34  ;;  %v1472_v47 = vadd.f32 %v1424_v52, %v1368_v32  ;;  %v5624_v23 = vld [vmem:[#allocation2 + $0x40] sm:$0xff] }
 0x130   :  { %715 = vst.msk [vmem:[#allocation2 + $0x78] sm:$0xff] %vm699_vm2, %v496_v58  ;;  %v491_v46 = vadd.f32 %v490_v40, %v5463_v4  ;;  %v1473_v48 = vadd.f32 %v1425_v29, %v1369_v33  ;;  %v1114_v56 = vmul.f32 %v5497_v30, %v1062_v36  ;;  %v1322_v34 = vmul.f32 %v5507_v38, %v5566_v53 }
 0x131   :  { %v4875_v49 = vpop.f32.mrf.mxu0  ;;  %v1835_v57 = vmul.f32 %v5522_v50, %v1783_v41  ;;  %v1014_v59 = vadd.f32 %v966_v12, %v5536_v0  ;;  %v1426_v1 = vmul.f32 %v5510_v39, %v5568_v54  ;;  %v1576_v6 = vadd.f32 %v5554_v28, %v1472_v47  ;;  %v5632_v12 = vld [vmem:[#allocation2 + $0x41] sm:$0xff] }
 0x132   :  { %714 = vst.msk [vmem:[#allocation2 + $0x70] sm:$0xff] %vm699_vm2, %v491_v46  ;;  %v506_v52 = vadd.f32 %v4875_v49, %v5463_v4  ;;  %v1577_v36 = vadd.f32 %v1529_v31, %v1473_v48  ;;  %v1530_v60 = vmul.f32 %v5515_v43, %v5585_v15  ;;  %v1634_v17 = vmul.f32 %v5518_v44, %v5605_v55 }
 0x133   :  { %v500_v7 = vpop.f32.mrf.mxu0  ;;  %v1887_v0 = vadd.f32 %v5525_v51, %v1835_v57  ;;  %v1162_v13 = vadd.f32 %v1114_v56, %v1014_v59  ;;  %v1219_v29 = vmul.f32 %v5504_v35, %v769_v61  ;;  %v1680_v28 = vadd.f32 %v1632_v3, %v1576_v6  ;;  %v5642_v56 = vld [vmem:[#allocation2 + $0x42] sm:$0xff] }
 0x134   :  { %717 = vst.msk [vmem:[#allocation2 + $0x88] sm:$0xff] %vm699_vm2, %v506_v52  ;;  %v501_v58 = vadd.f32 %v500_v7, %v5463_v4  ;;  %v1681_v31 = vadd.f32 %v1633_v9, %v1577_v36  ;;  %v1738_v32 = vmul.f32 %v5549_v20, %v5610_v62  ;;  %v1323_v47 = vmul.f32 %v5507_v38, %v5576_v5  ;;  %v5649_v52 = vld [vmem:[#allocation2 + $0x48] sm:$0xff] }
 0x135   :  { %v4878_v33 = vpop.f32.mrf.mxu0  ;;  %v1935_v40 = vmax.f32 %v1887_v0, 0.0  ;;  %v1266_v41 = vadd.f32 %v5559_v37, %v1162_v13  ;;  %v1267_v46 = vadd.f32 %v1219_v29, %v1163_v63  ;;  %v1784_v48 = vadd.f32 %v1736_v8, %v1680_v28 }
 0x136   :  { %716 = vst.msk [vmem:[#allocation2 + $0x80] sm:$0xff] %vm699_vm2, %v501_v58  ;;  %v516_v61 = vadd.f32 %v4878_v33, %v5463_v4  ;;  %v1785_v3 = vadd.f32 %v1737_v42, %v1681_v31  ;;  %v5640_v9 = vmul.f32 %v5490_v24, %v5624_v23  ;;  %v1427_v57 = vmul.f32 %v5510_v39, %v5582_v10 }
 0x137   :  { %4941 = vmatprep.mubr.msk.f32.mxu1 %vm699_vm2, %v1935_v40  ;;  %v510_v37 = vpop.f32.mrf.mxu0  ;;  %v1370_v49 = vadd.f32 %v1322_v34, %v1266_v41  ;;  %v1371_v63 = vadd.f32 %v1323_v47, %v1267_v46  ;;  %v1531_v59 = vmul.f32 %v5515_v43, %v5624_v23  ;;  %v1836_v42 = vmul.f32 %v5522_v50, %v1784_v48  ;;  %v5669_v46 = vld [vmem:[#allocation2 + $0x49] sm:$0xff] }
 0x138   :  { %719 = vst.msk [vmem:[#allocation2 + $0x98] sm:$0xff] %vm699_vm2, %v516_v61  ;;  %v511_v8 = vadd.f32 %v510_v37, %v5463_v4  ;;  %v1837_v6 = vmul.f32 %v5522_v50, %v1785_v3  ;;  %v1635_v34 = vmul.f32 %v5518_v44, %v5632_v12  ;;  %v1739_v13 = vmul.f32 %v5549_v20, %v5642_v56 }
 0x139   :  { %v4881_v36 = vpop.f32.mrf.mxu0  ;;  %v1474_v7 = vadd.f32 %v1426_v1, %v1370_v49  ;;  %v1475_v0 = vadd.f32 %v1427_v57, %v1371_v63  ;;  %v968_v29 = vmul.f32 %v5479_v18, %v5566_v53  ;;  %v1888_v28 = vadd.f32 %v5525_v51, %v1836_v42  ;;  %v5678_v57 = vld [vmem:[#allocation2 + $0x4a] sm:$0xff] }
 0x13a   :  { %718 = vst.msk [vmem:[#allocation2 + $0x90] sm:$0xff] %vm699_vm2, %v511_v8  ;;  %v526_v58 = vadd.f32 %v4881_v36, %v5463_v4  ;;  %v1889_v31 = vadd.f32 %v5525_v51, %v1837_v6  ;;  %v5667_v33 = vmul.f32 %v5490_v24, %v5649_v52  ;;  %v1116_v53 = vmul.f32 %v5497_v30, %v5568_v54 }
 0x13b   :  { %v520_v1 = vpop.f32.mrf.mxu0  ;;  %v1578_v40 = vadd.f32 %v1530_v60, %v1474_v7  ;;  %v1579_v41 = vadd.f32 %v1531_v59, %v1475_v0  ;;  %v1016_v47 = vadd.f32 %v968_v29, %v5544_v14  ;;  %v1936_v61 = vmax.f32 %v1888_v28, 0.0  ;;  %v5692_v7 = vld [vmem:[#allocation2 + $0x50] sm:$0xff] }
 0x13c   :  { %721 = vst.msk [vmem:[#allocation2 + $0xa8] sm:$0xff] %vm699_vm2, %v526_v58  ;;  %v521_v48 = vadd.f32 %v520_v1, %v5463_v4  ;;  %v1937_v3 = vmax.f32 %v1889_v31, 0.0  ;;  %v1220_v37 = vmul.f32 %v5504_v35, %v5585_v15  ;;  %v1324_v14 = vmul.f32 %v5507_v38, %v5605_v55 }
 0x13d   :  { %v4884_v49 = vpop.f32.mrf.mxu0  ;;  %v1682_v63 = vadd.f32 %v1634_v17, %v1578_v40  ;;  %v1683_v60 = vadd.f32 %v1635_v34, %v1579_v41  ;;  %v1164_v59 = vadd.f32 %v1116_v53, %v1016_v47  ;;  %4942 = vmatmul.mubr.msk.f32.vlgmr.msra.gmra.mxu1 %vm699_vm2, %v1936_v61  ;;  %v1428_v8 = vmul.f32 %v5510_v39, %v5610_v62 }
 0x13e   :  { %720 = vst.msk [vmem:[#allocation2 + $0xa0] sm:$0xff] %vm699_vm2, %v521_v48  ;;  %v536_v54 = vadd.f32 %v4884_v49, %v5463_v4  ;;  %v1532_v15 = vmul.f32 %v5515_v43, %v5649_v52  ;;  %v1636_v17 = vmul.f32 %v5518_v44, %v5669_v46  ;;  %4944 = vmatprep.mubr.msk.f32.mxu1 %vm699_vm2, %v1937_v3 }
 0x13f   :  { %v1786_v42 = vadd.f32 %v1738_v32, %v1682_v63  ;;  %v530_v6 = vpop.f32.mrf.mxu0  ;;  %v1787_v34 = vadd.f32 %v1739_v13, %v1683_v60  ;;  %v1268_v36 = vadd.f32 %v1220_v37, %v1164_v59  ;;  %v969_v0 = vmul.f32 %v5479_v18, %v5576_v5  ;;  %v5706_v5 = vld [vmem:[#allocation2 + $0x51] sm:$0xff] }
 0x140   :  { %723 = vst.msk [vmem:[#allocation2 + $0xb8] sm:$0xff] %vm699_vm2, %v536_v54  ;;  %v531_v29 = vadd.f32 %v530_v6, %v5463_v4  ;;  %v1740_v58 = vmul.f32 %v5549_v20, %v5678_v57  ;;  %v1117_v28 = vmul.f32 %v5497_v30, %v5582_v10  ;;  %v1221_v32 = vmul.f32 %v5504_v35, %v5624_v23  ;;  %v5721_v37 = vld [vmem:[#allocation2 + $0x52] sm:$0xff] }
 0x141   :  { %v1838_v13 = vmul.f32 %v5522_v50, %v1786_v42  ;;  %v1839_v31 = vmul.f32 %v5522_v50, %v1787_v34  ;;  %v4887_v1 = vpop.f32.mrf.mxu0  ;;  %v1372_v40 = vadd.f32 %v1324_v14, %v1268_v36  ;;  %v1017_v41 = vadd.f32 %v969_v0, %v5588_v27  ;;  %v5729_v14 = vld [vmem:[#allocation2 + $0x58] sm:$0xff] }
 0x142   :  { %722 = vst.msk [vmem:[#allocation2 + $0xb0] sm:$0xff] %vm699_vm2, %v531_v29  ;;  %v546_v47 = vadd.f32 %v4887_v1, %v5463_v4  ;;  %v5713_v10 = vmul.f32 %v5490_v24, %v5692_v7  ;;  %v1325_v23 = vmul.f32 %v5507_v38, %v5632_v12  ;;  %v1429_v53 = vmul.f32 %v5510_v39, %v5642_v56  ;;  %v5747_v1 = vld [vmem:[#allocation2 + $0x5a] sm:$0xff] }
 0x143   :  { %v1890_v61 = vadd.f32 %v5525_v51, %v1838_v13  ;;  %v1891_v48 = vadd.f32 %v5525_v51, %v1839_v31  ;;  %v1476_v3 = vadd.f32 %v1428_v8, %v1372_v40  ;;  %v540_v27 = vpop.f32.mrf.mxu0  ;;  %v1165_v49 = vadd.f32 %v1117_v28, %v1017_v41  ;;  %v5737_v28 = vld [vmem:[#allocation2 + $0x59] sm:$0xff] }
 0x144   :  { %725 = vst.msk [vmem:[#allocation2 + $0xc8] sm:$0xff] %vm699_vm2, %v546_v47  ;;  %v541_v63 = vadd.f32 %v540_v27, %v5463_v4  ;;  %v1533_v60 = vmul.f32 %v5515_v43, %v5692_v7  ;;  %v1637_v59 = vmul.f32 %v5518_v44, %v5706_v5  ;;  %v970_v54 = vmul.f32 %v5479_v18, %v5605_v55  ;;  %v5751_v47 = vld [vmem:[#allocation2 + $0x60] sm:$0xff] }
 0x145   :  { %v1938_v8 = vmax.f32 %v1890_v61, 0.0  ;;  %v1939_v42 = vmax.f32 %v1891_v48, 0.0  ;;  %v1580_v6 = vadd.f32 %v1532_v15, %v1476_v3  ;;  %v1269_v34 = vadd.f32 %v1221_v32, %v1165_v49  ;;  %v4890_v36 = vpop.f32.mrf.mxu0 }
 0x146   :  { %724 = vst.msk [vmem:[#allocation2 + $0xc0] sm:$0xff] %vm699_vm2, %v541_v63  ;;  %v1741_v0 = vmul.f32 %v5549_v20, %v5721_v37  ;;  %v556_v29 = vadd.f32 %v4890_v36, %v5463_v4  ;;  %v1018_v13 = vadd.f32 %v970_v54, %v5600_v45  ;;  %v1118_v31 = vmul.f32 %v5497_v30, %v5610_v62 }
 0x147   :  { %4945 = vmatmul.mubr.msk.f32.gmra.mxu1 %vm699_vm2, %v1938_v8  ;;  %v1684_v55 = vadd.f32 %v1636_v17, %v1580_v6  ;;  %v1373_v15 = vadd.f32 %v1325_v23, %v1269_v34  ;;  %v5745_v32 = vmul.f32 %v5490_v24, %v5729_v14  ;;  %v1222_v40 = vmul.f32 %v5504_v35, %v5649_v52  ;;  %v550_v41 = vpop.f32.mrf.mxu0 }
 0x148   :  { %4947 = vmatprep.mubr.msk.f32.mxu1 %vm699_vm2, %v1939_v42  ;;  %727 = vst.msk [vmem:[#allocation2 + $0xd8] sm:$0xff] %vm699_vm2, %v556_v29  ;;  %v1166_v45 = vadd.f32 %v1118_v31, %v1018_v13  ;;  %v1326_v62 = vmul.f32 %v5507_v38, %v5669_v46  ;;  %v1430_v17 = vmul.f32 %v5510_v39, %v5678_v57  ;;  %v5774_v42 = vld [vmem:[#allocation2 + $0x61] sm:$0xff] }
 0x149   :  { %v1534_v23 = vmul.f32 %v5515_v43, %v5729_v14  ;;  %v1788_v61 = vadd.f32 %v1740_v58, %v1684_v55  ;;  %v1477_v48 = vadd.f32 %v1429_v53, %v1373_v15  ;;  %v1638_v52 = vmul.f32 %v5518_v44, %v5737_v28  ;;  %v4893_v8 = vpop.f32.mrf.mxu0  ;;  %v5781_v13 = vld [vmem:[#allocation2 + $0x62] sm:$0xff] }
 0x14a   :  { %v551_v3 = vadd.f32 %v550_v41, %v5463_v4  ;;  %v1270_v27 = vadd.f32 %v1222_v40, %v1166_v45  ;;  %v1742_v49 = vmul.f32 %v5549_v20, %v5747_v1  ;;  %v5768_v63 = vmul.f32 %v5490_v24, %v5751_v47  ;;  %v5787_v31 = vld [vmem:[#allocation2 + $0x68] sm:$0xff] }
 0x14b   :  { %v971_v54 = vmul.f32 %v5479_v18, %v5632_v12  ;;  %v1840_v58 = vmul.f32 %v5522_v50, %v1788_v61  ;;  %v1581_v53 = vadd.f32 %v1533_v60, %v1477_v48  ;;  %v1119_v6 = vmul.f32 %v5497_v30, %v5642_v56 }
 0x14c   :  { %726 = vst.msk [vmem:[#allocation2 + $0xd0] sm:$0xff] %vm699_vm2, %v551_v3  ;;  %v1223_v34 = vmul.f32 %v5504_v35, %v5692_v7  ;;  %v1374_v36 = vadd.f32 %v1326_v62, %v1270_v27  ;;  %v1327_v12 = vmul.f32 %v5507_v38, %v5706_v5  ;;  %v1431_v60 = vmul.f32 %v5510_v39, %v5721_v37  ;;  %v5804_v27 = vld [vmem:[#allocation2 + $0x69] sm:$0xff] }
 0x14d   :  { %v1019_v29 = vadd.f32 %v971_v54, %v5640_v9  ;;  %v1892_v55 = vadd.f32 %v5525_v51, %v1840_v58  ;;  %v1685_v15 = vadd.f32 %v1637_v59, %v1581_v53  ;;  %v1535_v56 = vmul.f32 %v5515_v43, %v5751_v47  ;;  %v5811_v58 = vld [vmem:[#allocation2 + $0x6a] sm:$0xff] }
 0x14e   :  { %v566_v7 = vadd.f32 %v4893_v8, %v5463_v4  ;;  %v1478_v40 = vadd.f32 %v1430_v17, %v1374_v36  ;;  %v1639_v41 = vmul.f32 %v5518_v44, %v5774_v42  ;;  %v972_v45 = vmul.f32 %v5479_v18, %v5669_v46  ;;  %v560_v8 = vpop.f32.mrf.mxu0 }
 0x14f   :  { %v1167_v9 = vadd.f32 %v1119_v6, %v1019_v29  ;;  %v1940_v62 = vmax.f32 %v1892_v55, 0.0  ;;  %v1789_v61 = vadd.f32 %v1741_v0, %v1685_v15  ;;  %v1743_v48 = vmul.f32 %v5549_v20, %v5781_v13 }
 0x150   :  { %729 = vst.msk [vmem:[#allocation2 + $0xe8] sm:$0xff] %vm699_vm2, %v566_v7  ;;  %v5802_v59 = vmul.f32 %v5490_v24, %v5787_v31  ;;  %v1582_v3 = vadd.f32 %v1534_v23, %v1478_v40  ;;  %v1020_v54 = vadd.f32 %v972_v45, %v5667_v33  ;;  %v1120_v46 = vmul.f32 %v5497_v30, %v5678_v57 }
 0x151   :  { %v1271_v17 = vadd.f32 %v1223_v34, %v1167_v9  ;;  %4948 = vmatmul.mubr.msk.f32.gmra.mxu1 %vm699_vm2, %v1940_v62  ;;  %v1841_v0 = vmul.f32 %v5522_v50, %v1789_v61  ;;  %v1224_v53 = vmul.f32 %v5504_v35, %v5729_v14  ;;  %v1328_v23 = vmul.f32 %v5507_v38, %v5737_v28  ;;  %v5825_v14 = vld [vmem:[#allocation2 + $0x70] sm:$0xff] }
 0x152   :  { %v1432_v6 = vmul.f32 %v5510_v39, %v5747_v1  ;;  %v1686_v33 = vadd.f32 %v1638_v52, %v1582_v3  ;;  %v1168_v36 = vadd.f32 %v1120_v46, %v1020_v54  ;;  %v1536_v57 = vmul.f32 %v5515_v43, %v5787_v31  ;;  %v5842_v46 = vld [vmem:[#allocation2 + $0x71] sm:$0xff] }
 0x153   :  { %v1375_v34 = vadd.f32 %v1327_v12, %v1271_v17  ;;  %v1893_v29 = vadd.f32 %v5525_v51, %v1841_v0  ;;  %v1640_v55 = vmul.f32 %v5518_v44, %v5804_v27  ;;  %v561_v15 = vadd.f32 %v560_v8, %v5463_v4  ;;  %v4896_v17 = vpop.f32.mrf.mxu0  ;;  %v5844_v8 = vld [vmem:[#allocation2 + $0x72] sm:$0xff] }
 0x154   :  { %v973_v7 = vmul.f32 %v5479_v18, %v5706_v5  ;;  %v1790_v40 = vadd.f32 %v1742_v49, %v1686_v33  ;;  %v1272_v52 = vadd.f32 %v1224_v53, %v1168_v36  ;;  %v1744_v12 = vmul.f32 %v5549_v20, %v5811_v58  ;;  %v5853_v0 = vld [vmem:[#allocation2 + $0x78] sm:$0xff] }
 0x155   :  { %v1479_v9 = vadd.f32 %v1431_v60, %v1375_v34  ;;  %v1941_v45 = vmax.f32 %v1893_v29, 0.0  ;;  %728 = vst.msk [vmem:[#allocation2 + $0xe0] sm:$0xff] %vm699_vm2, %v561_v15  ;;  %v1121_v61 = vmul.f32 %v5497_v30, %v5721_v37  ;;  %v1225_v3 = vmul.f32 %v5504_v35, %v5751_v47 }
 0x156   :  { %v1021_v62 = vadd.f32 %v973_v7, %v5713_v10  ;;  %v1842_v5 = vmul.f32 %v5522_v50, %v1790_v40  ;;  %v1376_v60 = vadd.f32 %v1328_v23, %v1272_v52  ;;  %v5840_v54 = vmul.f32 %v5490_v24, %v5825_v14 }
 0x157   :  { %v1583_v49 = vadd.f32 %v1535_v56, %v1479_v9  ;;  %4950 = vmatprep.mubr.msk.f32.mxu1 %vm699_vm2, %v1941_v45  ;;  %v1329_v37 = vmul.f32 %v5507_v38, %v5774_v42  ;;  %v1433_v47 = vmul.f32 %v5510_v39, %v5781_v13  ;;  %v1537_v56 = vmul.f32 %v5515_v43, %v5825_v14 }
 0x158   :  { %v1169_v10 = vadd.f32 %v1121_v61, %v1021_v62  ;;  %v1894_v53 = vadd.f32 %v5525_v51, %v1842_v5  ;;  %v1480_v33 = vadd.f32 %v1432_v6, %v1376_v60  ;;  %v576_v34 = vadd.f32 %v4896_v17, %v5463_v4  ;;  %v570_v6 = vpop.f32.mrf.mxu0  ;;  %v5868_v62 = vld [vmem:[#allocation2 + $0x79] sm:$0xff] }
 0x159   :  { %v1687_v23 = vadd.f32 %v1639_v41, %v1583_v49  ;;  %v1641_v29 = vmul.f32 %v5518_v44, %v5842_v46  ;;  %v1745_v15 = vmul.f32 %v5549_v20, %v5844_v8  ;;  %v974_v7 = vmul.f32 %v5479_v18, %v5737_v28  ;;  %v5877_v17 = vld [vmem:[#allocation2 + $0x7a] sm:$0xff] }
 0x15a   :  { %v1273_v36 = vadd.f32 %v1225_v3, %v1169_v10  ;;  %v1942_v40 = vmax.f32 %v1894_v53, 0.0  ;;  %v1584_v52 = vadd.f32 %v1536_v57, %v1480_v33  ;;  %731 = vst.msk [vmem:[#allocation2 + $0xf8] sm:$0xff] %vm699_vm2, %v576_v34  ;;  %v5866_v41 = vmul.f32 %v5490_v24, %v5853_v0  ;;  %v5889_v53 = vld [vmem:[#allocation2 + $0x80] sm:$0xff] }
 0x15b   :  { %v1791_v9 = vadd.f32 %v1743_v48, %v1687_v23  ;;  %v1022_v61 = vadd.f32 %v974_v7, %v5745_v32  ;;  %v1122_v3 = vmul.f32 %v5497_v30, %v5747_v1  ;;  %v1226_v28 = vmul.f32 %v5504_v35, %v5787_v31  ;;  %v4899_v7 = vpop.f32.mrf.mxu0 }
 0x15c   :  { %v1377_v45 = vadd.f32 %v1329_v37, %v1273_v36  ;;  %4951 = vmatmul.mubr.msk.f32.gmra.mxu1 %vm699_vm2, %v1942_v40  ;;  %v1688_v57 = vadd.f32 %v1640_v55, %v1584_v52  ;;  %v1330_v5 = vmul.f32 %v5507_v38, %v5804_v27  ;;  %v1434_v49 = vmul.f32 %v5510_v39, %v5811_v58 }
 0x15d   :  { %v1843_v48 = vmul.f32 %v5522_v50, %v1791_v9  ;;  %v1170_v60 = vadd.f32 %v1122_v3, %v1022_v61  ;;  %v1538_v1 = vmul.f32 %v5515_v43, %v5853_v0  ;;  %v571_v31 = vadd.f32 %v570_v6, %v5463_v4  ;;  %v5899_v9 = vld [vmem:[#allocation2 + $0x81] sm:$0xff] }
 0x15e   :  { %v1481_v32 = vadd.f32 %v1433_v47, %v1377_v45  ;;  %v1792_v37 = vadd.f32 %v1744_v12, %v1688_v57  ;;  %v1642_v55 = vmul.f32 %v5518_v44, %v5868_v62  ;;  %v975_v23 = vmul.f32 %v5479_v18, %v5774_v42  ;;  %v5908_v61 = vld [vmem:[#allocation2 + $0x82] sm:$0xff] }
 0x15f   :  { %v1895_v10 = vadd.f32 %v5525_v51, %v1843_v48  ;;  %v1274_v34 = vadd.f32 %v1226_v28, %v1170_v60  ;;  %v1746_v47 = vmul.f32 %v5549_v20, %v5877_v17  ;;  %730 = vst.msk [vmem:[#allocation2 + $0xf0] sm:$0xff] %vm699_vm2, %v571_v31  ;;  %v1123_v36 = vmul.f32 %v5497_v30, %v5781_v13  ;;  %v580_v60 = vpop.f32.mrf.mxu0 }
 0x160   :  { %v1585_v33 = vadd.f32 %v1537_v56, %v1481_v32  ;;  %v1844_v40 = vmul.f32 %v5522_v50, %v1792_v37  ;;  %v1023_v52 = vadd.f32 %v975_v23, %v5768_v63  ;;  %v1227_v42 = vmul.f32 %v5504_v35, %v5825_v14 }
 0x161   :  { %v1943_v12 = vmax.f32 %v1895_v10, 0.0  ;;  %v1378_v6 = vadd.f32 %v1330_v5, %v1274_v34  ;;  %v5906_v45 = vmul.f32 %v5490_v24, %v5889_v53  ;;  %v1331_v13 = vmul.f32 %v5507_v38, %v5842_v46 }
 0x162   :  { %v1689_v56 = vadd.f32 %v1641_v29, %v1585_v33  ;;  %v1896_v3 = vadd.f32 %v5525_v51, %v1844_v40  ;;  %v1171_v28 = vadd.f32 %v1123_v36, %v1023_v52  ;;  %v1435_v63 = vmul.f32 %v5510_v39, %v5844_v8  ;;  %v5918_v29 = vld [vmem:[#allocation2 + $0x88] sm:$0xff] }
 0x163   :  { %4953 = vmatprep.mubr.msk.f32.mxu1 %vm699_vm2, %v1943_v12  ;;  %v1539_v14 = vmul.f32 %v5515_v43, %v5889_v53  ;;  %v1482_v57 = vadd.f32 %v1434_v49, %v1378_v6  ;;  %v1643_v5 = vmul.f32 %v5518_v44, %v5899_v9  ;;  %v586_v32 = vadd.f32 %v4899_v7, %v5463_v4  ;;  %v5933_v49 = vld [vmem:[#allocation2 + $0x89] sm:$0xff] }
 0x164   :  { %v1793_v48 = vadd.f32 %v1745_v15, %v1689_v56  ;;  %v1944_v31 = vmax.f32 %v1896_v3, 0.0  ;;  %v1275_v10 = vadd.f32 %v1227_v42, %v1171_v28  ;;  %v1747_v37 = vmul.f32 %v5549_v20, %v5908_v61  ;;  %v5950_v6 = vld [vmem:[#allocation2 + $0x90] sm:$0xff] }
 0x165   :  { %v976_v23 = vmul.f32 %v5479_v18, %v5804_v27  ;;  %v1586_v34 = vadd.f32 %v1538_v1, %v1482_v57  ;;  %733 = vst.msk [vmem:[#allocation2 + $0x108] sm:$0xff] %vm699_vm2, %v586_v32  ;;  %v5931_v15 = vmul.f32 %v5490_v24, %v5918_v29  ;;  %v1124_v36 = vmul.f32 %v5497_v30, %v5811_v58  ;;  %v5939_v27 = vld [vmem:[#allocation2 + $0x8a] sm:$0xff] }
 0x166   :  { %v1845_v33 = vmul.f32 %v5522_v50, %v1793_v48  ;;  %4954 = vmatmul.mubr.msk.f32.gmra.mxu1 %vm699_vm2, %v1944_v31  ;;  %v1379_v7 = vadd.f32 %v1331_v13, %v1275_v10  ;;  %v1228_v1 = vmul.f32 %v5504_v35, %v5853_v0  ;;  %v1332_v40 = vmul.f32 %v5507_v38, %v5868_v62 }
 0x167   :  { %v1024_v12 = vadd.f32 %v976_v23, %v5802_v59  ;;  %v1690_v42 = vadd.f32 %v1642_v55, %v1586_v34  ;;  %v1436_v56 = vmul.f32 %v5510_v39, %v5877_v17  ;;  %v1540_v58 = vmul.f32 %v5515_v43, %v5918_v29  ;;  %v4902_v59 = vpop.f32.mrf.mxu0  ;;  %v5964_v23 = vld [vmem:[#allocation2 + $0x91] sm:$0xff] }
 0x168   :  { %v1897_v52 = vadd.f32 %v5525_v51, %v1845_v33  ;;  %v1483_v13 = vadd.f32 %v1435_v63, %v1379_v7  ;;  %v1644_v0 = vmul.f32 %v5518_v44, %v5933_v49  ;;  %v581_v28 = vadd.f32 %v580_v60, %v5463_v4 }
 0x169   :  { %v1172_v3 = vadd.f32 %v1124_v36, %v1024_v12  ;;  %v1794_v57 = vadd.f32 %v1746_v47, %v1690_v42  ;;  %v1748_v55 = vmul.f32 %v5549_v20, %v5939_v27  ;;  %v977_v32 = vmul.f32 %v5479_v18, %v5842_v46  ;;  %v5971_v46 = vld [vmem:[#allocation2 + $0x92] sm:$0xff]  ;;  %v590_v36 = vpop.f32.mrf.mxu0 }
 0x16a   :  { %v1945_v48 = vmax.f32 %v1897_v52, 0.0  ;;  %v1587_v31 = vadd.f32 %v1539_v14, %v1483_v13  ;;  %732 = vst.msk [vmem:[#allocation2 + $0x100] sm:$0xff] %vm699_vm2, %v581_v28  ;;  %v5962_v63 = vmul.f32 %v5490_v24, %v5950_v6  ;;  %v1125_v60 = vmul.f32 %v5497_v30, %v5844_v8  ;;  %v5981_v52 = vld [vmem:[#allocation2 + $0x98] sm:$0xff] }
 0x16b   :  { %v1276_v10 = vadd.f32 %v1228_v1, %v1172_v3  ;;  %v1846_v47 = vmul.f32 %v5522_v50, %v1794_v57  ;;  %v1025_v33 = vadd.f32 %v977_v32, %v5840_v54  ;;  %v1229_v14 = vmul.f32 %v5504_v35, %v5889_v53 }
 0x16c   :  { %4956 = vmatprep.mubr.msk.f32.mxu1 %vm699_vm2, %v1945_v48  ;;  %v1333_v34 = vmul.f32 %v5507_v38, %v5899_v9  ;;  %v1691_v7 = vadd.f32 %v1643_v5, %v1587_v31  ;;  %v1437_v8 = vmul.f32 %v5510_v39, %v5908_v61  ;;  %v1541_v1 = vmul.f32 %v5515_v43, %v5950_v6 }
 0x16d   :  { %v1380_v12 = vadd.f32 %v1332_v40, %v1276_v10  ;;  %v1898_v54 = vadd.f32 %v5525_v51, %v1846_v47  ;;  %v1173_v42 = vadd.f32 %v1125_v60, %v1025_v33  ;;  %v1645_v53 = vmul.f32 %v5518_v44, %v5964_v23  ;;  %v5999_v10 = vld [vmem:[#allocation2 + $0x99] sm:$0xff] }
 0x16e   :  { %v596_v13 = vadd.f32 %v4902_v59, %v5463_v4  ;;  %v1795_v3 = vadd.f32 %v1747_v37, %v1691_v7  ;;  %v1749_v5 = vmul.f32 %v5549_v20, %v5971_v46  ;;  %v978_v40 = vmul.f32 %v5479_v18, %v5868_v62  ;;  %v4905_v59 = vpop.f32.mrf.mxu0  ;;  %v6002_v62 = vld [vmem:[#allocation2 + $0x9a] sm:$0xff] }
 0x16f   :  { %v1484_v28 = vadd.f32 %v1436_v56, %v1380_v12  ;;  %v1946_v48 = vmax.f32 %v1898_v54, 0.0  ;;  %v1277_v57 = vadd.f32 %v1229_v14, %v1173_v42  ;;  %v5994_v32 = vmul.f32 %v5490_v24, %v5981_v52  ;;  %v6013_v7 = vld [vmem:[#allocation2 + $0xa0] sm:$0xff] }
 0x170   :  { %735 = vst.msk [vmem:[#allocation2 + $0x118] sm:$0xff] %vm699_vm2, %v596_v13  ;;  %v1126_v31 = vmul.f32 %v5497_v30, %v5877_v17  ;;  %v1847_v37 = vmul.f32 %v5522_v50, %v1795_v3  ;;  %v1026_v60 = vadd.f32 %v978_v40, %v5866_v41  ;;  %v1230_v47 = vmul.f32 %v5504_v35, %v5918_v29 }
 0x171   :  { %v1588_v56 = vadd.f32 %v1540_v58, %v1484_v28  ;;  %4957 = vmatmul.mubr.msk.f32.gmra.mxu1 %vm699_vm2, %v1946_v48  ;;  %v1381_v33 = vadd.f32 %v1333_v34, %v1277_v57  ;;  %v1334_v14 = vmul.f32 %v5507_v38, %v5933_v49  ;;  %v1438_v17 = vmul.f32 %v5510_v39, %v5939_v27  ;;  %v600_v28 = vpop.f32.mrf.mxu0 }
 0x172   :  { %v1542_v58 = vmul.f32 %v5515_v43, %v5981_v52  ;;  %v1899_v41 = vadd.f32 %v5525_v51, %v1847_v37  ;;  %v1174_v54 = vadd.f32 %v1126_v31, %v1026_v60  ;;  %v591_v29 = vadd.f32 %v590_v36, %v5463_v4  ;;  %v6037_v60 = vld [vmem:[#allocation2 + $0xa2] sm:$0xff] }
 0x173   :  { %v1692_v12 = vadd.f32 %v1644_v0, %v1588_v56  ;;  %v1485_v42 = vadd.f32 %v1437_v8, %v1381_v33  ;;  %v1646_v34 = vmul.f32 %v5518_v44, %v5999_v10  ;;  %v1750_v13 = vmul.f32 %v5549_v20, %v6002_v62  ;;  %v6028_v8 = vld [vmem:[#allocation2 + $0xa1] sm:$0xff] }
 0x174   :  { %v979_v3 = vmul.f32 %v5479_v18, %v5899_v9  ;;  %v1947_v40 = vmax.f32 %v1899_v41, 0.0  ;;  %v1278_v57 = vadd.f32 %v1230_v47, %v1174_v54  ;;  %734 = vst.msk [vmem:[#allocation2 + $0x110] sm:$0xff] %vm699_vm2, %v591_v29  ;;  %v6026_v0 = vmul.f32 %v5490_v24, %v6013_v7 }
 0x175   :  { %v1796_v48 = vadd.f32 %v1748_v55, %v1692_v12  ;;  %v1589_v36 = vadd.f32 %v1541_v1, %v1485_v42  ;;  %v1127_v37 = vmul.f32 %v5497_v30, %v5908_v61  ;;  %v1231_v9 = vmul.f32 %v5504_v35, %v5950_v6  ;;  %v4908_v12 = vpop.f32.mrf.mxu0 }
 0x176   :  { %v1027_v31 = vadd.f32 %v979_v3, %v5906_v45  ;;  %4959 = vmatprep.mubr.msk.f32.mxu1 %vm699_vm2, %v1947_v40  ;;  %v1382_v56 = vadd.f32 %v1334_v14, %v1278_v57  ;;  %v1335_v1 = vmul.f32 %v5507_v38, %v5964_v23  ;;  %v1439_v47 = vmul.f32 %v5510_v39, %v5971_v46  ;;  %v6043_v45 = vld [vmem:[#allocation2 + $0xa8] sm:$0xff] }
 0x177   :  { %v1848_v55 = vmul.f32 %v5522_v50, %v1796_v48  ;;  %v1693_v33 = vadd.f32 %v1645_v53, %v1589_v36  ;;  %v1543_v6 = vmul.f32 %v5515_v43, %v6013_v7  ;;  %v606_v41 = vadd.f32 %v4905_v59, %v5463_v4 }
 0x178   :  { %v1175_v61 = vadd.f32 %v1127_v37, %v1027_v31  ;;  %v1486_v54 = vadd.f32 %v1438_v17, %v1382_v56  ;;  %v1647_v29 = vmul.f32 %v5518_v44, %v6028_v8  ;;  %v980_v42 = vmul.f32 %v5479_v18, %v5933_v49  ;;  %v6060_v17 = vld [vmem:[#allocation2 + $0xa9] sm:$0xff]  ;;  %v610_v56 = vpop.f32.mrf.mxu0 }
 0x179   :  { %v1900_v14 = vadd.f32 %v5525_v51, %v1848_v55  ;;  %v1797_v3 = vadd.f32 %v1749_v5, %v1693_v33  ;;  %v1751_v53 = vmul.f32 %v5549_v20, %v6037_v60  ;;  %737 = vst.msk [vmem:[#allocation2 + $0x128] sm:$0xff] %vm699_vm2, %v606_v41  ;;  %v6058_v59 = vmul.f32 %v5490_v24, %v6043_v45  ;;  %v6066_v37 = vld [vmem:[#allocation2 + $0xaa] sm:$0xff] }
 0x17a   :  { %v1279_v40 = vadd.f32 %v1231_v9, %v1175_v61  ;;  %v1590_v57 = vadd.f32 %v1542_v58, %v1486_v54  ;;  %v1028_v36 = vadd.f32 %v980_v42, %v5931_v15  ;;  %v1128_v49 = vmul.f32 %v5497_v30, %v5939_v27 }
 0x17b   :  { %v1948_v48 = vmax.f32 %v1900_v14, 0.0  ;;  %v1849_v5 = vmul.f32 %v5522_v50, %v1797_v3  ;;  %v1232_v9 = vmul.f32 %v5504_v35, %v5981_v52  ;;  %v1336_v55 = vmul.f32 %v5507_v38, %v5999_v10 }
 0x17c   :  { %v1383_v31 = vadd.f32 %v1335_v1, %v1279_v40  ;;  %v1694_v58 = vadd.f32 %v1646_v34, %v1590_v57  ;;  %v1176_v33 = vadd.f32 %v1128_v49, %v1028_v36  ;;  %v1440_v15 = vmul.f32 %v5510_v39, %v6002_v62  ;;  %v6077_v1 = vld [vmem:[#allocation2 + $0xb0] sm:$0xff] }
 0x17d   :  { %4960 = vmatmul.mubr.msk.f32.gmra.mxu1 %vm699_vm2, %v1948_v48  ;;  %v1544_v27 = vmul.f32 %v5515_v43, %v6043_v45  ;;  %v1901_v61 = vadd.f32 %v5525_v51, %v1849_v5  ;;  %v1648_v52 = vmul.f32 %v5518_v44, %v6060_v17  ;;  %v601_v14 = vadd.f32 %v600_v28, %v5463_v4  ;;  %v6094_v28 = vpop.f32.mrf.mxu0  ;;  %v6097_v49 = vld [vmem:[#allocation2 + $0xb1] sm:$0xff] }
 0x17e   :  { %v1487_v41 = vadd.f32 %v1439_v47, %v1383_v31  ;;  %v1798_v54 = vadd.f32 %v1750_v13, %v1694_v58  ;;  %v1280_v42 = vadd.f32 %v1232_v9, %v1176_v33  ;;  %v1752_v34 = vmul.f32 %v5549_v20, %v6066_v37  ;;  %v6100_v5 = vld [vmem:[#allocation2 + $0xb2] sm:$0xff] }
 0x17f   :  { %v981_v3 = vmul.f32 %v5479_v18, %v5964_v23  ;;  %v1949_v40 = vmax.f32 %v1901_v61, 0.0  ;;  %736 = vst.msk [vmem:[#allocation2 + $0x120] sm:$0xff] %vm699_vm2, %v601_v14  ;;  %v6090_v47 = vmul.f32 %v5490_v24, %v6077_v1  ;;  %v1129_v57 = vmul.f32 %v5497_v30, %v5971_v46  ;;  %v6111_v58 = vld [vmem:[#allocation2 + $0xb8] sm:$0xff] }
 0x180   :  { %v1591_v48 = vadd.f32 %v1543_v6, %v1487_v41  ;;  %v1850_v13 = vmul.f32 %v5522_v50, %v1798_v54  ;;  %v1384_v36 = vadd.f32 %v1336_v55, %v1280_v42  ;;  %v1233_v6 = vmul.f32 %v5504_v35, %v6013_v7  ;;  %v6121_v42 = vpop.f32.mrf.mxu0 }
 0x181   :  { %v1029_v23 = vadd.f32 %v981_v3, %v5962_v63  ;;  %4962 = vmatprep.mubr.msk.f32.mxu1 %vm699_vm2, %v1949_v40  ;;  %v1337_v46 = vmul.f32 %v5507_v38, %v6028_v8  ;;  %v1441_v9 = vmul.f32 %v5510_v39, %v6037_v60  ;;  %v1545_v55 = vmul.f32 %v5515_v43, %v6077_v1 }
 0x182   :  { %v1695_v31 = vadd.f32 %v1647_v29, %v1591_v48  ;;  %v1902_v63 = vadd.f32 %v5525_v51, %v1850_v13  ;;  %v1488_v33 = vadd.f32 %v1440_v15, %v1384_v36  ;;  %v616_v7 = vadd.f32 %v4908_v12, %v5463_v4  ;;  %v6129_v15 = vld [vmem:[#allocation2 + $0xb9] sm:$0xff] }
 0x183   :  { %v1177_v61 = vadd.f32 %v1129_v57, %v1029_v23  ;;  %v1649_v29 = vmul.f32 %v5518_v44, %v6097_v49  ;;  %v1753_v14 = vmul.f32 %v5549_v20, %v6100_v5  ;;  %v982_v54 = vmul.f32 %v5479_v18, %v5999_v10  ;;  %v6137_v36 = vld [vmem:[#allocation2 + $0xba] sm:$0xff] }
 0x184   :  { %v1799_v41 = vadd.f32 %v1751_v53, %v1695_v31  ;;  %v1950_v3 = vmax.f32 %v1902_v63, 0.0  ;;  %v1592_v40 = vadd.f32 %v1544_v27, %v1488_v33  ;;  %739 = vst.msk [vmem:[#allocation2 + $0x138] sm:$0xff] %vm699_vm2, %v616_v7  ;;  %v6126_v12 = vmul.f32 %v5490_v24, %v6111_v58  ;;  %v6147_v63 = vpop.f32.mrf.mxu0  ;;  %v1207_v7 = vld [vmem:[#allocation2 + $0xc0] sm:$0xff] }
 0x185   :  { %v1281_v48 = vadd.f32 %v1233_v6, %v1177_v61  ;;  %v1030_v20 = vadd.f32 %v982_v54, %v5994_v32  ;;  %v1130_v10 = vmul.f32 %v5497_v30, %v6002_v62  ;;  %v1234_v57 = vmul.f32 %v5504_v35, %v6043_v45 }
 0x186   :  { %v1851_v53 = vmul.f32 %v5522_v50, %v1799_v41  ;;  %4963 = vmatmul.mubr.msk.f32.gmra.mxu1 %vm699_vm2, %v1950_v3  ;;  %v1696_v27 = vadd.f32 %v1648_v52, %v1592_v40  ;;  %v1338_v23 = vmul.f32 %v5507_v38, %v6060_v17  ;;  %v1442_v6 = vmul.f32 %v5510_v39, %v6066_v37  ;;  %v6153_v3 = vld [vmem:[#allocation6 + $0x8] ss:$0 sm:$0xff] }
 0x187   :  { %v1385_v13 = vadd.f32 %v1337_v46, %v1281_v48  ;;  %v1178_v31 = vadd.f32 %v1130_v10, %v1030_v20  ;;  %v1546_v62 = vmul.f32 %v5515_v43, %v6111_v58  ;;  %v611_v45 = vadd.f32 %v610_v56, %v5463_v4 }
 0x188   :  { %v1903_v32 = vadd.f32 %v5525_v51, %v1851_v53  ;;  %v1800_v52 = vadd.f32 %v1752_v34, %v1696_v27  ;;  %v1650_v33 = vmul.f32 %v5518_v44, %v6129_v15  ;;  %v983_v61 = vmul.f32 %v5479_v18, %v6028_v8  ;;  %v1311_v53 = vld [vmem:[#allocation2 + $0xc1] sm:$0xff] }
 0x189   :  { %v1489_v46 = vadd.f32 %v1441_v9, %v1385_v13  ;;  %v1282_v54 = vadd.f32 %v1234_v57, %v1178_v31  ;;  %v1754_v40 = vmul.f32 %v6153_v3, %v6137_v36  ;;  %738 = vst.msk [vmem:[#allocation2 + $0x130] sm:$0xff] %vm699_vm2, %v611_v45  ;;  %v1131_v56 = vmul.f32 %v5497_v30, %v6037_v60  ;;  %v1415_v27 = vld [vmem:[#allocation2 + $0xc2] sm:$0xff] }
 0x18a   :  { %v1951_v41 = vmax.f32 %v1903_v32, 0.0  ;;  %v1852_v34 = vmul.f32 %v5522_v50, %v1800_v52  ;;  %v1031_v48 = vadd.f32 %v983_v61, %v6026_v0  ;;  %v1235_v8 = vmul.f32 %v5504_v35, %v6077_v1 }
 0x18b   :  { %v1593_v9 = vadd.f32 %v1545_v55, %v1489_v46  ;;  %v1386_v20 = vadd.f32 %v1338_v23, %v1282_v54  ;;  %v6166_v10 = vmul.f32 %v5504_v35, %v1207_v7  ;;  %v1339_v57 = vmul.f32 %v5507_v38, %v6097_v49  ;;  %v6172_v55 = vpop.f32.mrf.mxu0  ;;  %v1208_v46 = vld [vmem:[#allocation2 + $0xc8] sm:$0xff] }
 0x18c   :  { %4965 = vmatprep.mubr.msk.f32.mxu1 %vm699_vm2, %v1951_v41  ;;  %v1443_v60 = vmul.f32 %v5510_v39, %v6100_v5  ;;  %v1904_v0 = vadd.f32 %v5525_v51, %v1852_v34  ;;  %v1179_v1 = vadd.f32 %v1131_v56, %v1031_v48  ;;  %v1547_v32 = vmul.f32 %v5515_v43, %v1207_v7 }
 0x18d   :  { %v1697_v13 = vadd.f32 %v1649_v29, %v1593_v9  ;;  %v1490_v31 = vadd.f32 %v1442_v6, %v1386_v20  ;;  %v1651_v23 = vmul.f32 %v5518_v44, %v1311_v53  ;;  %v626_v45 = vadd.f32 %v6094_v28, %v5463_v4  ;;  %v6188_v7 = vpop.f32.mrf.mxu0  ;;  %v1416_v9 = vld [vmem:[#allocation2 + $0xca] sm:$0xff] }
 0x18e   :  { %v984_v52 = vmul.f32 %v5479_v18, %v6060_v17  ;;  %v1952_v61 = vmax.f32 %v1904_v0, 0.0  ;;  %v1283_v54 = vadd.f32 %v1235_v8, %v1179_v1  ;;  %v1755_v26 = vmul.f32 %v6153_v3, %v1415_v27 }
 0x18f   :  { %v1801_v41 = vadd.f32 %v1753_v14, %v1697_v13  ;;  %v1594_v34 = vadd.f32 %v1546_v62, %v1490_v31  ;;  %741 = vst.msk [vmem:[#allocation2 + $0x148] sm:$0xff] %vm699_vm2, %v626_v45  ;;  %v1132_v6 = vmul.f32 %v5497_v30, %v6066_v37  ;;  %v1236_v28 = vmul.f32 %v5504_v35, %v6111_v58  ;;  %v1312_v62 = vld [vmem:[#allocation2 + $0xc9] sm:$0xff] }
 0x190   :  { %v1032_v29 = vadd.f32 %v984_v52, %v6058_v59  ;;  %4966 = vmatmul.mubr.msk.f32.gmra.mxu1 %vm699_vm2, %v1952_v61  ;;  %v1387_v14 = vadd.f32 %v1339_v57, %v1283_v54  ;;  %v6193_v56 = vmul.f32 %v5504_v35, %v1208_v46  ;;  %v1340_v59 = vmul.f32 %v5507_v38, %v6129_v15  ;;  %v1519_v52 = vld [vmem:[#allocation2 + $0xd0] sm:$0xff]  ;;  %v640_v61 = vpop.f32.mrf.mxu0 }
 0x191   :  { %v1853_v17 = vmul.f32 %v5522_v50, %v1801_v41  ;;  %v1698_v48 = vadd.f32 %v1650_v33, %v1594_v34  ;;  %v1444_v58 = vmul.f32 %v5510_v39, %v6137_v36  ;;  %v1548_v8 = vmul.f32 %v5515_v43, %v1208_v46  ;;  %v1623_v46 = vld [vmem:[#allocation2 + $0xd1] sm:$0xff] }
 0x192   :  { %v1180_v37 = vadd.f32 %v1132_v6, %v1032_v29  ;;  %v1491_v0 = vadd.f32 %v1443_v60, %v1387_v14  ;;  %v621_v57 = vadd.f32 %v6121_v42, %v5463_v4  ;;  %v985_v13 = vmul.f32 %v5479_v18, %v6097_v49  ;;  %v1727_v6 = vld [vmem:[#allocation2 + $0xd2] sm:$0xff] }
 0x193   :  { %v1905_v20 = vadd.f32 %v5525_v51, %v1853_v17  ;;  %v1802_v1 = vadd.f32 %v1754_v40, %v1698_v48  ;;  %v1652_v45 = vmul.f32 %v5518_v44, %v1312_v62  ;;  %v1756_v33 = vmul.f32 %v6153_v3, %v1416_v9 }
 0x194   :  { %v1284_v31 = vadd.f32 %v1236_v28, %v1180_v37  ;;  %v1595_v54 = vadd.f32 %v1547_v32, %v1491_v0  ;;  %740 = vst.msk [vmem:[#allocation2 + $0x140] sm:$0xff] %vm699_vm2, %v621_v57  ;;  %v1033_v60 = vadd.f32 %v985_v13, %v6090_v47  ;;  %v1133_v42 = vmul.f32 %v5497_v30, %v6100_v5 }
 0x195   :  { %v1953_v41 = vmax.f32 %v1905_v20, 0.0  ;;  %v1854_v49 = vmul.f32 %v5522_v50, %v1802_v1  ;;  %v1341_v34 = vmul.f32 %v5507_v38, %v1311_v53  ;;  %v1445_v29 = vmul.f32 %v5510_v39, %v1415_v27  ;;  %v4920_v27 = vpop.f32.mrf.mxu0 }
 0x196   :  { %v1388_v40 = vadd.f32 %v1340_v59, %v1284_v31  ;;  %v1699_v28 = vadd.f32 %v1651_v23, %v1595_v54  ;;  %v1181_v32 = vadd.f32 %v1133_v42, %v1033_v60  ;;  %v1549_v17 = vmul.f32 %v5515_v43, %v1519_v52  ;;  %v1520_v59 = vld [vmem:[#allocation2 + $0xd8] sm:$0xff]  ;;  %v787_v52 = vld [vmem:[#allocation2 + $0xe0] sm:$0xff] }
 0x197   :  { %4968 = vmatprep.mubr.msk.f32.mxu1 %vm699_vm2, %v1953_v41  ;;  %v636_v47 = vadd.f32 %v6147_v63, %v5463_v4  ;;  %v1906_v5 = vadd.f32 %v5525_v51, %v1854_v49  ;;  %v1653_v48 = vmul.f32 %v5518_v44, %v1623_v46  ;;  %v986_v53 = vmul.f32 %v5479_v18, %v6129_v15  ;;  %v1624_v31 = vld [vmem:[#allocation2 + $0xd9] sm:$0xff]  ;;  %v650_v60 = vpop.f32.mrf.mxu0 }
 0x198   :  { %v1492_v14 = vadd.f32 %v1444_v58, %v1388_v40  ;;  %v1803_v37 = vadd.f32 %v1755_v26, %v1699_v28  ;;  %v1285_v20 = vadd.f32 %v6166_v10, %v1181_v32  ;;  %v1757_v23 = vmul.f32 %v6153_v3, %v1727_v6  ;;  %v6240_v40 = vld [vmem:[#allocation2 + $0x100] sm:$0xff]  ;;  %v6249_v28 = vld [vmem:[#allocation2 + $0xf1] sm:$0xff] }
 0x199   :  { %743 = vst.msk [vmem:[#allocation2 + $0x158] sm:$0xff] %vm699_vm2, %v636_v47  ;;  %v1134_v63 = vmul.f32 %v5497_v30, %v6137_v36  ;;  %v1954_v0 = vmax.f32 %v1906_v5, 0.0  ;;  %v1034_v58 = vadd.f32 %v986_v53, %v6126_v12  ;;  %v1342_v13 = vmul.f32 %v5507_v38, %v1312_v62  ;;  %v1728_v36 = vld [vmem:[#allocation2 + $0xda] sm:$0xff] }
 0x19a   :  { %v1596_v57 = vadd.f32 %v1548_v8, %v1492_v14  ;;  %v1855_v15 = vmul.f32 %v5522_v50, %v1803_v37  ;;  %v1389_v1 = vadd.f32 %v1341_v34, %v1285_v20  ;;  %v1446_v26 = vmul.f32 %v5510_v39, %v1416_v9  ;;  %v935_v62 = vld [vmem:[#allocation2 + $0xe1] sm:$0xff] }
 0x19b   :  { %v1550_v10 = vmul.f32 %v5515_v43, %v1520_v59  ;;  %4969 = vmatmul.mubr.msk.f32.gmra.mxu1 %vm699_vm2, %v1954_v0  ;;  %v1182_v54 = vadd.f32 %v1134_v63, %v1034_v58  ;;  %v631_v8 = vadd.f32 %v6172_v55, %v5463_v4  ;;  %v646_v12 = vadd.f32 %v6188_v7, %v5463_v4  ;;  %v6246_v7 = vld [vmem:[#allocation2 + $0xf0] sm:$0xff]  ;;  %v6264_v37 = vld [vmem:[#allocation2 + $0x101] sm:$0xff] }
 0x19c   :  { %v1700_v41 = vadd.f32 %v1652_v45, %v1596_v57  ;;  %v1907_v42 = vadd.f32 %v5525_v51, %v1855_v15  ;;  %v1493_v9 = vadd.f32 %v1445_v29, %v1389_v1  ;;  %v641_v46 = vadd.f32 %v640_v61, %v5463_v4  ;;  %v1083_v45 = vld [vmem:[#allocation2 + $0xe2] sm:$0xff] }
 0x19d   :  { %v656_v49 = vadd.f32 %v4920_v27, %v5463_v4  ;;  %v1286_v6 = vadd.f32 %v6193_v56, %v1182_v54  ;;  %v1654_v55 = vmul.f32 %v5518_v44, %v1624_v31  ;;  %742 = vst.msk [vmem:[#allocation2 + $0x150] sm:$0xff] %vm699_vm2, %v631_v8  ;;  %745 = vst.msk [vmem:[#allocation2 + $0x168] sm:$0xff] %vm699_vm2, %v646_v12  ;;  %v6266_v63 = vld [vmem:[#allocation2 + $0x102] sm:$0xff]  ;;  %v6279_v8 = vld [vmem:[#allocation2 + $0xf8] sm:$0xff] }
 0x19e   :  { %v1804_v34 = vadd.f32 %v1756_v33, %v1700_v41  ;;  %v839_v29 = vmul.f32 %v5490_v24, %v787_v52  ;;  %v1955_v61 = vmax.f32 %v1907_v42, 0.0  ;;  %v1597_v32 = vadd.f32 %v1549_v17, %v1493_v9  ;;  %744 = vst.msk [vmem:[#allocation2 + $0x160] sm:$0xff] %vm699_vm2, %v641_v46  ;;  %v6255_v33 = vld [vmem:[#allocation2 + $0xf2] sm:$0xff]  ;;  %v4923_v17 = vpop.f32.mrf.mxu0  ;;  %v788_v1 = vld [vmem:[#allocation2 + $0xe8] sm:$0xff] }
 0x19f   :  { %v1758_v47 = vmul.f32 %v6153_v3, %v1728_v36  ;;  %747 = vst.msk [vmem:[#allocation2 + $0x178] sm:$0xff] %vm699_vm2, %v656_v49  ;;  %v987_v56 = vmul.f32 %v5479_v18, %v935_v62  ;;  %v1390_v14 = vadd.f32 %v1342_v13, %v1286_v6  ;;  %v6260_v53 = vmul.f32 %v5490_v24, %v6240_v40  ;;  %v936_v31 = vld [vmem:[#allocation2 + $0xe9] sm:$0xff]  ;;  %v938_v49 = vld [vmem:[#allocation2 + $0xf9] sm:$0xff] }
 0x1a0   :  { %v1856_v5 = vmul.f32 %v5522_v50, %v1804_v34  ;;  %v1135_v59 = vmul.f32 %v5497_v30, %v1083_v45  ;;  %4971 = vmatprep.mubr.msk.f32.mxu1 %vm699_vm2, %v1955_v61  ;;  %v1701_v27 = vadd.f32 %v1653_v48, %v1597_v32  ;;  %v1239_v0 = vmul.f32 %v5504_v35, %v6246_v7  ;;  %v6281_v12 = vld [vmem:[#allocation2 + $0x108] sm:$0xff]  ;;  %v1086_v6 = vld [vmem:[#allocation2 + $0xfa] sm:$0xff] }
 0x1a1   :  { %v1035_v20 = vadd.f32 %v987_v56, %v839_v29  ;;  %v1343_v57 = vmul.f32 %v5507_v38, %v6249_v28  ;;  %v1494_v13 = vadd.f32 %v1446_v26, %v1390_v14  ;;  %v1447_v15 = vmul.f32 %v5510_v39, %v6255_v33  ;;  %v1084_v62 = vld [vmem:[#allocation2 + $0xea] sm:$0xff] }
 0x1a2   :  { %v1908_v58 = vadd.f32 %v5525_v51, %v1856_v5  ;;  %v1551_v48 = vmul.f32 %v5515_v43, %v6240_v40  ;;  %v1805_v52 = vadd.f32 %v1757_v23, %v1701_v27  ;;  %v651_v54 = vadd.f32 %v650_v60, %v5463_v4  ;;  %v6303_v27 = vld [vmem:[#allocation2 + $0x10a] sm:$0xff] }
 0x1a3   :  { %v1183_v41 = vadd.f32 %v1135_v59, %v1035_v20  ;;  %v666_v36 = vadd.f32 %v4923_v17, %v5463_v4  ;;  %v1598_v42 = vadd.f32 %v1550_v10, %v1494_v13  ;;  %v1655_v9 = vmul.f32 %v5518_v44, %v6264_v37  ;;  %v660_v10 = vpop.f32.mrf.mxu0  ;;  %v6301_v59 = vld [vmem:[#allocation2 + $0x109] sm:$0xff] }
 0x1a4   :  { %v1956_v26 = vmax.f32 %v1908_v58, 0.0  ;;  %v1759_v46 = vmul.f32 %v6153_v3, %v6266_v63  ;;  %v1857_v23 = vmul.f32 %v5522_v50, %v1805_v52  ;;  %746 = vst.msk [vmem:[#allocation2 + $0x170] sm:$0xff] %vm699_vm2, %v651_v54  ;;  %v840_v60 = vmul.f32 %v5490_v24, %v788_v1  ;;  %v6310_v1 = vld [vmem:[#allocation2 + $0x110] sm:$0xff] }
 0x1a5   :  { %v1287_v45 = vadd.f32 %v1239_v0, %v1183_v41  ;;  %749 = vst.msk [vmem:[#allocation2 + $0x188] sm:$0xff] %vm699_vm2, %v666_v36  ;;  %v988_v34 = vmul.f32 %v5479_v18, %v936_v31  ;;  %v1702_v29 = vadd.f32 %v1654_v55, %v1598_v42  ;;  %v6295_v61 = vmul.f32 %v5490_v24, %v6281_v12  ;;  %v6329_v42 = vld [vmem:[#allocation2 + $0x111] sm:$0xff] }
 0x1a6   :  { %4972 = vmatmul.mubr.msk.f32.gmra.mxu1 %vm699_vm2, %v1956_v26  ;;  %v1136_v32 = vmul.f32 %v5497_v30, %v1084_v62  ;;  %v1240_v56 = vmul.f32 %v5504_v35, %v6279_v8  ;;  %v1909_v5 = vadd.f32 %v5525_v51, %v1857_v23  ;;  %v1344_v20 = vmul.f32 %v5507_v38, %v938_v49 }
 0x1a7   :  { %v1391_v14 = vadd.f32 %v1343_v57, %v1287_v45  ;;  %v1036_v17 = vadd.f32 %v988_v34, %v840_v60  ;;  %v1806_v55 = vadd.f32 %v1758_v47, %v1702_v29  ;;  %v1448_v0 = vmul.f32 %v5510_v39, %v1086_v6  ;;  %v4926_v45 = vpop.f32.mrf.mxu0 }
 0x1a8   :  { %v1552_v58 = vmul.f32 %v5515_v43, %v6281_v12  ;;  %v661_v13 = vadd.f32 %v660_v10, %v5463_v4  ;;  %v1957_v31 = vmax.f32 %v1909_v5, 0.0  ;;  %v841_v41 = vmul.f32 %v5490_v24, %v6246_v7  ;;  %v6344_v5 = vld [vmem:[#allocation2 + $0x118] sm:$0xff] }
 0x1a9   :  { %v1495_v52 = vadd.f32 %v1447_v15, %v1391_v14  ;;  %v1184_v57 = vadd.f32 %v1136_v32, %v1036_v17  ;;  %v1858_v54 = vmul.f32 %v5522_v50, %v1806_v55  ;;  %v1656_v47 = vmul.f32 %v5518_v44, %v6301_v59  ;;  %v6338_v32 = vld [vmem:[#allocation2 + $0x112] sm:$0xff] }
 0x1aa   :  { %v6319_v36 = vmul.f32 %v6153_v3, %v6303_v27  ;;  %748 = vst.msk [vmem:[#allocation2 + $0x180] sm:$0xff] %vm699_vm2, %v661_v13  ;;  %v989_v62 = vmul.f32 %v5479_v18, %v6249_v28  ;;  %4974 = vmatprep.mubr.msk.f32.mxu1 %vm699_vm2, %v1957_v31  ;;  %v6327_v7 = vmul.f32 %v5490_v24, %v6310_v1  ;;  %v3679_v13 = vld [vmem:[#allocation11 + $0x38] sm:$0xff] }
 0x1ab   :  { %v1599_v15 = vadd.f32 %v1551_v48, %v1495_v52  ;;  %v1288_v26 = vadd.f32 %v1240_v56, %v1184_v57  ;;  %v1137_v23 = vmul.f32 %v5497_v30, %v6255_v33  ;;  %v1910_v60 = vadd.f32 %v5525_v51, %v1858_v54  ;;  %5013 = vmatprep.subr.mxu1 %v3679_v13  ;;  %v3678_v57 = vld [vmem:[#allocation11 + $0x30] sm:$0xff] }
 0x1ac   :  { %v1037_v34 = vadd.f32 %v989_v62, %v841_v41  ;;  %v1241_v28 = vmul.f32 %v5504_v35, %v6240_v40  ;;  %v1345_v48 = vmul.f32 %v5507_v38, %v6264_v37  ;;  %v1449_v56 = vmul.f32 %v5510_v39, %v6266_v63  ;;  %5014 = vmatpush3.msra.mxu1 %v3679_v13 }
 0x1ad   :  { %v1703_v10 = vadd.f32 %v1655_v9, %v1599_v15  ;;  %v1392_v29 = vadd.f32 %v1344_v20, %v1288_v26  ;;  %v1553_v33 = vmul.f32 %v5515_v43, %v6310_v1  ;;  %v1958_v14 = vmax.f32 %v1910_v60, 0.0  ;;  %v6362_v15 = vld [vmem:[#allocation2 + $0x119] sm:$0xff]  ;;  %v3677_v60 = vld [vmem:[#allocation11 + $0x28] sm:$0xff]  ;;  %5015 = vmatprep.subr.mxu1 %v3678_v57 }
 0x1ae   :  { %v1185_v17 = vadd.f32 %v1137_v23, %v1037_v34  ;;  %v1657_v40 = vmul.f32 %v5518_v44, %v6329_v42  ;;  %v676_v55 = vadd.f32 %v4926_v45, %v5463_v4  ;;  %v842_v31 = vmul.f32 %v5490_v24, %v6279_v8  ;;  %v6364_v23 = vld [vmem:[#allocation2 + $0x11a] sm:$0xff]  ;;  %5016 = vmatpush3.msra.mxu1 %v3678_v57 }
 0x1af   :  { %v1807_v9 = vadd.f32 %v1759_v46, %v1703_v10  ;;  %v1496_v20 = vadd.f32 %v1448_v0, %v1392_v29  ;;  %v990_v52 = vmul.f32 %v5479_v18, %v938_v49  ;;  %4975 = vmatmul.mubr.msk.f32.gmra.mxu1 %vm699_vm2, %v1958_v14  ;;  %v1761_v54 = vmul.f32 %v6153_v3, %v6338_v32  ;;  %v670_v0 = vpop.f32.mrf.mxu0  ;;  %v6374_v10 = vld [vmem:[#allocation2 + $0x120] sm:$0xff] }
 0x1b0   :  { %v1289_v41 = vadd.f32 %v1241_v28, %v1185_v17  ;;  %751 = vst.msk [vmem:[#allocation2 + $0x198] sm:$0xff] %vm699_vm2, %v676_v55  ;;  %v6358_v62 = vmul.f32 %v5490_v24, %v6344_v5  ;;  %v1138_v46 = vmul.f32 %v5497_v30, %v1086_v6  ;;  %v1242_v45 = vmul.f32 %v5504_v35, %v6281_v12 }
 0x1b1   :  { %v1859_v8 = vmul.f32 %v5522_v50, %v1807_v9  ;;  %v1600_v49 = vadd.f32 %v1552_v58, %v1496_v20  ;;  %v1038_v26 = vadd.f32 %v990_v52, %v842_v31  ;;  %v1346_v28 = vmul.f32 %v5507_v38, %v6301_v59  ;;  %5017 = vmatprep.subr.mxu1 %v3677_v60 }
 0x1b2   :  { %v1393_v34 = vadd.f32 %v1345_v48, %v1289_v41  ;;  %v1450_v6 = vmul.f32 %v5510_v39, %v6303_v27  ;;  %v1554_v58 = vmul.f32 %v5515_v43, %v6344_v5  ;;  %v671_v12 = vadd.f32 %v670_v0, %v5463_v4  ;;  %v3676_v48 = vld [vmem:[#allocation11 + $0x20] sm:$0xff]  ;;  %5018 = vmatpush3.msra.mxu1 %v3677_v60 }
 0x1b3   :  { %v1911_v29 = vadd.f32 %v5525_v51, %v1859_v8  ;;  %v1704_v14 = vadd.f32 %v1656_v47, %v1600_v49  ;;  %v1186_v17 = vadd.f32 %v1138_v46, %v1038_v26  ;;  %v1658_v13 = vmul.f32 %v5518_v44, %v6362_v15  ;;  %v6390_v41 = vld [vmem:[#allocation2 + $0x121] sm:$0xff]  ;;  %5019 = vmatprep.subr.mxu1 %v3676_v48 }
 0x1b4   :  { %v1497_v55 = vadd.f32 %v1449_v56, %v1393_v34  ;;  %v1762_v9 = vmul.f32 %v6153_v3, %v6364_v23  ;;  %v991_v20 = vmul.f32 %v5479_v18, %v6264_v37  ;;  %750 = vst.msk [vmem:[#allocation2 + $0x190] sm:$0xff] %vm699_vm2, %v671_v12  ;;  %v6388_v57 = vmul.f32 %v5490_v24, %v6374_v10  ;;  %v6399_v26 = vld [vmem:[#allocation2 + $0x122] sm:$0xff] }
 0x1b5   :  { %v1959_v31 = vmax.f32 %v1911_v29, 0.0  ;;  %v1808_v52 = vadd.f32 %v6319_v36, %v1704_v14  ;;  %v1290_v47 = vadd.f32 %v1242_v45, %v1186_v17  ;;  %v1139_v37 = vmul.f32 %v5497_v30, %v6266_v63  ;;  %v3675_v36 = vld [vmem:[#allocation11 + $0x18] sm:$0xff]  ;;  %v4929_v45 = vpop.f32.mrf.mxu0  ;;  %v6405_v63 = vld [vmem:[#allocation2 + $0x128] sm:$0xff]  ;;  %5020 = vmatpush3.msra.mxu1 %v3676_v48 }
 0x1b6   :  { %v1601_v56 = vadd.f32 %v1553_v33, %v1497_v55  ;;  %v1039_v46 = vadd.f32 %v991_v20, %v6260_v53  ;;  %v1243_v0 = vmul.f32 %v5504_v35, %v6310_v1  ;;  %v1347_v33 = vmul.f32 %v5507_v38, %v6329_v42  ;;  %5021 = vmatprep.subr.mxu1 %v3675_v36 }
 0x1b7   :  { %4977 = vmatprep.mubr.msk.f32.mxu1 %vm699_vm2, %v1959_v31  ;;  %v1860_v8 = vmul.f32 %v5522_v50, %v1808_v52  ;;  %v1394_v49 = vadd.f32 %v1346_v28, %v1290_v47  ;;  %v1451_v53 = vmul.f32 %v5510_v39, %v6338_v32  ;;  %v1555_v34 = vmul.f32 %v5515_v43, %v6374_v10  ;;  %v6422_v52 = vld [vmem:[#allocation2 + $0x129] sm:$0xff] }
 0x1b8   :  { %v1705_v60 = vadd.f32 %v1657_v40, %v1601_v56  ;;  %v1187_v1 = vadd.f32 %v1139_v37, %v1039_v46  ;;  %v686_v29 = vadd.f32 %v4929_v45, %v5463_v4  ;;  %v1659_v17 = vmul.f32 %v5518_v44, %v6390_v41  ;;  %5022 = vmatpush3.msra.mxu1 %v3675_v36  ;;  %v6428_v37 = vld [vmem:[#allocation2 + $0x12a] sm:$0xff] }
 0x1b9   :  { %v1912_v28 = vadd.f32 %v5525_v51, %v1860_v8  ;;  %v1498_v14 = vadd.f32 %v1450_v6, %v1394_v49  ;;  %v992_v12 = vmul.f32 %v5479_v18, %v6301_v59  ;;  %v1763_v40 = vmul.f32 %v6153_v3, %v6399_v26  ;;  %v6439_v49 = vld [vmem:[#allocation2 + $0x130] sm:$0xff] }
 0x1ba   :  { %v1809_v55 = vadd.f32 %v1761_v54, %v1705_v60  ;;  %v1291_v20 = vadd.f32 %v1243_v0, %v1187_v1  ;;  %753 = vst.msk [vmem:[#allocation2 + $0x1a8] sm:$0xff] %vm699_vm2, %v686_v29  ;;  %v6420_v48 = vmul.f32 %v5490_v24, %v6405_v63  ;;  %v1140_v59 = vmul.f32 %v5497_v30, %v6303_v27  ;;  %v680_v54 = vpop.f32.mrf.mxu0 }
 0x1bb   :  { %v1960_v6 = vmax.f32 %v1912_v28, 0.0  ;;  %v1602_v31 = vadd.f32 %v1554_v58, %v1498_v14  ;;  %v1040_v47 = vadd.f32 %v992_v12, %v6295_v61  ;;  %v1244_v0 = vmul.f32 %v5504_v35, %v6344_v5 }
 0x1bc   :  { %v1861_v56 = vmul.f32 %v5522_v50, %v1809_v55  ;;  %v1395_v46 = vadd.f32 %v1347_v33, %v1291_v20  ;;  %v1348_v36 = vmul.f32 %v5507_v38, %v6362_v15  ;;  %v1452_v61 = vmul.f32 %v5510_v39, %v6364_v23 }
 0x1bd   :  { %4978 = vmatmul.mubr.msk.f32.gmra.mxu1 %vm699_vm2, %v1960_v6  ;;  %v1706_v58 = vadd.f32 %v1658_v13, %v1602_v31  ;;  %v1188_v8 = vadd.f32 %v1140_v59, %v1040_v47  ;;  %v1556_v27 = vmul.f32 %v5515_v43, %v6405_v63  ;;  %v1660_v5 = vmul.f32 %v5518_v44, %v6422_v52  ;;  %v6457_v6 = vld [vmem:[#allocation2 + $0x131] sm:$0xff] }
 0x1be   :  { %v1913_v33 = vadd.f32 %v5525_v51, %v1861_v56  ;;  %v1499_v45 = vadd.f32 %v1451_v53, %v1395_v46  ;;  %v681_v60 = vadd.f32 %v680_v54, %v5463_v4  ;;  %v1764_v13 = vmul.f32 %v6153_v3, %v6428_v37  ;;  %v6460_v47 = vld [vmem:[#allocation2 + $0x132] sm:$0xff] }
 0x1bf   :  { %v1810_v1 = vadd.f32 %v1762_v9, %v1706_v58  ;;  %v1292_v29 = vadd.f32 %v1244_v0, %v1188_v8  ;;  %v993_v28 = vmul.f32 %v5479_v18, %v6329_v42  ;;  %v6452_v53 = vmul.f32 %v5490_v24, %v6439_v49  ;;  %v6471_v46 = vld [vmem:[#allocation2 + $0x138] sm:$0xff] }
 0x1c0   :  { %v1961_v14 = vmax.f32 %v1913_v33, 0.0  ;;  %v1603_v12 = vadd.f32 %v1555_v34, %v1499_v45  ;;  %752 = vst.msk [vmem:[#allocation2 + $0x1a0] sm:$0xff] %vm699_vm2, %v681_v60  ;;  %v1141_v55 = vmul.f32 %v5497_v30, %v6338_v32  ;;  %v1245_v42 = vmul.f32 %v5504_v35, %v6374_v10  ;;  %v4932_v34 = vpop.f32.mrf.mxu0  ;;  %v3674_v45 = vld [vmem:[#allocation11 + $0x10] sm:$0xff] }
 0x1c1   :  { %v1862_v9 = vmul.f32 %v5522_v50, %v1810_v1  ;;  %v1396_v20 = vadd.f32 %v1348_v36, %v1292_v29  ;;  %v1041_v31 = vadd.f32 %v993_v28, %v6327_v7  ;;  %v1349_v54 = vmul.f32 %v5507_v38, %v6390_v41  ;;  %5023 = vmatprep.subr.mxu1 %v3674_v45 }
 0x1c2   :  { %4980 = vmatprep.mubr.msk.f32.mxu1 %vm699_vm2, %v1961_v14  ;;  %v1707_v59 = vadd.f32 %v1659_v17, %v1603_v12  ;;  %v1453_v32 = vmul.f32 %v5510_v39, %v6399_v26  ;;  %v1557_v56 = vmul.f32 %v5515_v43, %v6439_v49  ;;  %v696_v10 = vadd.f32 %v4932_v34, %v5463_v4  ;;  %v6487_v14 = vld [vmem:[#allocation2 + $0x139] sm:$0xff] }
 0x1c3   :  { %v1914_v7 = vadd.f32 %v5525_v51, %v1862_v9  ;;  %v1500_v0 = vadd.f32 %v1452_v61, %v1396_v20  ;;  %v1189_v36 = vadd.f32 %v1141_v55, %v1041_v31  ;;  %v1661_v17 = vmul.f32 %v5518_v44, %v6457_v6  ;;  %5024 = vmatpush3.msra.mxu1 %v3674_v45  ;;  %v6495_v20 = vld [vmem:[#allocation2 + $0x13a] sm:$0xff] }
 0x1c4   :  { %v1811_v58 = vadd.f32 %v1763_v40, %v1707_v59  ;;  %v1765_v8 = vmul.f32 %v6153_v3, %v6460_v47  ;;  %v994_v33 = vmul.f32 %v5479_v18, %v6362_v15  ;;  %755 = vst.msk [vmem:[#allocation2 + $0x1b8] sm:$0xff] %vm699_vm2, %v696_v10  ;;  %v6484_v61 = vmul.f32 %v5490_v24, %v6471_v46  ;;  %v690_v40 = vpop.f32.mrf.mxu0 }
 0x1c5   :  { %v1962_v60 = vmax.f32 %v1914_v7, 0.0  ;;  %v1604_v1 = vadd.f32 %v1556_v27, %v1500_v0  ;;  %v1293_v29 = vadd.f32 %v1245_v42, %v1189_v36  ;;  %v1142_v15 = vmul.f32 %v5497_v30, %v6364_v23 }
 0x1c6   :  { %v1863_v28 = vmul.f32 %v5522_v50, %v1811_v58  ;;  %v1042_v12 = vadd.f32 %v994_v33, %v6358_v62  ;;  %v1246_v27 = vmul.f32 %v5504_v35, %v6405_v63  ;;  %v1350_v31 = vmul.f32 %v5507_v38, %v6422_v52 }
 0x1c7   :  { %4981 = vmatmul.mubr.msk.f32.gmra.mxu1 %vm699_vm2, %v1962_v60  ;;  %v1708_v55 = vadd.f32 %v1660_v5, %v1604_v1  ;;  %v1397_v9 = vadd.f32 %v1349_v54, %v1293_v29  ;;  %v1454_v42 = vmul.f32 %v5510_v39, %v6428_v37  ;;  %v1558_v23 = vmul.f32 %v5515_v43, %v6471_v46  ;;  %v799_v54 = vld [vmem:[#allocation2 + $0x140] sm:$0xff] }
 0x1c8   :  { %v1915_v62 = vadd.f32 %v5525_v51, %v1863_v28  ;;  %v1190_v34 = vadd.f32 %v1142_v15, %v1042_v12  ;;  %v691_v63 = vadd.f32 %v690_v40, %v5463_v4  ;;  %v1662_v5 = vmul.f32 %v5518_v44, %v6487_v14  ;;  %v6518_v60 = vld [vmem:[#allocation2 + $0x142] sm:$0xff] }
 0x1c9   :  { %v1812_v59 = vadd.f32 %v1764_v13, %v1708_v55  ;;  %v1501_v7 = vadd.f32 %v1453_v32, %v1397_v9  ;;  %v995_v0 = vmul.f32 %v5479_v18, %v6390_v41  ;;  %v1766_v58 = vmul.f32 %v6153_v3, %v6495_v20  ;;  %v6515_v32 = vld [vmem:[#allocation2 + $0x141] sm:$0xff] }
 0x1ca   :  { %v1963_v36 = vmax.f32 %v1915_v62, 0.0  ;;  %v1294_v10 = vadd.f32 %v1246_v27, %v1190_v34  ;;  %754 = vst.msk [vmem:[#allocation2 + $0x1b0] sm:$0xff] %vm699_vm2, %v691_v63  ;;  %v1143_v33 = vmul.f32 %v5497_v30, %v6399_v26  ;;  %v1247_v41 = vmul.f32 %v5504_v35, %v6439_v49  ;;  %v6530_v40 = vld [vmem:[#allocation2 + $0x148] sm:$0xff] }
 0x1cb   :  { %v1864_v4 = vmul.f32 %v5522_v50, %v1812_v59  ;;  %v1605_v13 = vadd.f32 %v1557_v56, %v1501_v7  ;;  %v1043_v45 = vadd.f32 %v995_v0, %v6388_v57  ;;  %v6524_v29 = vmul.f32 %v5490_v24, %v799_v54  ;;  %v6547_v7 = vld [vmem:[#allocation2 + $0x14a] sm:$0xff] }
 0x1cc   :  { %4983 = vmatprep.mubr.msk.f32.mxu1 %vm699_vm2, %v1963_v36  ;;  %v1398_v1 = vadd.f32 %v1350_v31, %v1294_v10  ;;  %v1351_v26 = vmul.f32 %v5507_v38, %v6457_v6  ;;  %v1455_v56 = vmul.f32 %v5510_v39, %v6460_v47  ;;  %v1559_v49 = vmul.f32 %v5515_v43, %v799_v54 }
 0x1cd   :  { %v1916_v57 = vadd.f32 %v5525_v51, %v1864_v4  ;;  %v1709_v28 = vadd.f32 %v1661_v17, %v1605_v13  ;;  %v1191_v12 = vadd.f32 %v1143_v33, %v1043_v45  ;;  %v1663_v27 = vmul.f32 %v5518_v44, %v6515_v32  ;;  %v6544_v17 = vld [vmem:[#allocation2 + $0x149] sm:$0xff] }
 0x1ce   :  { %v1502_v15 = vadd.f32 %v1454_v42, %v1398_v1  ;;  %v1767_v55 = vmul.f32 %v6153_v3, %v6518_v60  ;;  %v996_v9 = vmul.f32 %v5479_v18, %v6422_v52  ;;  %v6542_v63 = vmul.f32 %v5490_v24, %v6530_v40 }
 0x1cf   :  { %v1964_v31 = vmax.f32 %v1916_v57, 0.0  ;;  %v1813_v62 = vadd.f32 %v1765_v8, %v1709_v28  ;;  %v1295_v34 = vadd.f32 %v1247_v41, %v1191_v12  ;;  %v1144_v0 = vmul.f32 %v5497_v30, %v6428_v37  ;;  %v6574_v28 = vld [vmem:[#allocation2 + $0x151] sm:$0xff] }
 0x1d0   :  { %v1606_v59 = vadd.f32 %v1558_v23, %v1502_v15  ;;  %v1044_v42 = vadd.f32 %v996_v9, %v6420_v48  ;;  %v1248_v52 = vmul.f32 %v5504_v35, %v6471_v46  ;;  %v1352_v10 = vmul.f32 %v5507_v38, %v6487_v14  ;;  %v6559_v48 = vld [vmem:[#allocation2 + $0x150] sm:$0xff] }
 0x1d1   :  { %4984 = vmatmul.mubr.msk.f32.gmra.mxu1 %vm699_vm2, %v1964_v31  ;;  %v1865_v8 = vmul.f32 %v5522_v50, %v1813_v62  ;;  %v1399_v36 = vadd.f32 %v1351_v26, %v1295_v34  ;;  %v1456_v23 = vmul.f32 %v5510_v39, %v6495_v20  ;;  %v1560_v37 = vmul.f32 %v5515_v43, %v6530_v40  ;;  %v6579_v31 = vld [vmem:[#allocation2 + $0x152] sm:$0xff] }
 0x1d2   :  { %v1710_v33 = vadd.f32 %v1662_v5, %v1606_v59  ;;  %v1192_v4 = vadd.f32 %v1144_v0, %v1044_v42  ;;  %v1664_v46 = vmul.f32 %v5518_v44, %v6544_v17  ;;  %v1768_v41 = vmul.f32 %v6153_v3, %v6547_v7  ;;  %v6587_v42 = vld [vmem:[#allocation2 + $0x158] sm:$0xff] }
 0x1d3   :  { %v1917_v13 = vadd.f32 %v5525_v51, %v1865_v8  ;;  %v1503_v45 = vadd.f32 %v1455_v56, %v1399_v36  ;;  %v997_v1 = vmul.f32 %v5479_v18, %v6457_v6  ;;  %v6572_v5 = vmul.f32 %v5490_v24, %v6559_v48 }
 0x1d4   :  { %v1814_v26 = vadd.f32 %v1766_v58, %v1710_v33  ;;  %v1296_v57 = vadd.f32 %v1248_v52, %v1192_v4  ;;  %v1145_v12 = vmul.f32 %v5497_v30, %v6460_v47  ;;  %v1249_v62 = vmul.f32 %v5504_v35, %v799_v54  ;;  %v6603_v4 = vld [vmem:[#allocation2 + $0x159] sm:$0xff] }
 0x1d5   :  { %v1965_v15 = vmax.f32 %v1917_v13, 0.0  ;;  %v1607_v9 = vadd.f32 %v1559_v49, %v1503_v45  ;;  %v1045_v56 = vadd.f32 %v997_v1, %v6452_v53  ;;  %v1353_v34 = vmul.f32 %v5507_v38, %v6515_v32 }
 0x1d6   :  { %v1866_v6 = vmul.f32 %v5522_v50, %v1814_v26  ;;  %v1400_v58 = vadd.f32 %v1352_v10, %v1296_v57  ;;  %v1457_v59 = vmul.f32 %v5510_v39, %v6518_v60  ;;  %v1561_v53 = vmul.f32 %v5515_v43, %v6559_v48  ;;  %v6608_v26 = vld [vmem:[#allocation2 + $0x15a] sm:$0xff] }
 0x1d7   :  { %4986 = vmatprep.mubr.msk.f32.mxu1 %vm699_vm2, %v1965_v15  ;;  %v1711_v47 = vadd.f32 %v1663_v27, %v1607_v9  ;;  %v1193_v49 = vadd.f32 %v1145_v12, %v1045_v56  ;;  %v1665_v54 = vmul.f32 %v5518_v44, %v6574_v28  ;;  %v1769_v8 = vmul.f32 %v6153_v3, %v6579_v31  ;;  %v6617_v9 = vld [vmem:[#allocation2 + $0x160] sm:$0xff] }
 0x1d8   :  { %v1918_v0 = vadd.f32 %v5525_v51, %v1866_v6  ;;  %v1504_v52 = vadd.f32 %v1456_v23, %v1400_v58  ;;  %v998_v36 = vmul.f32 %v5479_v18, %v6487_v14  ;;  %v6601_v27 = vmul.f32 %v5490_v24, %v6587_v42 }
 0x1d9   :  { %v1815_v10 = vadd.f32 %v1767_v55, %v1711_v47  ;;  %v1297_v33 = vadd.f32 %v1249_v62, %v1193_v49  ;;  %v1146_v13 = vmul.f32 %v5497_v30, %v6495_v20  ;;  %v1250_v14 = vmul.f32 %v5504_v35, %v6530_v40  ;;  %v6633_v49 = vld [vmem:[#allocation2 + $0x161] sm:$0xff] }
 0x1da   :  { %v1966_v45 = vmax.f32 %v1918_v0, 0.0  ;;  %v1608_v1 = vadd.f32 %v1560_v37, %v1504_v52  ;;  %v1046_v23 = vadd.f32 %v998_v36, %v6484_v61  ;;  %v1354_v12 = vmul.f32 %v5507_v38, %v6544_v17 }
 0x1db   :  { %v1867_v55 = vmul.f32 %v5522_v50, %v1815_v10  ;;  %v1401_v57 = vadd.f32 %v1353_v34, %v1297_v33  ;;  %v1458_v15 = vmul.f32 %v5510_v39, %v6547_v7  ;;  %v1562_v37 = vmul.f32 %v5515_v43, %v6587_v42  ;;  %v6638_v10 = vld [vmem:[#allocation2 + $0x162] sm:$0xff] }
 0x1dc   :  { %4987 = vmatmul.mubr.msk.f32.gmra.mxu1 %vm699_vm2, %v1966_v45  ;;  %v1712_v20 = vadd.f32 %v1664_v46, %v1608_v1  ;;  %v1194_v61 = vadd.f32 %v1146_v13, %v1046_v23  ;;  %v1666_v40 = vmul.f32 %v5518_v44, %v6603_v4  ;;  %v1770_v6 = vmul.f32 %v6153_v3, %v6608_v26  ;;  %v6647_v1 = vld [vmem:[#allocation2 + $0x168] sm:$0xff] }
 0x1dd   :  { %v1919_v56 = vadd.f32 %v5525_v51, %v1867_v55  ;;  %v1505_v62 = vadd.f32 %v1457_v59, %v1401_v57  ;;  %v999_v58 = vmul.f32 %v5479_v18, %v6515_v32  ;;  %v6631_v46 = vmul.f32 %v5490_v24, %v6617_v9 }
 0x1de   :  { %v1816_v34 = vadd.f32 %v1768_v41, %v1712_v20  ;;  %v1298_v47 = vadd.f32 %v1250_v14, %v1194_v61  ;;  %v1147_v0 = vmul.f32 %v5497_v30, %v6518_v60  ;;  %v1251_v32 = vmul.f32 %v5504_v35, %v6559_v48  ;;  %v6663_v61 = vld [vmem:[#allocation2 + $0x169] sm:$0xff] }
 0x1df   :  { %v1967_v52 = vmax.f32 %v1919_v56, 0.0  ;;  %v1609_v36 = vadd.f32 %v1561_v53, %v1505_v62  ;;  %v1047_v59 = vadd.f32 %v999_v58, %v6524_v29  ;;  %v1355_v13 = vmul.f32 %v5507_v38, %v6574_v28  ;;  %v3673_v62 = vld [vmem:[#allocation11 + $0x8] sm:$0xff] }
 0x1e0   :  { %v1868_v41 = vmul.f32 %v5522_v50, %v1816_v34  ;;  %v1402_v33 = vadd.f32 %v1354_v12, %v1298_v47  ;;  %v1459_v45 = vmul.f32 %v5510_v39, %v6579_v31  ;;  %v1563_v53 = vmul.f32 %v5515_v43, %v6617_v9  ;;  %v6668_v47 = vld [vmem:[#allocation2 + $0x16a] sm:$0xff]  ;;  %5025 = vmatprep.subr.mxu1 %v3673_v62 }
 0x1e1   :  { %4989 = vmatprep.mubr.msk.f32.mxu1 %vm699_vm2, %v1967_v52  ;;  %v1713_v60 = vadd.f32 %v1665_v54, %v1609_v36  ;;  %v1195_v29 = vadd.f32 %v1147_v0, %v1047_v59  ;;  %v1667_v48 = vmul.f32 %v5518_v44, %v6633_v49  ;;  %v1771_v55 = vmul.f32 %v6153_v3, %v6638_v10  ;;  %v6677_v36 = vld [vmem:[#allocation2 + $0x170] sm:$0xff] }
 0x1e2   :  { %v1920_v23 = vadd.f32 %v5525_v51, %v1868_v41  ;;  %v1506_v14 = vadd.f32 %v1458_v15, %v1402_v33  ;;  %v1000_v57 = vmul.f32 %v5479_v18, %v6544_v17  ;;  %v6661_v54 = vmul.f32 %v5490_v24, %v6647_v1  ;;  %5026 = vmatpush3.msra.mxu1 %v3673_v62 }
 0x1e3   :  { %v1817_v12 = vadd.f32 %v1769_v8, %v1713_v60  ;;  %v1299_v20 = vadd.f32 %v1251_v32, %v1195_v29  ;;  %v1148_v56 = vmul.f32 %v5497_v30, %v6547_v7  ;;  %v1252_v17 = vmul.f32 %v5504_v35, %v6587_v42 }
 0x1e4   :  { %v1968_v58 = vmax.f32 %v1920_v23, 0.0  ;;  %v1610_v15 = vadd.f32 %v1562_v37, %v1506_v14  ;;  %v1048_v34 = vadd.f32 %v1000_v57, %v6542_v63  ;;  %v1356_v52 = vmul.f32 %v5507_v38, %v6603_v4  ;;  %v6693_v23 = vld [vmem:[#allocation2 + $0x171] sm:$0xff] }
 0x1e5   :  { %v1869_v8 = vmul.f32 %v5522_v50, %v1817_v12  ;;  %v1403_v0 = vadd.f32 %v1355_v13, %v1299_v20  ;;  %v1460_v7 = vmul.f32 %v5510_v39, %v6608_v26  ;;  %v1564_v42 = vmul.f32 %v5515_v43, %v6647_v1  ;;  %v6698_v20 = vld [vmem:[#allocation2 + $0x172] sm:$0xff] }
 0x1e6   :  { %4990 = vmatmul.mubr.msk.f32.gmra.mxu1 %vm699_vm2, %v1968_v58  ;;  %v1714_v63 = vadd.f32 %v1666_v40, %v1610_v15  ;;  %v1196_v37 = vadd.f32 %v1148_v56, %v1048_v34  ;;  %v1668_v59 = vmul.f32 %v5518_v44, %v6663_v61  ;;  %v1772_v33 = vmul.f32 %v6153_v3, %v6668_v47  ;;  %v6707_v58 = vld [vmem:[#allocation2 + $0x178] sm:$0xff] }
 0x1e7   :  { %v1921_v32 = vadd.f32 %v5525_v51, %v1869_v8  ;;  %v1507_v41 = vadd.f32 %v1459_v45, %v1403_v0  ;;  %v1001_v13 = vmul.f32 %v5479_v18, %v6574_v28  ;;  %v6691_v40 = vmul.f32 %v5490_v24, %v6677_v36 }
 0x1e8   :  { %v1818_v60 = vadd.f32 %v1770_v6, %v1714_v63  ;;  %v1300_v29 = vadd.f32 %v1252_v17, %v1196_v37  ;;  %v1149_v14 = vmul.f32 %v5497_v30, %v6579_v31  ;;  %v1253_v3 = vmul.f32 %v5504_v35, %v6617_v9  ;;  %v6715_v17 = vld [vmem:[#allocation6 + $0x8] ss:$0 sm:$0xff] }
 0x1e9   :  { %v1969_v57 = vmax.f32 %v1921_v32, 0.0  ;;  %v1611_v12 = vadd.f32 %v1563_v53, %v1507_v41  ;;  %v1049_v45 = vadd.f32 %v1001_v13, %v6572_v5  ;;  %v1357_v56 = vmul.f32 %v5507_v38, %v6633_v49  ;;  %v6729_v41 = vld [vmem:[#allocation2 + $0x179] sm:$0xff] }
 0x1ea   :  { %v1870_v28 = vmul.f32 %v5522_v50, %v1818_v60  ;;  %v1404_v6 = vadd.f32 %v1356_v52, %v1300_v29  ;;  %v1461_v62 = vmul.f32 %v5510_v39, %v6638_v10  ;;  %v1565_v53 = vmul.f32 %v5515_v43, %v6677_v36  ;;  %v6735_v29 = vld [vmem:[#allocation2 + $0x17a] sm:$0xff] }
 0x1eb   :  { %4992 = vmatprep.mubr.msk.f32.mxu1 %vm699_vm2, %v1969_v57  ;;  %v1715_v31 = vadd.f32 %v1667_v48, %v1611_v12  ;;  %v1197_v5 = vadd.f32 %v1149_v14, %v1049_v45  ;;  %v1669_v9 = vmul.f32 %v5518_v44, %v6693_v23  ;;  %v6719_v8 = vmul.f32 %v6715_v17, %v6698_v20  ;;  %v3672_v57 = vld [vmem:[#allocation11] sm:$0xff] }
 0x1ec   :  { %v1922_v15 = vadd.f32 %v5525_v51, %v1870_v28  ;;  %v1508_v34 = vadd.f32 %v1460_v7, %v1404_v6  ;;  %v1002_v0 = vmul.f32 %v5479_v18, %v6603_v4  ;;  %v6725_v63 = vmul.f32 %v5490_v24, %v6707_v58  ;;  %5027 = vmatprep.subr.mxu1 %v3672_v57  ;;  %v6747_v28 = vld [vmem:[#allocation2 + $0x180] sm:$0xff] }
 0x1ed   :  { %v1819_v48 = vadd.f32 %v1771_v55, %v1715_v31  ;;  %v1301_v52 = vadd.f32 %v1253_v3, %v1197_v5  ;;  %v1150_v37 = vmul.f32 %v5497_v30, %v6608_v26  ;;  %v1254_v60 = vmul.f32 %v5504_v35, %v6647_v1  ;;  %5028 = vmatpush3.msra.mxu1 %v3672_v57 }
 0x1ee   :  { %v1970_v32 = vmax.f32 %v1922_v15, 0.0  ;;  %v1612_v7 = vadd.f32 %v1564_v42, %v1508_v34  ;;  %v1050_v13 = vadd.f32 %v1002_v0, %v6601_v27  ;;  %v1358_v14 = vmul.f32 %v5507_v38, %v6663_v61  ;;  %v6758_v0 = vld [vmem:[#allocation2 + $0x181] sm:$0xff] }
 0x1ef   :  { %v1871_v4 = vmul.f32 %v5522_v50, %v1819_v48  ;;  %v1405_v55 = vadd.f32 %v1357_v56, %v1301_v52  ;;  %v1462_v26 = vmul.f32 %v5510_v39, %v6668_v47  ;;  %v1566_v27 = vmul.f32 %v5515_v43, %v6707_v58  ;;  %v6761_v48 = vld [vmem:[#allocation2 + $0x182] sm:$0xff] }
 0x1f0   :  { %4993 = vmatmul.mubr.msk.f32.gmra.mxu1 %vm699_vm2, %v1970_v32  ;;  %v1716_v42 = vadd.f32 %v1668_v59, %v1612_v7  ;;  %v1198_v12 = vadd.f32 %v1150_v37, %v1050_v13  ;;  %v1670_v3 = vmul.f32 %v5518_v44, %v6729_v41  ;;  %v1003_v6 = vmul.f32 %v5479_v18, %v6633_v49  ;;  %v6765_v52 = vld [vmem:[#allocation2 + $0x188] sm:$0xff]  ;;  %v6778_v13 = vld [vmem:[#allocation2 + $0x190] sm:$0xff] }
 0x1f1   :  { %v1923_v1 = vadd.f32 %v5525_v51, %v1871_v4  ;;  %v1509_v45 = vadd.f32 %v1461_v62, %v1405_v55  ;;  %v8125_v56 = vmov 0.0   ;;  %v1774_v5 = vmul.f32 %v6715_v17, %v6735_v29  ;;  %v6774_v7 = vld [vmem:[#allocation2 + $0x189] sm:$0xff] }
 0x1f2   :  { %756 = vst.msk [vmem:[#allocation2 + $0x1c0] sm:$0xff] %vm699_vm2, %v8125_v56  ;;  %v1820_v59 = vadd.f32 %v1772_v33, %v1716_v42  ;;  %v1302_v31 = vadd.f32 %v1254_v60, %v1198_v12  ;;  %v1151_v62 = vmul.f32 %v5497_v30, %v6638_v10  ;;  %5089 = vmatprep.subr.mxu0 %v8125_v56  ;;  %v6780_v60 = vld [vmem:[#allocation2 + $0x191] sm:$0xff]  ;;  %v6791_v12 = vld [vmem:[#allocation2 + $0x199] sm:$0xff] }
 0x1f3   :  { %v1971_v15 = vmax.f32 %v1923_v1, 0.0  ;;  %v1613_v34 = vadd.f32 %v1565_v53, %v1509_v45  ;;  %v1051_v49 = vadd.f32 %v1003_v6, %v6631_v46  ;;  %v1255_v33 = vmul.f32 %v5504_v35, %v6677_v36  ;;  %v6776_v46 = vld [vmem:[#allocation2 + $0x18a] sm:$0xff]  ;;  %v6782_v36 = vld [vmem:[#allocation2 + $0x198] sm:$0xff]  ;;  %2637 = vst.msk [vmem:[#allocation2 + $0x180] sm:$0xff] %vm2588_vm3, %v8125_v56 }
 0x1f4   :  { %v1872_v37 = vmul.f32 %v5522_v50, %v1820_v59  ;;  %v1406_v32 = vadd.f32 %v1358_v14, %v1302_v31  ;;  %v6770_v10 = vmul.f32 %v5490_v24, %v6747_v28  ;;  %v1359_v53 = vmul.f32 %v5507_v38, %v6693_v23  ;;  %v6789_v42 = vld [vmem:[#allocation2 + $0x192] sm:$0xff]  ;;  %v6793_v1 = vld [vmem:[#allocation2 + $0x19a] sm:$0xff]  ;;  %2638 = vst.msk [vmem:[#allocation2 + $0x188] sm:$0xff] %vm2588_vm3, %v8125_v56 }
 0x1f5   :  { %4995 = vmatprep.mubr.msk.f32.mxu1 %vm699_vm2, %v1971_v15  ;;  %v1717_v4 = vadd.f32 %v1669_v9, %v1613_v34  ;;  %v1199_v55 = vadd.f32 %v1151_v62, %v1051_v49  ;;  %v1463_v14 = vmul.f32 %v5510_v39, %v6698_v20  ;;  %v1567_v57 = vmul.f32 %v5515_v43, %v6747_v28  ;;  %v6798_v9 = vld [vmem:[#allocation2 + $0x1a0] sm:$0xff] }
 0x1f6   :  { %v1924_v45 = vadd.f32 %v5525_v51, %v1872_v37  ;;  %v1510_v6 = vadd.f32 %v1462_v26, %v1406_v32  ;;  %v1671_v59 = vmul.f32 %v5518_v44, %v6758_v0  ;;  %v6800_v31 = vld [vmem:[#allocation2 + $0x1a1] sm:$0xff]  ;;  %v1775_v49 = vmul.f32 %v6715_v17, %v6761_v48  ;;  %2639 = vst.msk [vmem:[#allocation2 + $0x190] sm:$0xff] %vm2588_vm3, %v8125_v56 }
 0x1f7   :  { %v6802_v62 = vld [vmem:[#allocation2 + $0x1a2] sm:$0xff]  ;;  %v1821_v15 = vadd.f32 %v6719_v8, %v1717_v4  ;;  %v1303_v34 = vadd.f32 %v1255_v33, %v1199_v55  ;;  %v1004_v26 = vmul.f32 %v5479_v18, %v6663_v61  ;;  %2640 = vst.msk [vmem:[#allocation2 + $0x198] sm:$0xff] %vm2588_vm3, %v8125_v56  ;;  %v6821_v37 = vmul.f32 %v5490_v24, %v6765_v52 }
 0x1f8   :  { %2641 = vst.msk [vmem:[#allocation2 + $0x1a0] sm:$0xff] %vm2588_vm3, %v8125_v56  ;;  %v1972_v8 = vmax.f32 %v1924_v45, 0.0  ;;  %v1614_v33 = vadd.f32 %v1566_v27, %v1510_v6  ;;  %v1152_v61 = vmul.f32 %v5497_v30, %v6668_v47  ;;  %v1256_v25 = vmul.f32 %v5504_v35, %v6707_v58 }
 0x1f9   :  { %v1873_v32 = vmul.f32 %v5522_v50, %v1821_v15  ;;  %v1407_v4 = vadd.f32 %v1359_v53, %v1303_v34  ;;  %v1052_v55 = vadd.f32 %v1004_v26, %v6661_v54  ;;  %v1360_v27 = vmul.f32 %v5507_v38, %v6729_v41 }
 0x1fa   :  { %4996 = vmatmul.mubr.msk.f32.gmra.mxu1 %vm699_vm2, %v1972_v8  ;;  %v1718_v56 = vadd.f32 %v1670_v3, %v1614_v33  ;;  %v1464_v45 = vmul.f32 %v5510_v39, %v6735_v29  ;;  %v1568_v47 = vmul.f32 %v5515_v43, %v6765_v52  ;;  %v1672_v54 = vmul.f32 %v5518_v44, %v6774_v7 }
 0x1fb   :  { %v1925_v6 = vadd.f32 %v5525_v51, %v1873_v32  ;;  %v1511_v53 = vadd.f32 %v1463_v14, %v1407_v4  ;;  %v1200_v15 = vadd.f32 %v1152_v61, %v1052_v55  ;;  %v1776_v3 = vmul.f32 %v6715_v17, %v6776_v46 }
 0x1fc   :  { %v1822_v58 = vadd.f32 %v1774_v5, %v1718_v56  ;;  %v6843_v34 = vmul.f32 %v5490_v24, %v6778_v13  ;;  %v1005_v26 = vmul.f32 %v5479_v18, %v6693_v23  ;;  %v1153_v14 = vmul.f32 %v5497_v30, %v6698_v20 }
 0x1fd   :  { %v1973_v8 = vmax.f32 %v1925_v6, 0.0  ;;  %v1615_v33 = vadd.f32 %v1567_v57, %v1511_v53  ;;  %v1304_v22 = vadd.f32 %v1256_v25, %v1200_v15  ;;  %v1257_v5 = vmul.f32 %v5504_v35, %v6747_v28 }
 0x1fe   :  { %v1874_v61 = vmul.f32 %v5522_v50, %v1822_v58  ;;  %v1053_v56 = vadd.f32 %v1005_v26, %v6691_v40  ;;  %v1361_v32 = vmul.f32 %v5507_v38, %v6758_v0  ;;  %v1465_v25 = vmul.f32 %v5510_v39, %v6761_v48 }
 0x1ff   :  { %4998 = vmatprep.mubr.msk.f32.mxu1 %vm699_vm2, %v1973_v8  ;;  %v1719_v4 = vadd.f32 %v1671_v59, %v1615_v33  ;;  %v1408_v23 = vadd.f32 %v1360_v27, %v1304_v22  ;;  %v1569_v20 = vmul.f32 %v5515_v43, %v6778_v13  ;;  %v1673_v40 = vmul.f32 %v5518_v44, %v6780_v60 }
 0x200   :  { %v1926_v57 = vadd.f32 %v5525_v51, %v1874_v61  ;;  %v1201_v55 = vadd.f32 %v1153_v14, %v1053_v56  ;;  %v1006_v28 = vmul.f32 %v5479_v18, %v6729_v41  ;;  %v1777_v22 = vmul.f32 %v6715_v17, %v6789_v42  ;;  %v6889_v56 = vpop.f32.mrf.mxu1 }
 0x201   :  { %v1823_v6 = vadd.f32 %v1775_v49, %v1719_v4  ;;  %v1512_v53 = vadd.f32 %v1464_v45, %v1408_v23  ;;  %v6869_v59 = vmul.f32 %v5490_v24, %v6782_v36  ;;  %v1154_v26 = vmul.f32 %v5497_v30, %v6735_v29 }
 0x202   :  { %v1974_v27 = vmax.f32 %v1926_v57, 0.0  ;;  %v1305_v15 = vadd.f32 %v1257_v5, %v1201_v55  ;;  %v1054_v58 = vadd.f32 %v1006_v28, %v6725_v63  ;;  %v1258_v41 = vmul.f32 %v5504_v35, %v6765_v52 }
 0x203   :  { %v1875_v8 = vmul.f32 %v5522_v50, %v1823_v6  ;;  %v1616_v33 = vadd.f32 %v1568_v47, %v1512_v53  ;;  %v1362_v49 = vmul.f32 %v5507_v38, %v6774_v7  ;;  %v1466_v14 = vmul.f32 %v5510_v39, %v6776_v46 }
 0x204   :  { %4999 = vmatmul.mubr.msk.f32.gmra.mxu1 %vm699_vm2, %v1974_v27  ;;  %v1409_v24 = vadd.f32 %v1361_v32, %v1305_v15  ;;  %v1202_v45 = vadd.f32 %v1154_v26, %v1054_v58  ;;  %v1570_v63 = vmul.f32 %v5515_v43, %v6782_v36  ;;  %v1674_v47 = vmul.f32 %v5518_v44, %v6791_v12 }
 0x205   :  { %v1927_v29 = vadd.f32 %v5525_v51, %v1875_v8  ;;  %v1720_v61 = vadd.f32 %v1672_v54, %v1616_v33  ;;  %v1007_v52 = vmul.f32 %v5479_v18, %v6758_v0  ;;  %v1778_v4 = vmul.f32 %v6715_v17, %v6793_v1 }
 0x206   :  { %v1513_v5 = vadd.f32 %v1465_v25, %v1409_v24  ;;  %v1306_v32 = vadd.f32 %v1258_v41, %v1202_v45  ;;  %v1155_v23 = vmul.f32 %v5497_v30, %v6761_v48  ;;  %v1259_v28 = vmul.f32 %v5504_v35, %v6778_v13  ;;  %v1210_v24 = vld [vmem:[#allocation2 + $0x1a8] sm:$0xff] }
 0x207   :  { %v1975_v57 = vmax.f32 %v1927_v29, 0.0  ;;  %v1824_v55 = vadd.f32 %v1776_v3, %v1720_v61  ;;  %v1055_v54 = vadd.f32 %v1007_v52, %v6770_v10  ;;  %v6900_v0 = vmul.f32 %v5504_v35, %v6798_v9  ;;  %v6912_v3 = vpop.f32.mrf.mxu1  ;;  %v1314_v61 = vld [vmem:[#allocation2 + $0x1a9] sm:$0xff] }
 0x208   :  { %v1617_v6 = vadd.f32 %v1569_v20, %v1513_v5  ;;  %v1410_v53 = vadd.f32 %v1362_v49, %v1306_v32  ;;  %v1363_v25 = vmul.f32 %v5507_v38, %v6780_v60  ;;  %v6908_v10 = vmul.f32 %v5507_v38, %v6800_v31  ;;  %v1418_v32 = vld [vmem:[#allocation2 + $0x1aa] sm:$0xff] }
 0x209   :  { %5001 = vmatprep.mubr.msk.f32.mxu1 %vm699_vm2, %v1975_v57  ;;  %v1876_v48 = vmul.f32 %v5522_v50, %v1824_v55  ;;  %v1203_v27 = vadd.f32 %v1155_v23, %v1055_v54  ;;  %v1467_v13 = vmul.f32 %v5510_v39, %v6789_v42  ;;  %v6916_v58 = vmul.f32 %v5510_v39, %v6802_v62  ;;  %v4946_v23 = vpop.f32.mrf.mxu1 }
 0x20a   :  { %v1721_v20 = vadd.f32 %v1673_v40, %v1617_v6  ;;  %v1514_v15 = vadd.f32 %v1466_v14, %v1410_v53  ;;  %v1571_v26 = vmul.f32 %v5515_v43, %v6798_v9  ;;  %v1675_v41 = vmul.f32 %v5518_v44, %v6800_v31 }
 0x20b   :  { %v1928_v8 = vadd.f32 %v5525_v51, %v1876_v48  ;;  %v1307_v33 = vadd.f32 %v1259_v28, %v1203_v27  ;;  %v1008_v49 = vmul.f32 %v5479_v18, %v6774_v7  ;;  %v1779_v14 = vmul.f32 %v6715_v17, %v6802_v62  ;;  %v1729_v27 = vld [vmem:[#allocation2 + $0x1b2] sm:$0xff] }
 0x20c   :  { %v1825_v45 = vadd.f32 %v1777_v22, %v1721_v20  ;;  %v1618_v40 = vadd.f32 %v1570_v63, %v1514_v15  ;;  %v1156_v29 = vmul.f32 %v5497_v30, %v6776_v46  ;;  %v1260_v31 = vmul.f32 %v5504_v35, %v6782_v36 }
 0x20d   :  { %v1976_v9 = vmax.f32 %v1928_v8, 0.0  ;;  %v1411_v52 = vadd.f32 %v1363_v25, %v1307_v33  ;;  %v1056_v5 = vadd.f32 %v1008_v49, %v6821_v37  ;;  %v1262_v63 = vmul.f32 %v5504_v35, %v1210_v24 }
 0x20e   :  { %v1877_v7 = vmul.f32 %v5522_v50, %v1825_v45  ;;  %v1722_v22 = vadd.f32 %v1674_v47, %v1618_v40  ;;  %v1364_v62 = vmul.f32 %v5507_v38, %v6791_v12  ;;  %v1366_v55 = vmul.f32 %v5507_v38, %v1314_v61  ;;  %v1521_v47 = vld [vmem:[#allocation2 + $0x1b0] sm:$0xff] }
 0x20f   :  { %5002 = vmatmul.mubr.msk.f32.gmra.mxu1 %vm699_vm2, %v1976_v9  ;;  %v1515_v46 = vadd.f32 %v1467_v13, %v1411_v52  ;;  %v1204_v57 = vadd.f32 %v1156_v29, %v1056_v5  ;;  %v1468_v37 = vmul.f32 %v5510_v39, %v6793_v1  ;;  %v6942_v28 = vmul.f32 %v5510_v39, %v1418_v32  ;;  %v1625_v38 = vld [vmem:[#allocation2 + $0x1b1] sm:$0xff]  ;;  %v2207_v13 = vpop.f32.mrf.mxu1 }
 0x210   :  { %v1929_v36 = vadd.f32 %v5525_v51, %v1877_v7  ;;  %v1826_v54 = vadd.f32 %v1778_v4, %v1722_v22  ;;  %v1572_v35 = vmul.f32 %v5515_v43, %v1210_v24  ;;  %v1676_v25 = vmul.f32 %v5518_v44, %v1314_v61  ;;  %v1522_v24 = vld [vmem:[#allocation2 + $0x1b8] sm:$0xff] }
 0x211   :  { %v1619_v6 = vadd.f32 %v1571_v26, %v1515_v46  ;;  %v1308_v53 = vadd.f32 %v1260_v31, %v1204_v57  ;;  %v1009_v48 = vmul.f32 %v5479_v18, %v6780_v60  ;;  %v1780_v4 = vmul.f32 %v6715_v17, %v1418_v32  ;;  %v4949_v9 = vpop.f32.mrf.mxu1  ;;  %v6966_v32 = vld [vmem:[#allocation12] sm:$0xff] }
 0x212   :  { %v1977_v20 = vmax.f32 %v1929_v36, 0.0  ;;  %v1878_v15 = vmul.f32 %v5522_v50, %v1826_v54  ;;  %v1157_v39 = vmul.f32 %v5497_v30, %v6789_v42  ;;  %v1573_v49 = vmul.f32 %v5515_v43, %v1521_v47 }
 0x213   :  { %v1723_v8 = vadd.f32 %v1675_v41, %v1619_v6  ;;  %v1412_v33 = vadd.f32 %v1364_v62, %v1308_v53  ;;  %v1057_v26 = vadd.f32 %v1009_v48, %v6843_v34  ;;  %v1677_v45 = vmul.f32 %v5518_v44, %v1625_v38  ;;  %v1730_v48 = vld [vmem:[#allocation2 + $0x1ba] sm:$0xff] }
 0x214   :  { %5004 = vmatprep.mubr.msk.f32.mxu1 %vm699_vm2, %v1977_v20  ;;  %v1930_v60 = vadd.f32 %v5525_v51, %v1878_v15  ;;  %v6958_v40 = vmul.f32 %v6715_v17, %v1729_v27  ;;  %v1010_v29 = vmul.f32 %v5479_v18, %v6791_v12  ;;  %v1158_v34 = vmul.f32 %v5497_v30, %v6793_v1 }
 0x215   :  { %v1827_v42 = vadd.f32 %v1779_v14, %v1723_v8  ;;  %v1516_v41 = vadd.f32 %v1468_v37, %v1412_v33  ;;  %v1205_v61 = vadd.f32 %v1157_v39, %v1057_v26  ;;  %v1574_v31 = vmul.f32 %v5515_v43, %v1522_v24  ;;  %v2217_v37 = vpop.f32.mrf.mxu1 }
 0x216   :  { %v1978_v52 = vmax.f32 %v1930_v60, 0.0  ;;  %v1058_v5 = vadd.f32 %v1010_v29, %v6869_v59  ;;  %v6970_v7 = vrot.slane %v6966_v32, %v5481_v19  ;;  %v6976_v30 = vrot.slane %v6966_v32, %v5483_v21 }
 0x217   :  { %v1879_v18 = vmul.f32 %v5522_v50, %v1827_v42  ;;  %v1620_v12 = vadd.f32 %v1572_v35, %v1516_v41  ;;  %v1309_v14 = vadd.f32 %v6900_v0, %v1205_v61  ;;  %v2642_v41 = vld [vmem:[#allocation9] sm:$0xff] }
 0x218   :  { %5005 = vmatmul.mubr.msk.f32.gmra.mxu1 %vm699_vm2, %v1978_v52  ;;  %v1206_v1 = vadd.f32 %v1158_v34, %v1058_v5  ;;  %v2441_v43 = vmul.f32 %v6889_v56, %v6970_v7  ;;  %v2440_v59 = vmul.f32 %v6970_v7, %v6912_v3  ;;  %v2443_v22 = vmul.f32 %v4946_v23, %v6970_v7  ;;  %v1626_v23 = vld [vmem:[#allocation2 + $0x1b9] sm:$0xff] }
 0x219   :  { %v1931_v62 = vadd.f32 %v5525_v51, %v1879_v18  ;;  %v1724_v46 = vadd.f32 %v1676_v25, %v1620_v12  ;;  %v1413_v0 = vadd.f32 %v6908_v10, %v1309_v14  ;;  %v2442_v57 = vmul.f32 %v6970_v7, %v2207_v13 }
 0x21a   :  { %v1310_v36 = vadd.f32 %v1262_v63, %v1206_v1  ;;  %v2493_v54 = vadd.f32 %v6976_v30, %v2441_v43  ;;  %v2492_v35 = vadd.f32 %v6976_v30, %v2440_v59  ;;  %v2495_v56 = vadd.f32 %v6976_v30, %v2443_v22 }
 0x21b   :  { %v1979_v47 = vmax.f32 %v1931_v62, 0.0  ;;  %v1828_v6 = vadd.f32 %v1780_v4, %v1724_v46  ;;  %v1517_v3 = vadd.f32 %v6916_v58, %v1413_v0  ;;  %v2494_v53 = vadd.f32 %v6976_v30, %v2442_v57  ;;  %v8132_v57 = vld [vmem:[#allocation20_spill] sm:$0xff] }
 0x21c   :  { %v1414_v25 = vadd.f32 %v1366_v55, %v1310_v36  ;;  %v2541_v10 = vmax.f32 %v2493_v54, 0.0  ;;  %v2540_v38 = vmax.f32 %v2492_v35, 0.0  ;;  %v2543_v27 = vmax.f32 %v2495_v56, 0.0  ;;  %v4952_v39 = vpop.f32.mrf.mxu1  ;;  %v8134_v54 = vld [vmem:[#allocation22_spill] sm:$0xff] }
 0x21d   :  { %5007 = vmatprep.mubr.msk.f32.mxu1 %vm699_vm2, %v1979_v47  ;;  %v1880_v63 = vmul.f32 %v5522_v50, %v1828_v6  ;;  %v1621_v13 = vadd.f32 %v1573_v49, %v1517_v3  ;;  %v2542_v20 = vmax.f32 %v2494_v53, 0.0  ;;  %v2445_v15 = vmul.f32 %v4949_v9, %v6970_v7 }
 0x21e   :  { %v1518_v4 = vadd.f32 %v6942_v28, %v1414_v25  ;;  %v1678_v58 = vmul.f32 %v5518_v44, %v1626_v23  ;;  %2590 = vst.msk [vmem:[#allocation2 + $0x8] sm:$0xff] %vm2588_vm3, %v2541_v10  ;;  %2589 = vst.msk [vmem:[#allocation2] sm:$0xff] %vm2588_vm3, %v2540_v38  ;;  %v2444_v55 = vmul.f32 %v6970_v7, %v2217_v37  ;;  %v2227_v44 = vpop.f32.mrf.mxu1  ;;  %v8133_v37 = vld [vmem:[#allocation21_spill] sm:$0xff] }
 0x21f   :  { %2592 = vst.msk [vmem:[#allocation2 + $0x18] sm:$0xff] %vm2588_vm3, %v2543_v27  ;;  %v2447_v8 = vmul.f32 %v4952_v39, %v6970_v7  ;;  %v1932_v33 = vadd.f32 %v5525_v51, %v1880_v63  ;;  %v1725_v26 = vadd.f32 %v1677_v45, %v1621_v13  ;;  %v1782_v49 = vmul.f32 %v6715_v17, %v1730_v48 }
 0x220   :  { %2591 = vst.msk [vmem:[#allocation2 + $0x10] sm:$0xff] %vm2588_vm3, %v2542_v20  ;;  %v2497_v28 = vadd.f32 %v6976_v30, %v2445_v15  ;;  %v1622_v24 = vadd.f32 %v1574_v31, %v1518_v4  ;;  %v2496_v60 = vadd.f32 %v6976_v30, %v2444_v55  ;;  %v2446_v42 = vmul.f32 %v6970_v7, %v2227_v44 }
 0x221   :  { %v2499_v29 = vadd.f32 %v6976_v30, %v2447_v8  ;;  %v1980_v61 = vmax.f32 %v1932_v33, 0.0  ;;  %v1829_v34 = vadd.f32 %v6958_v40, %v1725_v26  ;;  %v7011_v45 = vrot.slane %v2642_v41, %v5470_v11 }
 0x222   :  { %v2545_v9 = vmax.f32 %v2497_v28, 0.0  ;;  %v1726_v17 = vadd.f32 %v1678_v58, %v1622_v24  ;;  %v2544_v52 = vmax.f32 %v2496_v60, 0.0  ;;  %v2498_v18 = vadd.f32 %v6976_v30, %v2446_v42 }
 0x223   :  { %v2547_v5 = vmax.f32 %v2499_v29, 0.0  ;;  %5008 = vmatmul.mubr.msk.f32.gmra.mxu1 %vm699_vm2, %v1980_v61  ;;  %v1881_v31 = vmul.f32 %v5522_v50, %v1829_v34  ;;  %v7018_v12 = vrot.slane %v2642_v41, %v5460_v2  ;;  %v7021_v40 = vrot.slane %v2642_v41, %v5474_v16 }
 0x224   :  { %2594 = vst.msk [vmem:[#allocation2 + $0x28] sm:$0xff] %vm2588_vm3, %v2545_v9  ;;  %v1830_v14 = vadd.f32 %v1782_v49, %v1726_v17  ;;  %2593 = vst.msk [vmem:[#allocation2 + $0x20] sm:$0xff] %vm2588_vm3, %v2544_v52  ;;  %v2546_v1 = vmax.f32 %v2498_v18, 0.0  ;;  %v7026_v43 = vrot.slane %v2642_v41, %v5481_v19  ;;  %v7029_v59 = vrot.slane %v2642_v41, %v5483_v21  ;;  %v7080_v18 = vld [vmem:[#allocation9 + $0x8] ss:$0 sm:$0xff] }
 0x225   :  { %2596 = vst.msk [vmem:[#allocation2 + $0x38] sm:$0xff] %vm2588_vm3, %v2547_v5  ;;  %v1933_v22 = vadd.f32 %v5525_v51, %v1881_v31  ;;  %v2644_v62 = vld [vmem:[#allocation2] sm:$0xff]  ;;  %v7033_v16 = vrot.slane %v2642_v41, %v8132_v57  ;;  %v7036_v36 = vrot.slane %v2642_v41, %v8133_v37  ;;  %v7039_v35 = vrot.slane %v2642_v41, %v8134_v54  ;;  %v2645_v38 = vld [vmem:[#allocation2 + $0x8] sm:$0xff] }
 0x226   :  { %v2768_v46 = vld [vmem:[#allocation2 + $0x1] sm:$0xff]  ;;  %v1882_v19 = vmul.f32 %v5522_v50, %v1830_v14  ;;  %2595 = vst.msk [vmem:[#allocation2 + $0x30] sm:$0xff] %vm2588_vm3, %v2546_v1  ;;  %v2688_v56 = vmul.f32 %v7018_v12, %v2644_v62  ;;  %v7047_v23 = vrot.slane %v6966_v32, %v8132_v57  ;;  %v4955_v25 = vpop.f32.mrf.mxu1  ;;  %v7055_v10 = vrot.slane %v6966_v32, %v8133_v37  ;;  %v7069_v28 = vld [vmem:[#allocation2 + $0x18] sm:$0xff] }
 0x227   :  { %v2892_v0 = vld [vmem:[#allocation2 + $0x2] sm:$0xff]  ;;  %v2646_v21 = vld [vmem:[#allocation2 + $0x10] sm:$0xff]  ;;  %v2812_v6 = vmul.f32 %v7011_v45, %v2768_v46  ;;  %v1981_v53 = vmax.f32 %v1933_v22, 0.0  ;;  %v2449_v13 = vmul.f32 %v4955_v25, %v6970_v7  ;;  %v2689_v32 = vmul.f32 %v7018_v12, %v2645_v38 }
 0x228   :  { %v2770_v47 = vld [vmem:[#allocation2 + $0x11] sm:$0xff]  ;;  %v7050_v48 = vmul.f32 %v7018_v12, %v2646_v21  ;;  %v2936_v50 = vmul.f32 %v7021_v40, %v2892_v0  ;;  %v2769_v27 = vld [vmem:[#allocation2 + $0x9] sm:$0xff]  ;;  %v1934_v63 = vadd.f32 %v5525_v51, %v1882_v19  ;;  %v2237_v4 = vpop.f32.mrf.mxu1  ;;  %v3024_v55 = vmul.f32 %v7026_v43, %v2646_v21 }
 0x229   :  { %v2894_v3 = vld [vmem:[#allocation2 + $0x12] sm:$0xff]  ;;  %v2814_v20 = vmul.f32 %v7011_v45, %v2770_v47  ;;  %v2852_v15 = vadd.f32 %v2812_v6, %v2688_v56  ;;  %v2893_v39 = vld [vmem:[#allocation2 + $0xa] sm:$0xff]  ;;  %5010 = vmatprep.mubr.msk.f32.mxu1 %vm699_vm2, %v1981_v53  ;;  %v2813_v8 = vmul.f32 %v7011_v45, %v2769_v27  ;;  %v2501_v51 = vadd.f32 %v6976_v30, %v2449_v13 }
 0x22a   :  { %v7062_v58 = vmul.f32 %v7021_v40, %v2894_v3  ;;  %v1982_v33 = vmax.f32 %v1934_v63, 0.0  ;;  %v2448_v26 = vmul.f32 %v6970_v7, %v2237_v4  ;;  %v3112_v42 = vmul.f32 %v7029_v59, %v2770_v47 }
 0x22b   :  { %v2976_v49 = vadd.f32 %v2936_v50, %v2852_v15  ;;  %v7071_v44 = vld [vmem:[#allocation2 + $0x28] sm:$0xff]  ;;  %v2648_v24 = vld [vmem:[#allocation2 + $0x20] sm:$0xff]  ;;  %v3200_v41 = vmul.f32 %v7033_v16, %v2894_v3  ;;  %v2853_v61 = vadd.f32 %v2813_v8, %v2689_v32  ;;  %v2937_v34 = vmul.f32 %v7021_v40, %v2893_v39 }
 0x22c   :  { %v2772_v60 = vld [vmem:[#allocation2 + $0x21] sm:$0xff]  ;;  %5011 = vmatmul.mubr.msk.f32.gmra.mxu1 %vm699_vm2, %v1982_v33  ;;  %v2549_v9 = vmax.f32 %v2501_v51, 0.0  ;;  %v2500_v17 = vadd.f32 %v6976_v30, %v2448_v26  ;;  %v2692_v52 = vmul.f32 %v7018_v12, %v2648_v24  ;;  %v2771_v1 = vld [vmem:[#allocation2 + $0x19] sm:$0xff]  ;;  %v3025_v22 = vmul.f32 %v7026_v43, %v7069_v28 }
 0x22d   :  { %v2896_v29 = vld [vmem:[#allocation2 + $0x22] sm:$0xff]  ;;  %v2816_v5 = vmul.f32 %v7011_v45, %v2772_v60  ;;  %v3064_v14 = vadd.f32 %v3024_v55, %v2976_v49  ;;  %v3289_v62 = vmul.f32 %v7036_v36, %v7071_v44  ;;  %v3026_v57 = vmul.f32 %v7026_v43, %v2648_v24  ;;  %v2895_v19 = vld [vmem:[#allocation2 + $0x1a] sm:$0xff]  ;;  %v2650_v21 = vld [vmem:[#allocation2 + $0x30] sm:$0xff] }
 0x22e   :  { %v2940_v31 = vmul.f32 %v7021_v40, %v2896_v29  ;;  %2598 = vst.msk [vmem:[#allocation2 + $0x48] sm:$0xff] %vm2588_vm3, %v2549_v9  ;;  %v2548_v46 = vmax.f32 %v2500_v17, 0.0  ;;  %v3114_v37 = vmul.f32 %v7029_v59, %v2772_v60  ;;  %v3202_v47 = vmul.f32 %v7033_v16, %v2896_v29  ;;  %v7092_v3 = vld [vmem:[#allocation2 + $0x29] sm:$0xff]  ;;  %v2774_v50 = vld [vmem:[#allocation2 + $0x31] sm:$0xff] }
 0x22f   :  { %v2856_v0 = vadd.f32 %v2816_v5, %v2692_v52  ;;  %v3152_v56 = vadd.f32 %v3112_v42, %v3064_v14  ;;  %v3288_v6 = vmul.f32 %v7036_v36, %v2648_v24  ;;  %v7094_v53 = vld [vmem:[#allocation2 + $0x2a] sm:$0xff]  ;;  %v2977_v25 = vadd.f32 %v2937_v34, %v2853_v61  ;;  %v2898_v15 = vld [vmem:[#allocation2 + $0x32] sm:$0xff] }
 0x230   :  { %2597 = vst.msk [vmem:[#allocation2 + $0x40] sm:$0xff] %vm2588_vm3, %v2548_v46  ;;  %v3376_v27 = vmul.f32 %v7039_v35, %v2772_v60  ;;  %v3464_v63 = vmul.f32 %v7080_v18, %v2896_v29  ;;  %v3113_v13 = vmul.f32 %v7029_v59, %v2771_v1  ;;  %v3201_v55 = vmul.f32 %v7033_v16, %v2895_v19 }
 0x231   :  { %v7097_v38 = vadd.f32 %v2940_v31, %v2856_v0  ;;  %v3240_v39 = vadd.f32 %v3200_v41, %v3152_v56  ;;  %v3065_v4 = vadd.f32 %v3025_v22, %v2977_v25  ;;  %v2694_v32 = vmul.f32 %v7018_v12, %v2650_v21  ;;  %v4958_v8 = vpop.f32.mrf.mxu1  ;;  %v2651_v31 = vld [vmem:[#allocation2 + $0x38] sm:$0xff] }
 0x232   :  { %v3377_v33 = vmul.f32 %v7039_v35, %v7092_v3  ;;  %v3465_v51 = vmul.f32 %v7080_v18, %v7094_v53  ;;  %v2818_v26 = vmul.f32 %v7011_v45, %v2774_v50  ;;  %v2854_v49 = vadd.f32 %v2814_v20, %v7050_v48 }
 0x233   :  { %v2451_v24 = vmul.f32 %v4958_v8, %v6970_v7  ;;  %v3328_v60 = vadd.f32 %v3288_v6, %v3240_v39  ;;  %v3153_v29 = vadd.f32 %v3113_v13, %v3065_v4  ;;  %v2942_v42 = vmul.f32 %v7021_v40, %v2898_v15  ;;  %v2247_v41 = vpop.f32.mrf.mxu1 }
 0x234   :  { %v2858_v61 = vadd.f32 %v2818_v26, %v2694_v32  ;;  %v2978_v34 = vadd.f32 %v7062_v58, %v2854_v49  ;;  %v7114_v9 = vmul.f32 %v7026_v43, %v2650_v21  ;;  %v7117_v17 = vmul.f32 %v7029_v59, %v2774_v50 }
 0x235   :  { %v2503_v52 = vadd.f32 %v6976_v30, %v2451_v24  ;;  %v2450_v48 = vmul.f32 %v6970_v7, %v2247_v41  ;;  %v3416_v20 = vadd.f32 %v3376_v27, %v3328_v60  ;;  %v3241_v5 = vadd.f32 %v3201_v55, %v3153_v29 }
 0x236   :  { %v7121_v14 = vadd.f32 %v2942_v42, %v2858_v61  ;;  %v3066_v22 = vadd.f32 %v3026_v57, %v2978_v34  ;;  %v7124_v46 = vmul.f32 %v7033_v16, %v2898_v15  ;;  %v3290_v58 = vmul.f32 %v7036_v36, %v2650_v21 }
 0x237   :  { %v2551_v0 = vmax.f32 %v2503_v52, 0.0  ;;  %v2502_v56 = vadd.f32 %v6976_v30, %v2450_v48  ;;  %v3504_v6 = vadd.f32 %v3464_v63, %v3416_v20  ;;  %v3329_v25 = vadd.f32 %v3289_v62, %v3241_v5  ;;  %v2775_v13 = vld [vmem:[#allocation2 + $0x39] sm:$0xff]  ;;  %v2776_v5 = vld [vmem:[#allocation2 + $0x41] sm:$0xff] }
 0x238   :  { %v3154_v39 = vadd.f32 %v3114_v37, %v3066_v22  ;;  %v2691_v27 = vmul.f32 %v7018_v12, %v7069_v28  ;;  %v2695_v4 = vmul.f32 %v7018_v12, %v2651_v31  ;;  %v2815_v55 = vmul.f32 %v7011_v45, %v2771_v1  ;;  %v2899_v26 = vld [vmem:[#allocation2 + $0x3a] sm:$0xff] }
 0x239   :  { %2600 = vst.msk [vmem:[#allocation2 + $0x58] sm:$0xff] %vm2588_vm3, %v2551_v0  ;;  %v2550_v57 = vmax.f32 %v2502_v56, 0.0  ;;  %v3548_v32 = vmul.f32 %v7047_v23, %v3504_v6  ;;  %v3417_v21 = vadd.f32 %v3377_v33, %v3329_v25  ;;  %v2819_v8 = vmul.f32 %v7011_v45, %v2775_v13  ;;  %v2652_v20 = vld [vmem:[#allocation2 + $0x40] sm:$0xff] }
 0x23a   :  { %v3242_v63 = vadd.f32 %v3202_v47, %v3154_v39  ;;  %v3378_v62 = vmul.f32 %v7039_v35, %v2774_v50  ;;  %v2855_v37 = vadd.f32 %v2815_v55, %v2691_v27  ;;  %v2939_v49 = vmul.f32 %v7021_v40, %v2895_v19  ;;  %v2900_v55 = vld [vmem:[#allocation2 + $0x42] sm:$0xff] }
 0x23b   :  { %2599 = vst.msk [vmem:[#allocation2 + $0x50] sm:$0xff] %vm2588_vm3, %v2550_v57  ;;  %v3592_v28 = vadd.f32 %v7055_v10, %v3548_v32  ;;  %v3505_v1 = vadd.f32 %v3465_v51, %v3417_v21  ;;  %v3466_v24 = vmul.f32 %v7080_v18, %v2898_v15  ;;  %v2859_v60 = vadd.f32 %v2819_v8, %v2695_v4 }
 0x23c   :  { %v3330_v29 = vadd.f32 %v3290_v58, %v3242_v63  ;;  %v2943_v33 = vmul.f32 %v7021_v40, %v2899_v26  ;;  %v2979_v42 = vadd.f32 %v2939_v49, %v2855_v37  ;;  %v3027_v47 = vmul.f32 %v7026_v43, %v7071_v44 }
 0x23d   :  { %v4961_v41 = vpop.f32.mrf.mxu1  ;;  %v3632_v50 = vmax.f32 %v3592_v28, 0.0  ;;  %v3549_v61 = vmul.f32 %v7047_v23, %v3505_v1  ;;  %v7145_v19 = vmul.f32 %v7026_v43, %v2651_v31  ;;  %v3115_v51 = vmul.f32 %v7029_v59, %v7092_v3 }
 0x23e   :  { %v2453_v15 = vmul.f32 %v4961_v41, %v6970_v7  ;;  %v3418_v34 = vadd.f32 %v3378_v62, %v3330_v29  ;;  %v7150_v52 = vadd.f32 %v2943_v33, %v2859_v60  ;;  %v3067_v48 = vadd.f32 %v3027_v47, %v2979_v42 }
 0x23f   :  { %v2257_v22 = vpop.f32.mrf.mxu1  ;;  %5029 = vmatprep.mubr.msk.f32.mxu1 %vm2588_vm3, %v3632_v50  ;;  %v3593_v58 = vadd.f32 %v7055_v10, %v3549_v61  ;;  %v7155_v0 = vmul.f32 %v7029_v59, %v2775_v13  ;;  %v3203_v56 = vmul.f32 %v7033_v16, %v7094_v53  ;;  %v7160_v6 = vmul.f32 %v7033_v16, %v2899_v26  ;;  %v2653_v61 = vld [vmem:[#allocation2 + $0x48] sm:$0xff] }
 0x240   :  { %v2505_v25 = vadd.f32 %v6976_v30, %v2453_v15  ;;  %v2452_v39 = vmul.f32 %v6970_v7, %v2257_v22  ;;  %v3506_v27 = vadd.f32 %v3466_v24, %v3418_v34  ;;  %v3155_v4 = vadd.f32 %v3115_v51, %v3067_v48 }
 0x241   :  { %v3633_v57 = vmax.f32 %v3593_v58, 0.0  ;;  %v3291_v32 = vmul.f32 %v7036_v36, %v2651_v31  ;;  %v2696_v21 = vmul.f32 %v7018_v12, %v2652_v20  ;;  %v2820_v8 = vmul.f32 %v7011_v45, %v2776_v5 }
 0x242   :  { %v2553_v63 = vmax.f32 %v2505_v25, 0.0  ;;  %v2504_v62 = vadd.f32 %v6976_v30, %v2452_v39  ;;  %v3550_v37 = vmul.f32 %v7047_v23, %v3506_v27  ;;  %v3243_v49 = vadd.f32 %v3203_v56, %v3155_v4  ;;  %v2777_v51 = vld [vmem:[#allocation2 + $0x49] sm:$0xff] }
 0x243   :  { %5030 = vmatmul.mubr.msk.f32.vlgmr.msra.gmra.mxu1 %vm2588_vm3, %v3633_v57  ;;  %v3379_v28 = vmul.f32 %v7039_v35, %v2775_v13  ;;  %v2860_v1 = vadd.f32 %v2820_v8, %v2696_v21  ;;  %v2944_v24 = vmul.f32 %v7021_v40, %v2900_v55  ;;  %v3068_v31 = vadd.f32 %v7114_v9, %v7097_v38  ;;  %v2901_v27 = vld [vmem:[#allocation2 + $0x4a] sm:$0xff] }
 0x244   :  { %2602 = vst.msk [vmem:[#allocation2 + $0x68] sm:$0xff] %vm2588_vm3, %v2553_v63  ;;  %v2552_v60 = vmax.f32 %v2504_v62, 0.0  ;;  %v3594_v29 = vadd.f32 %v7055_v10, %v3550_v37  ;;  %v3331_v33 = vadd.f32 %v3291_v32, %v3243_v49  ;;  %v3467_v42 = vmul.f32 %v7080_v18, %v2899_v26 }
 0x245   :  { %v7177_v47 = vadd.f32 %v2944_v24, %v2860_v1  ;;  %v3030_v41 = vmul.f32 %v7026_v43, %v2652_v20  ;;  %v7181_v13 = vmul.f32 %v7029_v59, %v2776_v5  ;;  %v3156_v50 = vadd.f32 %v7117_v17, %v3068_v31  ;;  %v2778_v31 = vld [vmem:[#allocation2 + $0x51] sm:$0xff] }
 0x246   :  { %2601 = vst.msk [vmem:[#allocation2 + $0x60] sm:$0xff] %vm2588_vm3, %v2552_v60  ;;  %v3634_v38 = vmax.f32 %v3594_v29, 0.0  ;;  %v3419_v9 = vadd.f32 %v3379_v28, %v3331_v33  ;;  %v7186_v15 = vmul.f32 %v7033_v16, %v2900_v55  ;;  %v3292_v26 = vmul.f32 %v7036_v36, %v2652_v20  ;;  %v4964_v34 = vpop.f32.mrf.mxu1  ;;  %v2654_v28 = vld [vmem:[#allocation2 + $0x50] sm:$0xff] }
 0x247   :  { %v3244_v48 = vadd.f32 %v7124_v46, %v3156_v50  ;;  %v3380_v22 = vmul.f32 %v7039_v35, %v2776_v5  ;;  %v2693_v58 = vmul.f32 %v7018_v12, %v7071_v44  ;;  %v2817_v17 = vmul.f32 %v7011_v45, %v7092_v3  ;;  %v2902_v50 = vld [vmem:[#allocation2 + $0x52] sm:$0xff] }
 0x248   :  { %v2455_v56 = vmul.f32 %v4964_v34, %v6970_v7  ;;  %5032 = vmatprep.mubr.msk.f32.mxu1 %vm2588_vm3, %v3634_v38  ;;  %v3507_v25 = vadd.f32 %v3467_v42, %v3419_v9  ;;  %v2697_v39 = vmul.f32 %v7018_v12, %v2653_v61  ;;  %v2821_v20 = vmul.f32 %v7011_v45, %v2777_v51  ;;  %v2267_v4 = vpop.f32.mrf.mxu1 }
 0x249   :  { %v3332_v46 = vadd.f32 %v3292_v26, %v3244_v48  ;;  %v3468_v5 = vmul.f32 %v7080_v18, %v2900_v55  ;;  %v2857_v57 = vadd.f32 %v2817_v17, %v2693_v58  ;;  %v2941_v44 = vmul.f32 %v7021_v40, %v7094_v53 }
 0x24a   :  { %v2507_v3 = vadd.f32 %v6976_v30, %v2455_v56  ;;  %v2454_v32 = vmul.f32 %v6970_v7, %v2267_v4  ;;  %v3551_v21 = vmul.f32 %v7047_v23, %v3507_v25  ;;  %v2861_v8 = vadd.f32 %v2821_v20, %v2697_v39  ;;  %v2655_v39 = vld [vmem:[#allocation2 + $0x58] sm:$0xff] }
 0x24b   :  { %v3420_v63 = vadd.f32 %v3380_v22, %v3332_v46  ;;  %v2945_v62 = vmul.f32 %v7021_v40, %v2901_v27  ;;  %v2981_v37 = vadd.f32 %v2941_v44, %v2857_v57  ;;  %v3031_v49 = vmul.f32 %v7026_v43, %v2653_v61 }
 0x24c   :  { %v2555_v1 = vmax.f32 %v2507_v3, 0.0  ;;  %v2506_v55 = vadd.f32 %v6976_v30, %v2454_v32  ;;  %v3595_v24 = vadd.f32 %v7055_v10, %v3551_v21  ;;  %v3119_v53 = vmul.f32 %v7029_v59, %v2777_v51 }
 0x24d   :  { %v3508_v60 = vadd.f32 %v3468_v5, %v3420_v63  ;;  %v7210_v29 = vadd.f32 %v2945_v62, %v2861_v8  ;;  %v3069_v33 = vadd.f32 %v7145_v19, %v2981_v37  ;;  %v3207_v42 = vmul.f32 %v7033_v16, %v2901_v27  ;;  %v2779_v5 = vld [vmem:[#allocation2 + $0x59] sm:$0xff] }
 0x24e   :  { %2604 = vst.msk [vmem:[#allocation2 + $0x78] sm:$0xff] %vm2588_vm3, %v2555_v1  ;;  %v2554_v38 = vmax.f32 %v2506_v55, 0.0  ;;  %v3635_v9 = vmax.f32 %v3595_v24, 0.0  ;;  %v3293_v26 = vmul.f32 %v7036_v36, %v2653_v61  ;;  %v2698_v34 = vmul.f32 %v7018_v12, %v2654_v28  ;;  %v2903_v37 = vld [vmem:[#allocation2 + $0x5a] sm:$0xff] }
 0x24f   :  { %v3552_v48 = vmul.f32 %v7047_v23, %v3508_v60  ;;  %v3157_v22 = vadd.f32 %v7155_v0, %v3069_v33  ;;  %v3381_v58 = vmul.f32 %v7039_v35, %v2777_v51  ;;  %v2822_v17 = vmul.f32 %v7011_v45, %v2778_v31 }
 0x250   :  { %2603 = vst.msk [vmem:[#allocation2 + $0x70] sm:$0xff] %vm2588_vm3, %v2554_v38  ;;  %5033 = vmatmul.mubr.msk.f32.gmra.mxu1 %vm2588_vm3, %v3635_v9  ;;  %v3469_v19 = vmul.f32 %v7080_v18, %v2901_v27  ;;  %v2946_v56 = vmul.f32 %v7021_v40, %v2902_v50  ;;  %v3032_v61 = vmul.f32 %v7026_v43, %v2654_v28  ;;  %v4967_v20 = vpop.f32.mrf.mxu1 }
 0x251   :  { %v3070_v25 = vadd.f32 %v3030_v41, %v7121_v14  ;;  %v3596_v0 = vadd.f32 %v7055_v10, %v3552_v48  ;;  %v3245_v51 = vadd.f32 %v7160_v6, %v3157_v22  ;;  %v2862_v4 = vadd.f32 %v2822_v17, %v2698_v34  ;;  %v2656_v48 = vld [vmem:[#allocation2 + $0x60] sm:$0xff] }
 0x252   :  { %v3120_v46 = vmul.f32 %v7029_v59, %v2778_v31  ;;  %v2457_v57 = vmul.f32 %v4967_v20, %v6970_v7  ;;  %v7233_v44 = vmul.f32 %v7033_v16, %v2902_v50  ;;  %v3294_v3 = vmul.f32 %v7036_v36, %v2654_v28  ;;  %v2277_v14 = vpop.f32.mrf.mxu1  ;;  %v2780_v22 = vld [vmem:[#allocation2 + $0x61] sm:$0xff] }
 0x253   :  { %v3158_v27 = vadd.f32 %v7181_v13, %v3070_v25  ;;  %v3636_v41 = vmax.f32 %v3596_v0, 0.0  ;;  %v3333_v32 = vadd.f32 %v3293_v26, %v3245_v51  ;;  %v3382_v21 = vmul.f32 %v7039_v35, %v2778_v31  ;;  %v2904_v20 = vld [vmem:[#allocation2 + $0x62] sm:$0xff] }
 0x254   :  { %v2699_v6 = vmul.f32 %v7018_v12, %v2655_v39  ;;  %v2509_v8 = vadd.f32 %v6976_v30, %v2457_v57  ;;  %v2456_v63 = vmul.f32 %v6970_v7, %v2277_v14  ;;  %v2823_v13 = vmul.f32 %v7011_v45, %v2779_v5 }
 0x255   :  { %v3246_v62 = vadd.f32 %v7186_v15, %v3158_v27  ;;  %5035 = vmatprep.mubr.msk.f32.mxu1 %vm2588_vm3, %v3636_v41  ;;  %v3421_v1 = vadd.f32 %v3381_v58, %v3333_v32  ;;  %v7243_v28 = vadd.f32 %v2946_v56, %v2862_v4  ;;  %v3470_v55 = vmul.f32 %v7080_v18, %v2902_v50 }
 0x256   :  { %v3071_v24 = vadd.f32 %v3031_v49, %v7150_v52  ;;  %v2557_v31 = vmax.f32 %v2509_v8, 0.0  ;;  %v2508_v60 = vadd.f32 %v6976_v30, %v2456_v63  ;;  %v2863_v38 = vadd.f32 %v2823_v13, %v2699_v6 }
 0x257   :  { %v3334_v33 = vadd.f32 %v3294_v3, %v3246_v62  ;;  %v3509_v9 = vadd.f32 %v3469_v19, %v3421_v1  ;;  %v2947_v15 = vmul.f32 %v7021_v40, %v2903_v37  ;;  %v3033_v26 = vmul.f32 %v7026_v43, %v2655_v39  ;;  %v2657_v62 = vld [vmem:[#allocation2 + $0x68] sm:$0xff] }
 0x258   :  { %v3159_v34 = vadd.f32 %v3119_v53, %v3071_v24  ;;  %2606 = vst.msk [vmem:[#allocation2 + $0x88] sm:$0xff] %vm2588_vm3, %v2557_v31  ;;  %v2556_v58 = vmax.f32 %v2508_v60, 0.0  ;;  %v3121_v50 = vmul.f32 %v7029_v59, %v2779_v5  ;;  %v7253_v52 = vmul.f32 %v7033_v16, %v2903_v37  ;;  %v2781_v13 = vld [vmem:[#allocation2 + $0x69] sm:$0xff] }
 0x259   :  { %v3422_v17 = vadd.f32 %v3382_v21, %v3334_v33  ;;  %v3553_v49 = vmul.f32 %v7047_v23, %v3509_v9  ;;  %v7256_v56 = vadd.f32 %v2947_v15, %v2863_v38  ;;  %v3295_v25 = vmul.f32 %v7036_v36, %v2655_v39  ;;  %v2905_v33 = vld [vmem:[#allocation2 + $0x6a] sm:$0xff] }
 0x25a   :  { %v3247_v19 = vadd.f32 %v3207_v42, %v3159_v34  ;;  %2605 = vst.msk [vmem:[#allocation2 + $0x80] sm:$0xff] %vm2588_vm3, %v2556_v58  ;;  %v3383_v0 = vmul.f32 %v7039_v35, %v2779_v5  ;;  %v2700_v51 = vmul.f32 %v7018_v12, %v2656_v48  ;;  %v2824_v4 = vmul.f32 %v7011_v45, %v2780_v22 }
 0x25b   :  { %v3510_v53 = vadd.f32 %v3470_v55, %v3422_v17  ;;  %v3597_v57 = vadd.f32 %v7055_v10, %v3553_v49  ;;  %v3471_v3 = vmul.f32 %v7080_v18, %v2903_v37  ;;  %v3072_v14 = vadd.f32 %v3032_v61, %v7177_v47  ;;  %v4970_v42 = vpop.f32.mrf.mxu1 }
 0x25c   :  { %v3335_v27 = vadd.f32 %v3295_v25, %v3247_v19  ;;  %v2864_v41 = vadd.f32 %v2824_v4, %v2700_v51  ;;  %v2948_v32 = vmul.f32 %v7021_v40, %v2904_v20  ;;  %v3034_v21 = vmul.f32 %v7026_v43, %v2656_v48 }
 0x25d   :  { %v3554_v39 = vmul.f32 %v7047_v23, %v3510_v53  ;;  %v2459_v5 = vmul.f32 %v4970_v42, %v6970_v7  ;;  %v3637_v6 = vmax.f32 %v3597_v57, 0.0  ;;  %v3160_v63 = vadd.f32 %v3120_v46, %v3072_v14  ;;  %v2287_v1 = vpop.f32.mrf.mxu1  ;;  %v2658_v57 = vld [vmem:[#allocation2 + $0x70] sm:$0xff] }
 0x25e   :  { %v3423_v8 = vadd.f32 %v3383_v0, %v3335_v27  ;;  %v3122_v47 = vmul.f32 %v7029_v59, %v2780_v22  ;;  %v7273_v61 = vmul.f32 %v7033_v16, %v2904_v20  ;;  %v3296_v55 = vmul.f32 %v7036_v36, %v2656_v48  ;;  %v2782_v27 = vld [vmem:[#allocation2 + $0x71] sm:$0xff] }
 0x25f   :  { %v3598_v37 = vadd.f32 %v7055_v10, %v3554_v39  ;;  %v2511_v24 = vadd.f32 %v6976_v30, %v2459_v5  ;;  %v2458_v31 = vmul.f32 %v6970_v7, %v2287_v1  ;;  %5036 = vmatmul.mubr.msk.f32.gmra.mxu1 %vm2588_vm3, %v3637_v6  ;;  %v3248_v46 = vadd.f32 %v7233_v44, %v3160_v63  ;;  %v2906_v5 = vld [vmem:[#allocation2 + $0x72] sm:$0xff] }
 0x260   :  { %v3511_v60 = vadd.f32 %v3471_v3, %v3423_v8  ;;  %v3384_v9 = vmul.f32 %v7039_v35, %v2780_v22  ;;  %v2701_v15 = vmul.f32 %v7018_v12, %v2657_v62  ;;  %v2825_v34 = vmul.f32 %v7011_v45, %v2781_v13 }
 0x261   :  { %v3638_v38 = vmax.f32 %v3598_v37, 0.0  ;;  %v2559_v58 = vmax.f32 %v2511_v24, 0.0  ;;  %v2510_v48 = vadd.f32 %v6976_v30, %v2458_v31  ;;  %v3336_v49 = vadd.f32 %v3296_v55, %v3248_v46 }
 0x262   :  { %v3555_v17 = vmul.f32 %v7047_v23, %v3511_v60  ;;  %v7286_v19 = vadd.f32 %v2948_v32, %v2864_v41  ;;  %v2865_v25 = vadd.f32 %v2825_v34, %v2701_v15  ;;  %v2949_v44 = vmul.f32 %v7021_v40, %v2905_v33  ;;  %v2659_v34 = vld [vmem:[#allocation2 + $0x78] sm:$0xff] }
 0x263   :  { %5038 = vmatprep.mubr.msk.f32.mxu1 %vm2588_vm3, %v3638_v38  ;;  %v3073_v53 = vadd.f32 %v3033_v26, %v7210_v29  ;;  %2608 = vst.msk [vmem:[#allocation2 + $0x98] sm:$0xff] %vm2588_vm3, %v2559_v58  ;;  %v2558_v22 = vmax.f32 %v2510_v48, 0.0  ;;  %v3424_v51 = vadd.f32 %v3384_v9, %v3336_v49  ;;  %v3472_v4 = vmul.f32 %v7080_v18, %v2904_v20  ;;  %v2783_v58 = vld [vmem:[#allocation2 + $0x79] sm:$0xff] }
 0x264   :  { %v3599_v0 = vadd.f32 %v7055_v10, %v3555_v17  ;;  %v7293_v3 = vadd.f32 %v2949_v44, %v2865_v25  ;;  %v3035_v14 = vmul.f32 %v7026_v43, %v2657_v62  ;;  %v3123_v42 = vmul.f32 %v7029_v59, %v2781_v13 }
 0x265   :  { %v3161_v39 = vadd.f32 %v3121_v50, %v3073_v53  ;;  %2607 = vst.msk [vmem:[#allocation2 + $0x90] sm:$0xff] %vm2588_vm3, %v2558_v22  ;;  %v3512_v26 = vadd.f32 %v3472_v4, %v3424_v51  ;;  %v7299_v41 = vmul.f32 %v7033_v16, %v2905_v33  ;;  %v3297_v32 = vmul.f32 %v7036_v36, %v2657_v62  ;;  %v2907_v53 = vld [vmem:[#allocation2 + $0x7a] sm:$0xff] }
 0x266   :  { %v3639_v29 = vmax.f32 %v3599_v0, 0.0  ;;  %v4973_v20 = vpop.f32.mrf.mxu1  ;;  %v3385_v8 = vmul.f32 %v7039_v35, %v2781_v13  ;;  %v2702_v63 = vmul.f32 %v7018_v12, %v2658_v57  ;;  %v2826_v1 = vmul.f32 %v7011_v45, %v2782_v27 }
 0x267   :  { %v3249_v6 = vadd.f32 %v7253_v52, %v3161_v39  ;;  %v2461_v50 = vmul.f32 %v4973_v20, %v6970_v7  ;;  %v3556_v37 = vmul.f32 %v7047_v23, %v3512_v26  ;;  %v3473_v55 = vmul.f32 %v7080_v18, %v2905_v33 }
 0x268   :  { %5039 = vmatmul.mubr.msk.f32.gmra.mxu1 %vm2588_vm3, %v3639_v29  ;;  %v3074_v62 = vadd.f32 %v3034_v21, %v7243_v28  ;;  %v2297_v24 = vpop.f32.mrf.mxu1  ;;  %v2866_v60 = vadd.f32 %v2826_v1, %v2702_v63  ;;  %v2950_v52 = vmul.f32 %v7021_v40, %v2906_v5  ;;  %v3036_v13 = vmul.f32 %v7026_v43, %v2658_v57 }
 0x269   :  { %v3337_v31 = vadd.f32 %v3297_v32, %v3249_v6  ;;  %v2513_v46 = vadd.f32 %v6976_v30, %v2461_v50  ;;  %v2460_v38 = vmul.f32 %v6970_v7, %v2297_v24  ;;  %v3600_v9 = vadd.f32 %v7055_v10, %v3556_v37  ;;  %v2660_v6 = vld [vmem:[#allocation2 + $0x80] sm:$0xff] }
 0x26a   :  { %v3162_v15 = vadd.f32 %v3122_v47, %v3074_v62  ;;  %v3124_v33 = vmul.f32 %v7029_v59, %v2782_v27  ;;  %v7318_v28 = vmul.f32 %v7033_v16, %v2906_v5  ;;  %v3298_v21 = vmul.f32 %v7036_v36, %v2658_v57 }
 0x26b   :  { %v3425_v48 = vadd.f32 %v3385_v8, %v3337_v31  ;;  %v2561_v17 = vmax.f32 %v2513_v46, 0.0  ;;  %v2512_v49 = vadd.f32 %v6976_v30, %v2460_v38  ;;  %v3640_v25 = vmax.f32 %v3600_v9, 0.0  ;;  %v2784_v8 = vld [vmem:[#allocation2 + $0x81] sm:$0xff] }
 0x26c   :  { %v3250_v44 = vadd.f32 %v7273_v61, %v3162_v15  ;;  %v7323_v0 = vadd.f32 %v2950_v52, %v2866_v60  ;;  %v2703_v47 = vmul.f32 %v7018_v12, %v2659_v34  ;;  %v2827_v51 = vmul.f32 %v7011_v45, %v2783_v58  ;;  %v2908_v52 = vld [vmem:[#allocation2 + $0x82] sm:$0xff] }
 0x26d   :  { %v3513_v22 = vadd.f32 %v3473_v55, %v3425_v48  ;;  %2610 = vst.msk [vmem:[#allocation2 + $0xa8] sm:$0xff] %vm2588_vm3, %v2561_v17  ;;  %v2560_v4 = vmax.f32 %v2512_v49, 0.0  ;;  %5041 = vmatprep.mubr.msk.f32.mxu1 %vm2588_vm3, %v3640_v25  ;;  %v3386_v39 = vmul.f32 %v7039_v35, %v2782_v27  ;;  %v3474_v29 = vmul.f32 %v7080_v18, %v2906_v5 }
 0x26e   :  { %v3338_v57 = vadd.f32 %v3298_v21, %v3250_v44  ;;  %v2867_v26 = vadd.f32 %v2827_v51, %v2703_v47  ;;  %v2951_v32 = vmul.f32 %v7021_v40, %v2907_v53  ;;  %v3075_v20 = vadd.f32 %v3035_v14, %v7256_v56  ;;  %v2661_v51 = vld [vmem:[#allocation2 + $0x88] sm:$0xff] }
 0x26f   :  { %v3557_v61 = vmul.f32 %v7047_v23, %v3513_v22  ;;  %2609 = vst.msk [vmem:[#allocation2 + $0xa0] sm:$0xff] %vm2588_vm3, %v2560_v4  ;;  %v3037_v1 = vmul.f32 %v7026_v43, %v2659_v34  ;;  %v3125_v50 = vmul.f32 %v7029_v59, %v2783_v58  ;;  %v7338_v27 = vmul.f32 %v7033_v16, %v2907_v53  ;;  %v4976_v5 = vpop.f32.mrf.mxu1  ;;  %v2785_v4 = vld [vmem:[#allocation2 + $0x89] sm:$0xff] }
 0x270   :  { %v3426_v63 = vadd.f32 %v3386_v39, %v3338_v57  ;;  %v3163_v55 = vadd.f32 %v3123_v42, %v3075_v20  ;;  %v3299_v62 = vmul.f32 %v7036_v36, %v2659_v34  ;;  %v3387_v56 = vmul.f32 %v7039_v35, %v2783_v58 }
 0x271   :  { %v3601_v37 = vadd.f32 %v7055_v10, %v3557_v61  ;;  %v2463_v14 = vmul.f32 %v4976_v5, %v6970_v7  ;;  %v2704_v31 = vmul.f32 %v7018_v12, %v2660_v6  ;;  %v2828_v60 = vmul.f32 %v7011_v45, %v2784_v8  ;;  %v2307_v46 = vpop.f32.mrf.mxu1 }
 0x272   :  { %v3514_v24 = vadd.f32 %v3474_v29, %v3426_v63  ;;  %v7346_v9 = vadd.f32 %v2951_v32, %v2867_v26  ;;  %v3251_v15 = vadd.f32 %v7299_v41, %v3163_v55  ;;  %v3475_v42 = vmul.f32 %v7080_v18, %v2907_v53  ;;  %v2909_v26 = vld [vmem:[#allocation2 + $0x8a] sm:$0xff] }
 0x273   :  { %v3641_v38 = vmax.f32 %v3601_v37, 0.0  ;;  %v2515_v34 = vadd.f32 %v6976_v30, %v2463_v14  ;;  %v2462_v58 = vmul.f32 %v6970_v7, %v2307_v46  ;;  %v2868_v21 = vadd.f32 %v2828_v60, %v2704_v31  ;;  %v2786_v14 = vld [vmem:[#allocation2 + $0x91] sm:$0xff] }
 0x274   :  { %v3558_v48 = vmul.f32 %v7047_v23, %v3514_v24  ;;  %v3339_v17 = vadd.f32 %v3299_v62, %v3251_v15  ;;  %v2952_v49 = vmul.f32 %v7021_v40, %v2908_v52  ;;  %v3038_v25 = vmul.f32 %v7026_v43, %v2660_v6  ;;  %v2662_v62 = vld [vmem:[#allocation2 + $0x90] sm:$0xff] }
 0x275   :  { %5042 = vmatmul.mubr.msk.f32.gmra.mxu1 %vm2588_vm3, %v3641_v38  ;;  %v3076_v44 = vadd.f32 %v3036_v13, %v7286_v19  ;;  %v2563_v22 = vmax.f32 %v2515_v34, 0.0  ;;  %v2514_v41 = vadd.f32 %v6976_v30, %v2462_v58  ;;  %v3126_v47 = vmul.f32 %v7029_v59, %v2784_v8 }
 0x276   :  { %v3602_v53 = vadd.f32 %v7055_v10, %v3558_v48  ;;  %v3427_v57 = vadd.f32 %v3387_v56, %v3339_v17  ;;  %v7360_v39 = vadd.f32 %v2952_v49, %v2868_v21  ;;  %v3214_v61 = vmul.f32 %v7033_v16, %v2908_v52 }
 0x277   :  { %v3164_v29 = vadd.f32 %v3124_v33, %v3076_v44  ;;  %2612 = vst.msk [vmem:[#allocation2 + $0xb8] sm:$0xff] %vm2588_vm3, %v2563_v22  ;;  %v2562_v32 = vmax.f32 %v2514_v41, 0.0  ;;  %v3300_v13 = vmul.f32 %v7036_v36, %v2660_v6  ;;  %v3388_v20 = vmul.f32 %v7039_v35, %v2784_v8 }
 0x278   :  { %v3642_v19 = vmax.f32 %v3602_v53, 0.0  ;;  %v3515_v63 = vadd.f32 %v3475_v42, %v3427_v57  ;;  %v2705_v37 = vmul.f32 %v7018_v12, %v2661_v51  ;;  %v2829_v55 = vmul.f32 %v7011_v45, %v2785_v4  ;;  %v2910_v42 = vld [vmem:[#allocation2 + $0x92] sm:$0xff] }
 0x279   :  { %v3252_v5 = vadd.f32 %v7318_v28, %v3164_v29  ;;  %2611 = vst.msk [vmem:[#allocation2 + $0xb0] sm:$0xff] %vm2588_vm3, %v2562_v32  ;;  %v3476_v33 = vmul.f32 %v7080_v18, %v2908_v52  ;;  %v2953_v56 = vmul.f32 %v7021_v40, %v2909_v26  ;;  %v3039_v6 = vmul.f32 %v7026_v43, %v2661_v51 }
 0x27a   :  { %5044 = vmatprep.mubr.msk.f32.mxu1 %vm2588_vm3, %v3642_v19  ;;  %v3077_v8 = vadd.f32 %v3037_v1, %v7293_v3  ;;  %v3559_v28 = vmul.f32 %v7047_v23, %v3515_v63  ;;  %v2869_v31 = vadd.f32 %v2829_v55, %v2705_v37  ;;  %v3127_v60 = vmul.f32 %v7029_v59, %v2785_v4 }
 0x27b   :  { %v3340_v24 = vadd.f32 %v3300_v13, %v3252_v5  ;;  %v7378_v38 = vmul.f32 %v7033_v16, %v2909_v26  ;;  %v3301_v15 = vmul.f32 %v7036_v36, %v2661_v51  ;;  %v2706_v52 = vmul.f32 %v7018_v12, %v2662_v62  ;;  %v2787_v13 = vld [vmem:[#allocation2 + $0x99] sm:$0xff] }
 0x27c   :  { %v3165_v46 = vadd.f32 %v3125_v50, %v3077_v8  ;;  %v3603_v34 = vadd.f32 %v7055_v10, %v3559_v28  ;;  %v3389_v3 = vmul.f32 %v7039_v35, %v2785_v4  ;;  %v2830_v1 = vmul.f32 %v7011_v45, %v2786_v14 }
 0x27d   :  { %v3428_v58 = vadd.f32 %v3388_v20, %v3340_v24  ;;  %v4979_v48 = vpop.f32.mrf.mxu1  ;;  %v7385_v21 = vadd.f32 %v2953_v56, %v2869_v31  ;;  %v3477_v17 = vmul.f32 %v7080_v18, %v2909_v26  ;;  %v3078_v49 = vadd.f32 %v3038_v25, %v7323_v0  ;;  %v2663_v26 = vld [vmem:[#allocation2 + $0x98] sm:$0xff] }
 0x27e   :  { %v3253_v50 = vadd.f32 %v7338_v27, %v3165_v46  ;;  %v2465_v44 = vmul.f32 %v4979_v48, %v6970_v7  ;;  %v3643_v22 = vmax.f32 %v3603_v34, 0.0  ;;  %v2954_v53 = vmul.f32 %v7021_v40, %v2910_v42  ;;  %v2911_v46 = vld [vmem:[#allocation2 + $0x9a] sm:$0xff] }
 0x27f   :  { %v3516_v41 = vadd.f32 %v3476_v33, %v3428_v58  ;;  %v2317_v51 = vpop.f32.mrf.mxu1  ;;  %v2870_v4 = vadd.f32 %v2830_v1, %v2706_v52  ;;  %v3040_v29 = vmul.f32 %v7026_v43, %v2662_v62  ;;  %v3166_v32 = vadd.f32 %v3126_v47, %v3078_v49 }
 0x280   :  { %v3341_v57 = vadd.f32 %v3301_v15, %v3253_v50  ;;  %v2517_v19 = vadd.f32 %v6976_v30, %v2465_v44  ;;  %v2464_v27 = vmul.f32 %v6970_v7, %v2317_v51  ;;  %5045 = vmatmul.mubr.msk.f32.gmra.mxu1 %vm2588_vm3, %v3643_v22  ;;  %v3128_v25 = vmul.f32 %v7029_v59, %v2786_v14 }
 0x281   :  { %v3560_v0 = vmul.f32 %v7047_v23, %v3516_v41  ;;  %v3216_v63 = vmul.f32 %v7033_v16, %v2910_v42  ;;  %v3254_v5 = vadd.f32 %v3214_v61, %v3166_v32  ;;  %v3302_v37 = vmul.f32 %v7036_v36, %v2662_v62  ;;  %v3192_v32 = vld [vmem:[#allocation2 + $0xa2] sm:$0xff] }
 0x282   :  { %v3429_v20 = vadd.f32 %v3389_v3, %v3341_v57  ;;  %v2565_v55 = vmax.f32 %v2517_v19, 0.0  ;;  %v2516_v47 = vadd.f32 %v6976_v30, %v2464_v27  ;;  %v3390_v56 = vmul.f32 %v7039_v35, %v2786_v14 }
 0x283   :  { %v3604_v33 = vadd.f32 %v7055_v10, %v3560_v0  ;;  %v3342_v28 = vadd.f32 %v3302_v37, %v3254_v5  ;;  %v2707_v24 = vmul.f32 %v7018_v12, %v2663_v26  ;;  %v2831_v31 = vmul.f32 %v7011_v45, %v2787_v13 }
 0x284   :  { %v3517_v8 = vadd.f32 %v3477_v17, %v3429_v20  ;;  %2614 = vst.msk [vmem:[#allocation2 + $0xc8] sm:$0xff] %vm2588_vm3, %v2565_v55  ;;  %v2564_v15 = vmax.f32 %v2516_v47, 0.0  ;;  %v7406_v52 = vadd.f32 %v2954_v53, %v2870_v4  ;;  %v3478_v62 = vmul.f32 %v7080_v18, %v2910_v42  ;;  %v3104_v4 = vld [vmem:[#allocation2 + $0xa1] sm:$0xff] }
 0x285   :  { %v3644_v61 = vmax.f32 %v3604_v33, 0.0  ;;  %v3430_v58 = vadd.f32 %v3390_v56, %v3342_v28  ;;  %v2871_v3 = vadd.f32 %v2831_v31, %v2707_v24  ;;  %v3079_v14 = vadd.f32 %v3039_v6, %v7346_v9  ;;  %v3016_v9 = vld [vmem:[#allocation2 + $0xa0] sm:$0xff]  ;;  %v3017_v33 = vld [vmem:[#allocation2 + $0xa8] sm:$0xff] }
 0x286   :  { %v3561_v34 = vmul.f32 %v7047_v23, %v3517_v8  ;;  %2613 = vst.msk [vmem:[#allocation2 + $0xc0] sm:$0xff] %vm2588_vm3, %v2564_v15  ;;  %v2955_v1 = vmul.f32 %v7021_v40, %v2911_v46  ;;  %v3041_v48 = vmul.f32 %v7026_v43, %v2663_v26  ;;  %v3129_v50 = vmul.f32 %v7029_v59, %v2787_v13  ;;  %v3105_v24 = vld [vmem:[#allocation2 + $0xa9] sm:$0xff] }
 0x287   :  { %5047 = vmatprep.mubr.msk.f32.mxu1 %vm2588_vm3, %v3644_v61  ;;  %v3217_v17 = vmul.f32 %v7033_v16, %v2911_v46  ;;  %v4982_v49 = vpop.f32.mrf.mxu1  ;;  %v3518_v44 = vadd.f32 %v3478_v62, %v3430_v58  ;;  %v3167_v22 = vadd.f32 %v3127_v60, %v3079_v14  ;;  %v3303_v41 = vmul.f32 %v7036_v36, %v2663_v26  ;;  %v3193_v31 = vld [vmem:[#allocation2 + $0xaa] sm:$0xff] }
 0x288   :  { %v3605_v42 = vadd.f32 %v7055_v10, %v3561_v34  ;;  %v2467_v6 = vmul.f32 %v4982_v49, %v6970_v7  ;;  %v2995_v53 = vadd.f32 %v2955_v1, %v2871_v3  ;;  %v3391_v51 = vmul.f32 %v7039_v35, %v2787_v13  ;;  %v3280_v14 = vld [vmem:[#allocation2 + $0xb0] sm:$0xff] }
 0x289   :  { %v3080_v57 = vadd.f32 %v3040_v29, %v7360_v39  ;;  %v2327_v19 = vpop.f32.mrf.mxu1  ;;  %v3562_v0 = vmul.f32 %v7047_v23, %v3518_v44  ;;  %v3255_v20 = vadd.f32 %v7378_v38, %v3167_v22  ;;  %v3479_v60 = vmul.f32 %v7080_v18, %v2911_v46  ;;  %v3368_v22 = vld [vmem:[#allocation2 + $0xb1] sm:$0xff] }
 0x28a   :  { %v3645_v27 = vmax.f32 %v3605_v42, 0.0  ;;  %v2519_v26 = vadd.f32 %v6976_v30, %v2467_v6  ;;  %v2466_v5 = vmul.f32 %v6970_v7, %v2327_v19  ;;  %v3042_v37 = vmul.f32 %v7026_v43, %v3016_v9 }
 0x28b   :  { %v3168_v55 = vadd.f32 %v3128_v25, %v3080_v57  ;;  %v3606_v39 = vadd.f32 %v7055_v10, %v3562_v0  ;;  %v3343_v29 = vadd.f32 %v3303_v41, %v3255_v20  ;;  %v3130_v13 = vmul.f32 %v7029_v59, %v3104_v4  ;;  %v3281_v41 = vld [vmem:[#allocation2 + $0xb8] sm:$0xff]  ;;  %v7447_v57 = vld [vmem:[#allocation9 + $0x8] ss:$0 sm:$0xff] }
 0x28c   :  { %5048 = vmatmul.mubr.msk.f32.gmra.mxu1 %vm2588_vm3, %v3645_v27  ;;  %v3218_v47 = vmul.f32 %v7033_v16, %v3192_v32  ;;  %v2567_v38 = vmax.f32 %v2519_v26, 0.0  ;;  %v2518_v56 = vadd.f32 %v6976_v30, %v2466_v5  ;;  %v3304_v28 = vmul.f32 %v7036_v36, %v3016_v9 }
 0x28d   :  { %v3256_v8 = vadd.f32 %v3216_v63, %v3168_v55  ;;  %v3646_v46 = vmax.f32 %v3606_v39, 0.0  ;;  %v3431_v25 = vadd.f32 %v3391_v51, %v3343_v29  ;;  %v3392_v15 = vmul.f32 %v7039_v35, %v3104_v4  ;;  %v3369_v20 = vld [vmem:[#allocation2 + $0xb9] sm:$0xff] }
 0x28e   :  { %v3081_v61 = vadd.f32 %v3041_v48, %v7385_v21  ;;  %2616 = vst.msk [vmem:[#allocation2 + $0xd8] sm:$0xff] %vm2588_vm3, %v2567_v38  ;;  %v2566_v62 = vmax.f32 %v2518_v56, 0.0  ;;  %v3480_v58 = vmul.f32 %v7080_v18, %v3192_v32  ;;  %v3043_v3 = vmul.f32 %v7026_v43, %v3017_v33  ;;  %v2788_v38 = vld [vmem:[#allocation2 + $0xc1] sm:$0xff]  ;;  %v3456_v56 = vld [vmem:[#allocation2 + $0xb2] sm:$0xff] }
 0x28f   :  { %v3344_v34 = vadd.f32 %v3304_v28, %v3256_v8  ;;  %5050 = vmatprep.mubr.msk.f32.mxu1 %vm2588_vm3, %v3646_v46  ;;  %v3519_v63 = vadd.f32 %v3479_v60, %v3431_v25  ;;  %v3131_v1 = vmul.f32 %v7029_v59, %v3105_v24  ;;  %v3219_v42 = vmul.f32 %v7033_v16, %v3193_v31 }
 0x290   :  { %v3169_v49 = vadd.f32 %v3129_v50, %v3081_v61  ;;  %2615 = vst.msk [vmem:[#allocation2 + $0xd0] sm:$0xff] %vm2588_vm3, %v2566_v62  ;;  %v3305_v48 = vmul.f32 %v7036_v36, %v3017_v33  ;;  %v3393_v44 = vmul.f32 %v7039_v35, %v3105_v24  ;;  %v3082_v18 = vadd.f32 %v3042_v37, %v7406_v52  ;;  %v2664_v33 = vld [vmem:[#allocation2 + $0xc0] sm:$0xff] }
 0x291   :  { %v3432_v21 = vadd.f32 %v3392_v15, %v3344_v34  ;;  %v4985_v9 = vpop.f32.mrf.mxu1  ;;  %v3563_v6 = vmul.f32 %v7047_v23, %v3519_v63  ;;  %v3481_v50 = vmul.f32 %v7447_v57, %v3193_v31  ;;  %v3306_v4 = vmul.f32 %v7036_v36, %v3280_v14 }
 0x292   :  { %v3257_v51 = vadd.f32 %v3217_v17, %v3169_v49  ;;  %v2469_v32 = vmul.f32 %v4985_v9, %v6970_v7  ;;  %v3170_v27 = vadd.f32 %v3130_v13, %v3082_v18  ;;  %v3083_v0 = vadd.f32 %v3043_v3, %v2995_v53  ;;  %v3457_v49 = vld [vmem:[#allocation2 + $0xba] sm:$0xff]  ;;  %v2665_v18 = vld [vmem:[#allocation2 + $0xc8] sm:$0xff] }
 0x293   :  { %v3520_v19 = vadd.f32 %v3480_v58, %v3432_v21  ;;  %v2337_v60 = vpop.f32.mrf.mxu1  ;;  %v3607_v52 = vadd.f32 %v7055_v10, %v3563_v6  ;;  %v3394_v5 = vmul.f32 %v7039_v35, %v3368_v22  ;;  %v3307_v17 = vmul.f32 %v7036_v36, %v3281_v41  ;;  %v2912_v58 = vld [vmem:[#allocation2 + $0xc2] sm:$0xff] }
 0x294   :  { %v3345_v26 = vadd.f32 %v3305_v48, %v3257_v51  ;;  %v2521_v37 = vadd.f32 %v6976_v30, %v2469_v32  ;;  %v2468_v55 = vmul.f32 %v6970_v7, %v2337_v60  ;;  %v3258_v29 = vadd.f32 %v3218_v47, %v3170_v27 }
 0x295   :  { %v3564_v39 = vmul.f32 %v7047_v23, %v3520_v19  ;;  %v3647_v13 = vmax.f32 %v3607_v52, 0.0  ;;  %v3171_v8 = vadd.f32 %v3131_v1, %v3083_v0  ;;  %v3395_v28 = vmul.f32 %v7039_v35, %v3369_v20 }
 0x296   :  { %v3433_v53 = vadd.f32 %v3393_v44, %v3345_v26  ;;  %v2569_v24 = vmax.f32 %v2521_v37, 0.0  ;;  %v2520_v31 = vadd.f32 %v6976_v30, %v2468_v55  ;;  %v3346_v25 = vadd.f32 %v3306_v4, %v3258_v29 }
 0x297   :  { %v3608_v46 = vadd.f32 %v7055_v10, %v3564_v39  ;;  %5051 = vmatmul.mubr.msk.f32.gmra.mxu1 %vm2588_vm3, %v3647_v13  ;;  %v3259_v61 = vadd.f32 %v3219_v42, %v3171_v8  ;;  %v2666_v62 = vld [vmem:[#allocation2 + $0xd0] sm:$0xff]  ;;  %v2708_v47 = vmul.f32 %v7018_v12, %v2664_v33  ;;  %v2832_v34 = vmul.f32 %v7011_v45, %v2788_v38 }
 0x298   :  { %v3521_v15 = vadd.f32 %v3481_v50, %v3433_v53  ;;  %2618 = vst.msk [vmem:[#allocation2 + $0xe8] sm:$0xff] %vm2588_vm3, %v2569_v24  ;;  %v2568_v3 = vmax.f32 %v2520_v31, 0.0  ;;  %v3434_v63 = vadd.f32 %v3394_v5, %v3346_v25  ;;  %v3482_v1 = vmul.f32 %v7447_v57, %v3456_v56  ;;  %v2789_v9 = vld [vmem:[#allocation2 + $0xc9] sm:$0xff]  ;;  %v2790_v4 = vld [vmem:[#allocation2 + $0xd1] sm:$0xff] }
 0x299   :  { %v3648_v14 = vmax.f32 %v3608_v46, 0.0  ;;  %v3347_v48 = vadd.f32 %v3307_v17, %v3259_v61  ;;  %v2872_v44 = vadd.f32 %v2832_v34, %v2708_v47  ;;  %v2956_v22 = vmul.f32 %v7021_v40, %v2912_v58  ;;  %v2913_v32 = vld [vmem:[#allocation2 + $0xca] sm:$0xff]  ;;  %v2914_v53 = vld [vmem:[#allocation2 + $0xd2] sm:$0xff] }
 0x29a   :  { %v3565_v21 = vmul.f32 %v7047_v23, %v3521_v15  ;;  %2617 = vst.msk [vmem:[#allocation2 + $0xe0] sm:$0xff] %vm2588_vm3, %v2568_v3  ;;  %v3522_v42 = vadd.f32 %v3482_v1, %v3434_v63  ;;  %v3044_v41 = vmul.f32 %v7026_v43, %v2666_v62  ;;  %v3483_v50 = vmul.f32 %v7447_v57, %v3457_v49  ;;  %v2667_v24 = vld [vmem:[#allocation2 + $0xd8] sm:$0xff] }
 0x29b   :  { %5053 = vmatprep.mubr.msk.f32.mxu1 %vm2588_vm3, %v3648_v14  ;;  %v3435_v51 = vadd.f32 %v3395_v28, %v3347_v48  ;;  %v2996_v0 = vadd.f32 %v2956_v22, %v2872_v44  ;;  %v2709_v20 = vmul.f32 %v7018_v12, %v2665_v18  ;;  %v2833_v5 = vmul.f32 %v7011_v45, %v2789_v9 }
 0x29c   :  { %v3609_v6 = vadd.f32 %v7055_v10, %v3565_v21  ;;  %v4988_v19 = vpop.f32.mrf.mxu1  ;;  %v3566_v27 = vmul.f32 %v7047_v23, %v3522_v42  ;;  %v3132_v39 = vmul.f32 %v7029_v59, %v2790_v4  ;;  %v2957_v29 = vmul.f32 %v7021_v40, %v2913_v32 }
 0x29d   :  { %v2471_v60 = vmul.f32 %v4988_v19, %v6970_v7  ;;  %v3523_v26 = vadd.f32 %v3483_v50, %v3435_v51  ;;  %v3084_v55 = vadd.f32 %v3044_v41, %v2996_v0  ;;  %v2873_v56 = vadd.f32 %v2833_v5, %v2709_v20 }
 0x29e   :  { %v3649_v52 = vmax.f32 %v3609_v6, 0.0  ;;  %v2347_v17 = vpop.f32.mrf.mxu1  ;;  %v3610_v37 = vadd.f32 %v7055_v10, %v3566_v27  ;;  %v2710_v34 = vmul.f32 %v7018_v12, %v2666_v62  ;;  %v3220_v14 = vmul.f32 %v7033_v16, %v2914_v53 }
 0x29f   :  { %v2523_v33 = vadd.f32 %v6976_v30, %v2471_v60  ;;  %v2470_v38 = vmul.f32 %v6970_v7, %v2347_v17  ;;  %v3567_v13 = vmul.f32 %v7047_v23, %v3523_v26  ;;  %v3172_v28 = vadd.f32 %v3132_v39, %v3084_v55  ;;  %v2669_v63 = vld [vmem:[#allocation2 + $0xe8] sm:$0xff]  ;;  %v4193_v17 = vld [vmem:[%s8119_s8] sm:$0xff] }
 0x2a0   :  { %5054 = vmatmul.mubr.msk.f32.gmra.mxu1 %vm2588_vm3, %v3649_v52  ;;  %v3650_v8 = vmax.f32 %v3610_v37, 0.0  ;;  %v2997_v47 = vadd.f32 %v2957_v29, %v2873_v56  ;;  %v2834_v48 = vmul.f32 %v7011_v45, %v2790_v4  ;;  %v3045_v44 = vmul.f32 %v7026_v43, %v2667_v24 }
 0x2a1   :  { %v2571_v31 = vmax.f32 %v2523_v33, 0.0  ;;  %v2522_v46 = vadd.f32 %v6976_v30, %v2470_v38  ;;  %v3611_v25 = vadd.f32 %v7055_v10, %v3567_v13  ;;  %v2668_v15 = vld [vmem:[#allocation2 + $0xe0] sm:$0xff]  ;;  %v2958_v42 = vmul.f32 %v7021_v40, %v2914_v53  ;;  %v4195_v33 = vld [vmem:[%s8119_s8 + $0x10] sm:$0xff] }
 0x2a2   :  { %v2792_v61 = vld [vmem:[#allocation2 + $0xe1] sm:$0xff]  ;;  %5056 = vmatprep.mubr.msk.f32.mxu1 %vm2588_vm3, %v3650_v8  ;;  %v2712_v58 = vmul.f32 %v7018_v12, %v2668_v15  ;;  %v2791_v1 = vld [vmem:[#allocation2 + $0xd9] sm:$0xff]  ;;  %v3260_v62 = vadd.f32 %v3220_v14, %v3172_v28  ;;  %v3308_v22 = vmul.f32 %v7036_v36, %v2668_v15  ;;  %v2711_v41 = vmul.f32 %v7018_v12, %v2667_v24 }
 0x2a3   :  { %v2836_v3 = vmul.f32 %v7011_v45, %v2792_v61  ;;  %2620 = vst.msk [vmem:[#allocation2 + $0xf8] sm:$0xff] %vm2588_vm3, %v2571_v31  ;;  %v2570_v49 = vmax.f32 %v2522_v46, 0.0  ;;  %v3651_v21 = vmax.f32 %v3611_v25, 0.0  ;;  %v2916_v18 = vld [vmem:[#allocation2 + $0xe2] sm:$0xff]  ;;  %v3046_v9 = vmul.f32 %v7026_v43, %v2668_v15  ;;  %v2915_v50 = vld [vmem:[#allocation2 + $0xda] sm:$0xff] }
 0x2a4   :  { %v7501_v6 = vmul.f32 %v7018_v12, %v2669_v63  ;;  %v2835_v51 = vmul.f32 %v7011_v45, %v2791_v1  ;;  %v3085_v4 = vadd.f32 %v3045_v44, %v2997_v47  ;;  %v3348_v27 = vadd.f32 %v3308_v22, %v3260_v62  ;;  %v4196_v44 = vld [vmem:[%s8119_s8 + $0x18] sm:$0xff] }
 0x2a5   :  { %2619 = vst.msk [vmem:[#allocation2 + $0xf0] sm:$0xff] %vm2588_vm3, %v2570_v49  ;;  %5057 = vmatmul.mubr.msk.f32.gmra.mxu1 %vm2588_vm3, %v3651_v21  ;;  %v2876_v19 = vadd.f32 %v2836_v3, %v2712_v58  ;;  %v3396_v0 = vmul.f32 %v7039_v35, %v2792_v61  ;;  %v3133_v20 = vmul.f32 %v7029_v59, %v2791_v1  ;;  %v5303_v8 = vmov 0   ;;  %v4194_v58 = vld [vmem:[%s8119_s8 + $0x8] sm:$0xff] }
 0x2a6   :  { %v4991_v32 = vpop.f32.mrf.mxu1  ;;  %v3484_v52 = vmul.f32 %v7447_v57, %v2916_v18  ;;  %v2874_v26 = vadd.f32 %v2834_v48, %v2710_v34  ;;  %v2875_v5 = vadd.f32 %v2835_v51, %v2711_v41  ;;  %v3221_v29 = vmul.f32 %v7033_v16, %v2915_v50  ;;  %5136 = vset.pattern.permute.xlu0 %v5303_v8 }
 0x2a7   :  { %v2473_v60 = vmul.f32 %v4991_v32, %v6970_v7  ;;  %v3436_v55 = vadd.f32 %v3396_v0, %v3348_v27  ;;  %v3173_v39 = vadd.f32 %v3133_v20, %v3085_v4  ;;  %v2959_v53 = vmul.f32 %v7021_v40, %v2915_v50  ;;  %4215 = vperm.xlu0 %5136, %v4193_v17   ;;  %v4418_v50 = vld [vmem:[%s8117_s6 + $0x78] sm:$0xff] }
 0x2a8   :  { %v2357_v37 = vpop.f32.mrf.mxu1  ;;  %v2998_v56 = vadd.f32 %v2958_v42, %v2874_v26  ;;  %v3309_v31 = vmul.f32 %v7036_v36, %v2669_v63  ;;  %5137 = vset.pattern.permute.xlu1 %v5303_v8  ;;  %v2960_v15 = vmul.f32 %v7021_v40, %v2916_v18  ;;  %v3134_v3 = vmul.f32 %v7029_v59, %v2792_v61 }
 0x2a9   :  { %v2525_v38 = vadd.f32 %v6976_v30, %v2473_v60  ;;  %v2472_v13 = vmul.f32 %v6970_v7, %v2357_v37  ;;  %v3524_v28 = vadd.f32 %v3484_v52, %v3436_v55  ;;  %v3261_v24 = vadd.f32 %v3221_v29, %v3173_v39  ;;  %4225 = vperm.xlu1 %5137, %v4195_v33   ;;  %v4198_v37 = vld [vmem:[%s8119_s8 + $0x28] sm:$0xff] }
 0x2aa   :  { %v7521_v47 = vld [vmem:[#allocation2 + $0xf8] sm:$0xff]  ;;  %v2999_v34 = vadd.f32 %v2959_v53, %v2875_v5  ;;  %v3047_v21 = vmul.f32 %v7026_v43, %v2669_v63  ;;  %v7533_v62 = vadd.f32 %v2960_v15, %v2876_v19  ;;  %v3222_v22 = vmul.f32 %v7033_v16, %v2916_v18  ;;  %5090 = vmatpush3.msra.mxu0 %v4418_v50 }
 0x2ab   :  { %v2573_v46 = vmax.f32 %v2525_v38, 0.0  ;;  %v2524_v25 = vadd.f32 %v6976_v30, %v2472_v13  ;;  %v3568_v14 = vmul.f32 %v7047_v23, %v3524_v28  ;;  %v3349_v48 = vadd.f32 %v3309_v31, %v3261_v24  ;;  %4220 = vperm.xlu0 %5136, %v4194_v58   ;;  %v4197_v38 = vld [vmem:[%s8119_s8 + $0x20] sm:$0xff]  ;;  %v4417_v31 = vld [vmem:[%s8117_s6 + $0x70] sm:$0xff] }
 0x2ac   :  { %v2793_v1 = vld [vmem:[#allocation2 + $0xe9] sm:$0xff]  ;;  %v2794_v61 = vld [vmem:[#allocation2 + $0xf1] sm:$0xff]  ;;  %v3086_v51 = vadd.f32 %v3046_v9, %v2998_v56  ;;  %v7544_v27 = vmul.f32 %v7018_v12, %v7521_v47  ;;  %v7551_v0 = vmul.f32 %v7026_v43, %v7521_v47  ;;  %v3087_v20 = vadd.f32 %v3047_v21, %v2999_v34 }
 0x2ad   :  { %v2917_v49 = vld [vmem:[#allocation2 + $0xea] sm:$0xff]  ;;  %2622 = vst.msk [vmem:[#allocation2 + $0x108] sm:$0xff] %vm2588_vm3, %v2573_v46  ;;  %v2572_v42 = vmax.f32 %v2524_v25, 0.0  ;;  %v3612_v63 = vadd.f32 %v7055_v10, %v3568_v14  ;;  %v2837_v4 = vmul.f32 %v7011_v45, %v2793_v1  ;;  %v3397_v32 = vmul.f32 %v7039_v35, %v2793_v1  ;;  %v2918_v19 = vld [vmem:[#allocation2 + $0xf2] sm:$0xff]  ;;  %4230 = vperm.xlu1 %5137, %v4196_v44  }
 0x2ae   :  { %v2670_v41 = vld [vmem:[#allocation2 + $0xf0] sm:$0xff]  ;;  %v2961_v18 = vmul.f32 %v7021_v40, %v2917_v49  ;;  %v3485_v9 = vmul.f32 %v7447_v57, %v2917_v49  ;;  %v2838_v17 = vmul.f32 %v7011_v45, %v2794_v61  ;;  %v3135_v39 = vmul.f32 %v7029_v59, %v2793_v1  ;;  %v4200_v1 = vld [vmem:[%s8119_s8 + $0x38] sm:$0xff] }
 0x2af   :  { %2621 = vst.msk [vmem:[#allocation2 + $0x100] sm:$0xff] %vm2588_vm3, %v2572_v42  ;;  %v3652_v52 = vmax.f32 %v3612_v63, 0.0  ;;  %v3437_v26 = vadd.f32 %v3397_v32, %v3349_v48  ;;  %v2714_v5 = vmul.f32 %v7018_v12, %v2670_v41  ;;  %v3223_v29 = vmul.f32 %v7033_v16, %v2917_v49  ;;  %4235 = vperm.xlu0 %5136, %v4197_v38   ;;  %v4199_v42 = vld [vmem:[%s8119_s8 + $0x30] sm:$0xff] }
 0x2b0   :  { %v4994_v60 = vpop.f32.mrf.mxu1  ;;  %v3174_v33 = vadd.f32 %v3134_v3, %v3086_v51  ;;  %v8135_v13 = vmov 0.0   ;;  %v2877_v56 = vadd.f32 %v2837_v4, %v7501_v6  ;;  %v2962_v28 = vmul.f32 %v7021_v40, %v2918_v19 }
 0x2b1   :  { %v2475_v55 = vmul.f32 %v4994_v60, %v6970_v7  ;;  %5091 = vmatprep.subr.mxu0 %v8135_v13  ;;  %5059 = vmatprep.mubr.msk.f32.mxu1 %vm2588_vm3, %v3652_v52  ;;  %v3525_v8 = vadd.f32 %v3485_v9, %v3437_v26  ;;  %v3048_v24 = vmul.f32 %v7026_v43, %v2670_v41 }
 0x2b2   :  { %v2367_v53 = vpop.f32.mrf.mxu1  ;;  %v3262_v15 = vadd.f32 %v3222_v22, %v3174_v33  ;;  %v3310_v34 = vmul.f32 %v7036_v36, %v2670_v41  ;;  %4240 = vperm.xlu1 %5137, %v4198_v37   ;;  %v2878_v6 = vadd.f32 %v2838_v17, %v2714_v5  ;;  %v3136_v3 = vmul.f32 %v7029_v59, %v2794_v61  ;;  %v4202_v37 = vld [vmem:[%s8119_s8 + $0x48] sm:$0xff] }
 0x2b3   :  { %v2527_v46 = vadd.f32 %v6976_v30, %v2475_v55  ;;  %v2474_v25 = vmul.f32 %v6970_v7, %v2367_v53  ;;  %v3569_v58 = vmul.f32 %v7047_v23, %v3525_v8  ;;  %v3175_v14 = vadd.f32 %v3135_v39, %v3087_v20  ;;  %5092 = vmatpush3.msra.mxu0 %v4417_v31 }
 0x2b4   :  { %v3350_v48 = vadd.f32 %v3310_v34, %v3262_v15  ;;  %v3398_v44 = vmul.f32 %v7039_v35, %v2794_v61  ;;  %v7585_v22 = vadd.f32 %v2961_v18, %v2877_v56  ;;  %v3311_v63 = vmul.f32 %v7036_v36, %v7521_v47  ;;  %v7590_v4 = vld [vmem:[#allocation2 + $0x108] sm:$0xff]  ;;  %5093 = vmatprep.subr.mxu0 %v8135_v13 }
 0x2b5   :  { %v2575_v49 = vmax.f32 %v2527_v46, 0.0  ;;  %v2526_v21 = vadd.f32 %v6976_v30, %v2474_v25  ;;  %v3613_v41 = vadd.f32 %v7055_v10, %v3569_v58  ;;  %v3263_v50 = vadd.f32 %v3223_v29, %v3175_v14  ;;  %4245 = vperm.xlu0 %5136, %v4199_v42   ;;  %5121 = vmatprep.mubr.msk.f32.mxu0 %vm5304_vm4, %v8135_v13 }
 0x2b6   :  { %v2795_v51 = vld [vmem:[#allocation2 + $0xf9] sm:$0xff]  ;;  %v3224_v32 = vmul.f32 %v7033_v16, %v2918_v19  ;;  %v3438_v9 = vadd.f32 %v3398_v44, %v3350_v48  ;;  %v3486_v18 = vmul.f32 %v7447_v57, %v2918_v19  ;;  %v2796_v52 = vld [vmem:[#allocation2 + $0x101] sm:$0xff]  ;;  %4250 = vperm.xlu1 %5137, %v4200_v1   ;;  %v3088_v17 = vadd.f32 %v3048_v24, %v7533_v62 }
 0x2b7   :  { %2624 = vst.msk [vmem:[#allocation2 + $0x118] sm:$0xff] %vm2588_vm3, %v2575_v49  ;;  %v2574_v61 = vmax.f32 %v2526_v21, 0.0  ;;  %v2919_v20 = vld [vmem:[#allocation2 + $0xfa] sm:$0xff]  ;;  %v3653_v26 = vmax.f32 %v3613_v41, 0.0  ;;  %v2839_v5 = vmul.f32 %v7011_v45, %v2795_v51  ;;  %v3351_v47 = vadd.f32 %v3311_v63, %v3263_v50  ;;  %v2920_v25 = vld [vmem:[#allocation2 + $0x102] sm:$0xff] }
 0x2b8   :  { %v2672_v60 = vld [vmem:[#allocation2 + $0x100] sm:$0xff]  ;;  %v7602_v55 = vadd.f32 %v2962_v28, %v2878_v6  ;;  %v3526_v19 = vadd.f32 %v3486_v18, %v3438_v9  ;;  %v3399_v39 = vmul.f32 %v7039_v35, %v2795_v51  ;;  %v7607_v29 = vmul.f32 %v7018_v12, %v7590_v4  ;;  %v4204_v1 = vld [vmem:[%s8119_s8 + $0x58] sm:$0xff] }
 0x2b9   :  { %2623 = vst.msk [vmem:[#allocation2 + $0x110] sm:$0xff] %vm2588_vm3, %v2574_v61  ;;  %v4201_v62 = vld [vmem:[%s8119_s8 + $0x40] sm:$0xff]  ;;  %5060 = vmatmul.mubr.msk.f32.gmra.mxu1 %vm2588_vm3, %v3653_v26  ;;  %v2963_v38 = vmul.f32 %v7021_v40, %v2919_v20  ;;  %v2716_v53 = vmul.f32 %v7018_v12, %v2672_v60  ;;  %v2840_v56 = vmul.f32 %v7011_v45, %v2796_v52 }
 0x2ba   :  { %v4997_v33 = vpop.f32.mrf.mxu1  ;;  %v7618_v8 = vmul.f32 %v7026_v43, %v7590_v4  ;;  %v3570_v24 = vmul.f32 %v7047_v23, %v3526_v19  ;;  %v3439_v31 = vadd.f32 %v3399_v39, %v3351_v47  ;;  %v3487_v46 = vmul.f32 %v7447_v57, %v2919_v20  ;;  %4260 = vperm.xlu1 %5137, %v4202_v37  }
 0x2bb   :  { %v2477_v28 = vmul.f32 %v4997_v33, %v6970_v7  ;;  %v2879_v34 = vadd.f32 %v2839_v5, %v7544_v27  ;;  %v3137_v58 = vmul.f32 %v7029_v59, %v2795_v51  ;;  %v3225_v6 = vmul.f32 %v7033_v16, %v2919_v20  ;;  %4255 = vperm.xlu0 %5136, %v4201_v62   ;;  %v4203_v27 = vld [vmem:[%s8119_s8 + $0x50] sm:$0xff] }
 0x2bc   :  { %v2377_v15 = vpop.f32.mrf.mxu1  ;;  %v3176_v14 = vadd.f32 %v3136_v3, %v3088_v17  ;;  %v3614_v48 = vadd.f32 %v7055_v10, %v3570_v24  ;;  %v3527_v44 = vadd.f32 %v3487_v46, %v3439_v31  ;;  %v2880_v42 = vadd.f32 %v2840_v56, %v2716_v53 }
 0x2bd   :  { %v2529_v49 = vadd.f32 %v6976_v30, %v2477_v28  ;;  %v2476_v21 = vmul.f32 %v6970_v7, %v2377_v15  ;;  %v2964_v41 = vmul.f32 %v7021_v40, %v2920_v25  ;;  %v3312_v51 = vmul.f32 %v7036_v36, %v2672_v60 }
 0x2be   :  { %v3264_v3 = vadd.f32 %v3224_v32, %v3176_v14  ;;  %v3654_v61 = vmax.f32 %v3614_v48, 0.0  ;;  %v3571_v9 = vmul.f32 %v7047_v23, %v3527_v44  ;;  %4270 = vperm.xlu1 %5137, %v4204_v1   ;;  %v3050_v18 = vmul.f32 %v7026_v43, %v2672_v60  ;;  %v4206_v32 = vld [vmem:[%s8119_s8 + $0x68] sm:$0xff]  ;;  %v4208_v1 = vld [vmem:[%s8119_s8 + $0x78] sm:$0xff] }
 0x2bf   :  { %v2577_v50 = vmax.f32 %v2529_v49, 0.0  ;;  %v2528_v63 = vadd.f32 %v6976_v30, %v2476_v21  ;;  %v3400_v26 = vmul.f32 %v7039_v35, %v2796_v52  ;;  %v3089_v47 = vadd.f32 %v7551_v0, %v7585_v22  ;;  %4265 = vperm.xlu0 %5136, %v4203_v27   ;;  %v4205_v0 = vld [vmem:[%s8119_s8 + $0x60] sm:$0xff] }
 0x2c0   :  { %v3352_v20 = vadd.f32 %v3312_v51, %v3264_v3  ;;  %v2797_v5 = vld [vmem:[#allocation2 + $0x109] sm:$0xff]  ;;  %5062 = vmatprep.mubr.msk.f32.mxu1 %vm2588_vm3, %v3654_v61  ;;  %v7648_v37 = vadd.f32 %v2963_v38, %v2879_v34  ;;  %v3615_v60 = vadd.f32 %v7055_v10, %v3571_v9  ;;  %v3138_v22 = vmul.f32 %v7029_v59, %v2796_v52  ;;  %v2798_v28 = vld [vmem:[#allocation2 + $0x111] sm:$0xff] }
 0x2c1   :  { %2626 = vst.msk [vmem:[#allocation2 + $0x128] sm:$0xff] %vm2588_vm3, %v2577_v50  ;;  %v2576_v17 = vmax.f32 %v2528_v63, 0.0  ;;  %v2841_v19 = vmul.f32 %v7011_v45, %v2797_v5  ;;  %v2921_v39 = vld [vmem:[#allocation2 + $0x10a] sm:$0xff]  ;;  %v3488_v33 = vmul.f32 %v7447_v57, %v2920_v25  ;;  %v3177_v53 = vadd.f32 %v3137_v58, %v3089_v47 }
 0x2c2   :  { %v3440_v62 = vadd.f32 %v3400_v26, %v3352_v20  ;;  %v2674_v56 = vld [vmem:[#allocation2 + $0x110] sm:$0xff]  ;;  %v3655_v38 = vmax.f32 %v3615_v60, 0.0  ;;  %v7658_v24 = vadd.f32 %v2964_v41, %v2880_v42  ;;  %v3226_v31 = vmul.f32 %v7033_v16, %v2920_v25  ;;  %4280 = vperm.xlu1 %5137, %v4206_v32   ;;  %v4416_v61 = vld [vmem:[%s8117_s6 + $0x68] sm:$0xff] }
 0x2c3   :  { %2625 = vst.msk [vmem:[#allocation2 + $0x120] sm:$0xff] %vm2588_vm3, %v2576_v17  ;;  %v3313_v46 = vmul.f32 %v7036_v36, %v7590_v4  ;;  %v2881_v52 = vadd.f32 %v2841_v19, %v7607_v29  ;;  %v2965_v14 = vmul.f32 %v7021_v40, %v2921_v39  ;;  %v3265_v58 = vadd.f32 %v3225_v6, %v3177_v53  ;;  %v4207_v29 = vld [vmem:[%s8119_s8 + $0x70] sm:$0xff] }
 0x2c4   :  { %v5000_v15 = vpop.f32.mrf.mxu1  ;;  %v3528_v34 = vadd.f32 %v3488_v33, %v3440_v62  ;;  %4275 = vperm.xlu0 %5136, %v4205_v0   ;;  %5063 = vmatmul.mubr.msk.f32.gmra.mxu1 %vm2588_vm3, %v3655_v38  ;;  %v3139_v25 = vmul.f32 %v7029_v59, %v2797_v5  ;;  %v2718_v4 = vmul.f32 %v7018_v12, %v2674_v56  ;;  %v2922_v42 = vld [vmem:[#allocation2 + $0x112] sm:$0xff] }
 0x2c5   :  { %v2479_v49 = vmul.f32 %v5000_v15, %v6970_v7  ;;  %v2842_v21 = vmul.f32 %v7011_v45, %v2798_v28  ;;  %v3353_v44 = vadd.f32 %v3313_v46, %v3265_v58  ;;  %v3401_v27 = vmul.f32 %v7039_v35, %v2797_v5  ;;  %5094 = vmatpush3.msra.mxu0 %v4416_v61  ;;  %v2675_v62 = vld [vmem:[#allocation2 + $0x118] sm:$0xff] }
 0x2c6   :  { %v2387_v6 = vpop.f32.mrf.mxu1  ;;  %v3572_v48 = vmul.f32 %v7047_v23, %v3528_v34  ;;  %v3090_v41 = vadd.f32 %v3050_v18, %v7602_v55  ;;  %v3227_v50 = vmul.f32 %v7033_v16, %v2921_v39  ;;  %v3489_v63 = vmul.f32 %v7447_v57, %v2921_v39  ;;  %4290 = vperm.xlu1 %5137, %v4208_v1   ;;  %v4210_v55 = vld [vmem:[%s8119_s8 + $0x88] sm:$0xff] }
 0x2c7   :  { %v2531_v3 = vadd.f32 %v6976_v30, %v2479_v49  ;;  %v2478_v51 = vmul.f32 %v6970_v7, %v2387_v6  ;;  %v7687_v20 = vadd.f32 %v2965_v14, %v2881_v52  ;;  %v3441_v26 = vadd.f32 %v3401_v27, %v3353_v44  ;;  %5095 = vmatprep.subr.mxu0 %v8135_v13  ;;  %v4211_v44 = vld [vmem:[%s8119_s8 + $0x90] sm:$0xff] }
 0x2c8   :  { %v3616_v9 = vadd.f32 %v7055_v10, %v3572_v48  ;;  %v3178_v5 = vadd.f32 %v3138_v22, %v3090_v41  ;;  %4285 = vperm.xlu0 %5136, %v4207_v29   ;;  %v2882_v32 = vadd.f32 %v2842_v21, %v2718_v4  ;;  %v2966_v17 = vmul.f32 %v7021_v40, %v2922_v42  ;;  %v4209_v22 = vld [vmem:[%s8119_s8 + $0x80] sm:$0xff] }
 0x2c9   :  { %v2579_v18 = vmax.f32 %v2531_v3, 0.0  ;;  %v2530_v47 = vadd.f32 %v6976_v30, %v2478_v51  ;;  %v3529_v19 = vadd.f32 %v3489_v63, %v3441_v26  ;;  %v3314_v0 = vmul.f32 %v7036_v36, %v2674_v56 }
 0x2ca   :  { %v3656_v60 = vmax.f32 %v3616_v9, 0.0  ;;  %v3266_v39 = vadd.f32 %v3226_v31, %v3178_v5  ;;  %v2799_v33 = vld [vmem:[#allocation2 + $0x119] sm:$0xff]  ;;  %v3052_v38 = vmul.f32 %v7026_v43, %v2674_v56  ;;  %v3140_v46 = vmul.f32 %v7029_v59, %v2798_v28  ;;  %4300 = vperm.xlu1 %5137, %v4210_v55   ;;  %v7708_v49 = vld [vmem:[#allocation2 + $0x121] sm:$0xff] }
 0x2cb   :  { %2628 = vst.msk [vmem:[#allocation2 + $0x138] sm:$0xff] %vm2588_vm3, %v2579_v18  ;;  %v2578_v53 = vmax.f32 %v2530_v47, 0.0  ;;  %v3228_v15 = vmul.f32 %v7033_v16, %v2922_v42  ;;  %v2923_v31 = vld [vmem:[#allocation2 + $0x11a] sm:$0xff]  ;;  %v3573_v34 = vmul.f32 %v7047_v23, %v3529_v19  ;;  %v3402_v14 = vmul.f32 %v7039_v35, %v2798_v28 }
 0x2cc   :  { %5065 = vmatprep.mubr.msk.f32.mxu1 %vm2588_vm3, %v3656_v60  ;;  %v3354_v52 = vadd.f32 %v3314_v0, %v3266_v39  ;;  %v3091_v58 = vadd.f32 %v7618_v8, %v7648_v37  ;;  %v2676_v1 = vld [vmem:[#allocation2 + $0x120] sm:$0xff]  ;;  %v4212_v56 = vld [vmem:[%s8119_s8 + $0x98] sm:$0xff]  ;;  %v7714_v4 = vadd.f32 %v2966_v17, %v2882_v32  ;;  %v3490_v21 = vmul.f32 %v7447_v57, %v2922_v42 }
 0x2cd   :  { %2627 = vst.msk [vmem:[#allocation2 + $0x130] sm:$0xff] %vm2588_vm3, %v2578_v53  ;;  %v2719_v29 = vmul.f32 %v7018_v12, %v2675_v62  ;;  %v2843_v28 = vmul.f32 %v7011_v45, %v2799_v33  ;;  %4295 = vperm.xlu0 %5136, %v4209_v22   ;;  %v3617_v8 = vadd.f32 %v7055_v10, %v3573_v34  ;;  %v2924_v39 = vld [vmem:[#allocation2 + $0x122] sm:$0xff] }
 0x2ce   :  { %v3442_v37 = vadd.f32 %v3402_v14, %v3354_v52  ;;  %v2967_v6 = vmul.f32 %v7021_v40, %v2923_v31  ;;  %v3179_v48 = vadd.f32 %v3139_v25, %v3091_v58  ;;  %v3053_v41 = vmul.f32 %v7026_v43, %v2675_v62  ;;  %4310 = vperm.xlu1 %5137, %v4212_v56  }
 0x2cf   :  { %v5003_v27 = vpop.f32.mrf.mxu1  ;;  %v3315_v42 = vmul.f32 %v7036_v36, %v2675_v62  ;;  %v2720_v3 = vmul.f32 %v7018_v12, %v2676_v1  ;;  %v2844_v51 = vmul.f32 %v7011_v45, %v7708_v49  ;;  %v3657_v61 = vmax.f32 %v3617_v8, 0.0 }
 0x2d0   :  { %v2481_v63 = vmul.f32 %v5003_v27, %v6970_v7  ;;  %v3530_v9 = vadd.f32 %v3490_v21, %v3442_v37  ;;  %v3267_v25 = vadd.f32 %v3227_v50, %v3179_v48  ;;  %v2883_v5 = vadd.f32 %v2843_v28, %v2719_v29  ;;  %v2677_v21 = vld [vmem:[#allocation2 + $0x128] sm:$0xff] }
 0x2d1   :  { %v2397_v26 = vpop.f32.mrf.mxu1  ;;  %v3141_v55 = vmul.f32 %v7029_v59, %v2799_v33  ;;  %v3403_v18 = vmul.f32 %v7039_v35, %v2799_v33  ;;  %v3092_v47 = vadd.f32 %v3052_v38, %v7658_v24  ;;  %4305 = vperm.xlu0 %5136, %v4211_v44   ;;  %5066 = vmatmul.mubr.msk.f32.gmra.mxu1 %vm2588_vm3, %v3657_v61 }
 0x2d2   :  { %v2533_v32 = vadd.f32 %v6976_v30, %v2481_v63  ;;  %v2480_v17 = vmul.f32 %v6970_v7, %v2397_v26  ;;  %v3574_v60 = vmul.f32 %v7047_v23, %v3530_v9  ;;  %v3355_v19 = vadd.f32 %v3315_v42, %v3267_v25 }
 0x2d3   :  { %v3229_v50 = vmul.f32 %v7033_v16, %v2923_v31  ;;  %v3491_v0 = vmul.f32 %v7447_v57, %v2923_v31  ;;  %v2884_v62 = vadd.f32 %v2844_v51, %v2720_v3  ;;  %v3180_v22 = vadd.f32 %v3140_v46, %v3092_v47 }
 0x2d4   :  { %v2581_v33 = vmax.f32 %v2533_v32, 0.0  ;;  %v2532_v24 = vadd.f32 %v6976_v30, %v2480_v17  ;;  %v3618_v53 = vadd.f32 %v7055_v10, %v3574_v60  ;;  %v3443_v38 = vadd.f32 %v3403_v18, %v3355_v19  ;;  %v2801_v34 = vld [vmem:[#allocation2 + $0x129] sm:$0xff]  ;;  %v2802_v26 = vld [vmem:[#allocation2 + $0x131] sm:$0xff] }
 0x2d5   :  { %v7741_v52 = vadd.f32 %v2967_v6, %v2883_v5  ;;  %v2968_v14 = vmul.f32 %v7021_v40, %v2924_v39  ;;  %v3268_v58 = vadd.f32 %v3228_v15, %v3180_v22  ;;  %v3316_v56 = vmul.f32 %v7036_v36, %v2676_v1  ;;  %v2925_v44 = vld [vmem:[#allocation2 + $0x12a] sm:$0xff]  ;;  %v4415_v22 = vld [vmem:[%s8117_s6 + $0x60] sm:$0xff] }
 0x2d6   :  { %2630 = vst.msk [vmem:[#allocation2 + $0x148] sm:$0xff] %vm2588_vm3, %v2581_v33  ;;  %v2580_v31 = vmax.f32 %v2532_v24, 0.0  ;;  %v3658_v29 = vmax.f32 %v3618_v53, 0.0  ;;  %v3531_v46 = vadd.f32 %v3491_v0, %v3443_v38  ;;  %v3054_v28 = vmul.f32 %v7026_v43, %v2676_v1  ;;  %v2678_v25 = vld [vmem:[#allocation2 + $0x130] sm:$0xff]  ;;  %5096 = vmatpush3.msra.mxu0 %v4415_v22 }
 0x2d7   :  { %v7747_v8 = vadd.f32 %v2968_v14, %v2884_v62  ;;  %v3356_v37 = vadd.f32 %v3316_v56, %v3268_v58  ;;  %v3404_v6 = vmul.f32 %v7039_v35, %v7708_v49  ;;  %v2845_v48 = vmul.f32 %v7011_v45, %v2801_v34  ;;  %v2926_v58 = vld [vmem:[#allocation2 + $0x132] sm:$0xff]  ;;  %5097 = vmatprep.subr.mxu0 %v8135_v13 }
 0x2d8   :  { %2629 = vst.msk [vmem:[#allocation2 + $0x140] sm:$0xff] %vm2588_vm3, %v2580_v31  ;;  %v5006_v15 = vpop.f32.mrf.mxu1  ;;  %5068 = vmatprep.mubr.msk.f32.mxu1 %vm2588_vm3, %v3658_v29  ;;  %v3575_v27 = vmul.f32 %v7047_v23, %v3531_v46  ;;  %v3142_v42 = vmul.f32 %v7029_v59, %v7708_v49  ;;  %v2721_v1 = vmul.f32 %v7018_v12, %v2677_v21 }
 0x2d9   :  { %v3093_v3 = vadd.f32 %v3053_v41, %v7687_v20  ;;  %v2483_v51 = vmul.f32 %v5006_v15, %v6970_v7  ;;  %v3230_v63 = vmul.f32 %v7033_v16, %v2924_v39  ;;  %v3444_v61 = vadd.f32 %v3404_v6, %v3356_v37 }
 0x2da   :  { %v3492_v9 = vmul.f32 %v7447_v57, %v2924_v39  ;;  %v2407_v5 = vpop.f32.mrf.mxu1  ;;  %v3619_v18 = vadd.f32 %v7055_v10, %v3575_v27  ;;  %v2885_v47 = vadd.f32 %v2845_v48, %v2721_v1  ;;  %v2969_v32 = vmul.f32 %v7021_v40, %v2925_v44  ;;  %v2679_v27 = vld [vmem:[#allocation2 + $0x138] sm:$0xff] }
 0x2db   :  { %v3181_v49 = vadd.f32 %v3141_v55, %v3093_v3  ;;  %v2535_v17 = vadd.f32 %v6976_v30, %v2483_v51  ;;  %v2482_v20 = vmul.f32 %v6970_v7, %v2407_v5  ;;  %v3317_v60 = vmul.f32 %v7036_v36, %v2677_v21 }
 0x2dc   :  { %v3532_v41 = vadd.f32 %v3492_v9, %v3444_v61  ;;  %v3659_v19 = vmax.f32 %v3619_v18, 0.0  ;;  %v2722_v39 = vmul.f32 %v7018_v12, %v2678_v25  ;;  %v2846_v62 = vmul.f32 %v7011_v45, %v2802_v26 }
 0x2dd   :  { %v3269_v0 = vadd.f32 %v3229_v50, %v3181_v49  ;;  %v2583_v33 = vmax.f32 %v2535_v17, 0.0  ;;  %v2534_v55 = vadd.f32 %v6976_v30, %v2482_v20  ;;  %v3055_v53 = vmul.f32 %v7026_v43, %v2677_v21 }
 0x2de   :  { %v3576_v24 = vmul.f32 %v7047_v23, %v3532_v41  ;;  %5069 = vmatmul.mubr.msk.f32.gmra.mxu1 %vm2588_vm3, %v3659_v19  ;;  %v3143_v50 = vmul.f32 %v7029_v59, %v2801_v34  ;;  %v3405_v14 = vmul.f32 %v7039_v35, %v2801_v34  ;;  %v3094_v56 = vadd.f32 %v3054_v28, %v7714_v4 }
 0x2df   :  { %v3357_v38 = vadd.f32 %v3317_v60, %v3269_v0  ;;  %2632 = vst.msk [vmem:[#allocation2 + $0x158] sm:$0xff] %vm2588_vm3, %v2583_v33  ;;  %v2582_v31 = vmax.f32 %v2534_v55, 0.0  ;;  %v3231_v46 = vmul.f32 %v7033_v16, %v2925_v44  ;;  %v2886_v37 = vadd.f32 %v2846_v62, %v2722_v39  ;;  %v2803_v21 = vld [vmem:[#allocation2 + $0x139] sm:$0xff]  ;;  %v7803_v60 = vld [vmem:[#allocation2 + $0x141] sm:$0xff] }
 0x2e0   :  { %v3620_v29 = vadd.f32 %v7055_v10, %v3576_v24  ;;  %v7783_v6 = vadd.f32 %v2969_v32, %v2885_v47  ;;  %v3493_v15 = vmul.f32 %v7447_v57, %v2925_v44  ;;  %v3182_v34 = vadd.f32 %v3142_v42, %v3094_v56  ;;  %v2927_v18 = vld [vmem:[#allocation2 + $0x13a] sm:$0xff] }
 0x2e1   :  { %v3445_v48 = vadd.f32 %v3405_v14, %v3357_v38  ;;  %2631 = vst.msk [vmem:[#allocation2 + $0x150] sm:$0xff] %vm2588_vm3, %v2582_v31  ;;  %v2970_v28 = vmul.f32 %v7021_v40, %v2926_v58  ;;  %v3056_v1 = vmul.f32 %v7026_v43, %v2678_v25  ;;  %v3144_v3 = vmul.f32 %v7029_v59, %v2802_v26  ;;  %v2680_v41 = vld [vmem:[#allocation2 + $0x140] sm:$0xff] }
 0x2e2   :  { %v3660_v4 = vmax.f32 %v3620_v29, 0.0  ;;  %v3270_v61 = vadd.f32 %v3230_v63, %v3182_v34  ;;  %v3318_v9 = vmul.f32 %v7036_v36, %v2678_v25  ;;  %v2847_v5 = vmul.f32 %v7011_v45, %v2803_v21 }
 0x2e3   :  { %v3533_v51 = vadd.f32 %v3493_v15, %v3445_v48  ;;  %v5009_v47 = vpop.f32.mrf.mxu1  ;;  %v7793_v44 = vadd.f32 %v2970_v28, %v2886_v37  ;;  %v7796_v42 = vmul.f32 %v7033_v16, %v2926_v58  ;;  %v2723_v32 = vmul.f32 %v7018_v12, %v2679_v27  ;;  %v2928_v15 = vld [vmem:[#allocation2 + $0x142] sm:$0xff] }
 0x2e4   :  { %5071 = vmatprep.mubr.msk.f32.mxu1 %vm2588_vm3, %v3660_v4  ;;  %v3095_v49 = vadd.f32 %v3055_v53, %v7741_v52  ;;  %v2485_v17 = vmul.f32 %v5009_v47, %v6970_v7  ;;  %v3358_v25 = vadd.f32 %v3318_v9, %v3270_v61  ;;  %v3406_v20 = vmul.f32 %v7039_v35, %v2802_v26  ;;  %v4414_v26 = vld [vmem:[%s8117_s6 + $0x58] sm:$0xff]  ;;  %v7834_v47 = vld [vmem:[#allocation9 + $0x8] ss:$0 sm:$0xff] }
 0x2e5   :  { %v3577_v63 = vmul.f32 %v7047_v23, %v3533_v51  ;;  %v2417_v19 = vpop.f32.mrf.mxu1  ;;  %v3494_v0 = vmul.f32 %v7447_v57, %v2926_v58  ;;  %v2887_v39 = vadd.f32 %v2847_v5, %v2723_v32  ;;  %v2971_v62 = vmul.f32 %v7021_v40, %v2927_v18  ;;  %5098 = vmatpush3.msra.mxu0 %v4414_v26 }
 0x2e6   :  { %v3183_v22 = vadd.f32 %v3143_v50, %v3095_v49  ;;  %v2537_v33 = vadd.f32 %v6976_v30, %v2485_v17  ;;  %v2484_v52 = vmul.f32 %v6970_v7, %v2417_v19  ;;  %v3446_v24 = vadd.f32 %v3406_v20, %v3358_v25  ;;  %5099 = vmatprep.subr.mxu0 %v8135_v13  ;;  %v2681_v25 = vld [vmem:[#allocation2 + $0x148] sm:$0xff] }
 0x2e7   :  { %v3621_v55 = vadd.f32 %v7055_v10, %v3577_v63  ;;  %v3319_v38 = vmul.f32 %v7036_v36, %v2679_v27  ;;  %v2724_v57 = vmul.f32 %v7018_v12, %v2680_v41  ;;  %v2848_v14 = vmul.f32 %v7011_v45, %v7803_v60 }
 0x2e8   :  { %v3271_v53 = vadd.f32 %v3231_v46, %v3183_v22  ;;  %v2585_v50 = vmax.f32 %v2537_v33, 0.0  ;;  %v2536_v58 = vadd.f32 %v6976_v30, %v2484_v52  ;;  %v3534_v31 = vadd.f32 %v3494_v0, %v3446_v24  ;;  %v7826_v61 = vld [vmem:[#allocation2 + $0x149] sm:$0xff] }
 0x2e9   :  { %v3661_v56 = vmax.f32 %v3621_v55, 0.0  ;;  %v3057_v29 = vmul.f32 %v7026_v43, %v2679_v27  ;;  %v3145_v37 = vmul.f32 %v7029_v59, %v2803_v21  ;;  %v3407_v48 = vmul.f32 %v7039_v35, %v2803_v21  ;;  %v4413_v27 = vld [vmem:[%s8117_s6 + $0x50] sm:$0xff] }
 0x2ea   :  { %v3359_v46 = vadd.f32 %v3319_v38, %v3271_v53  ;;  %2634 = vst.msk [vmem:[#allocation2 + $0x168] sm:$0xff] %vm2588_vm3, %v2585_v50  ;;  %v2584_v34 = vmax.f32 %v2536_v58, 0.0  ;;  %v3578_v4 = vmul.f32 %v7047_v23, %v3534_v31  ;;  %v2888_v28 = vadd.f32 %v2848_v14, %v2724_v57  ;;  %5100 = vmatpush3.msra.mxu0 %v4413_v27  ;;  %v2929_v53 = vld [vmem:[#allocation2 + $0x14a] sm:$0xff] }
 0x2eb   :  { %5072 = vmatmul.mubr.msk.f32.gmra.mxu1 %vm2588_vm3, %v3661_v56  ;;  %v3096_v51 = vadd.f32 %v3056_v1, %v7747_v8  ;;  %v7831_v9 = vadd.f32 %v2971_v62, %v2887_v39  ;;  %v3233_v21 = vmul.f32 %v7033_v16, %v2927_v18  ;;  %v3495_v32 = vmul.f32 %v7834_v47, %v2927_v18  ;;  %v2806_v31 = vld [vmem:[#allocation2 + $0x151] sm:$0xff] }
 0x2ec   :  { %v3447_v5 = vadd.f32 %v3407_v48, %v3359_v46  ;;  %2633 = vst.msk [vmem:[#allocation2 + $0x160] sm:$0xff] %vm2588_vm3, %v2584_v34  ;;  %v5012_v49 = vpop.f32.mrf.mxu1  ;;  %v3622_v8 = vadd.f32 %v7055_v10, %v3578_v4  ;;  %v2972_v1 = vmul.f32 %v7021_v40, %v2928_v15  ;;  %v3058_v17 = vmul.f32 %v7026_v43, %v2680_v41 }
 0x2ed   :  { %v3184_v63 = vadd.f32 %v3144_v3, %v3096_v51  ;;  %5101 = vmatprep.subr.mxu0 %v8135_v13  ;;  %v2487_v20 = vmul.f32 %v5012_v49, %v6970_v7  ;;  %v3146_v18 = vmul.f32 %v7029_v59, %v7803_v60  ;;  %v2849_v0 = vmul.f32 %v7011_v45, %v7826_v61 }
 0x2ee   :  { %v3535_v19 = vadd.f32 %v3495_v32, %v3447_v5  ;;  %v2427_v39 = vpop.f32.mrf.mxu1  ;;  %v3662_v62 = vmax.f32 %v3622_v8, 0.0  ;;  %v7847_v22 = vadd.f32 %v2972_v1, %v2888_v28  ;;  %v3320_v3 = vmul.f32 %v7036_v36, %v2680_v41  ;;  %v2682_v41 = vld [vmem:[#allocation2 + $0x150] sm:$0xff]  ;;  %v2683_v1 = vld [vmem:[#allocation2 + $0x158] sm:$0xff] }
 0x2ef   :  { %v3272_v33 = vadd.f32 %v7796_v42, %v3184_v63  ;;  %v2539_v52 = vadd.f32 %v6976_v30, %v2487_v20  ;;  %v2486_v55 = vmul.f32 %v6970_v7, %v2427_v39  ;;  %v2725_v26 = vmul.f32 %v7018_v12, %v2681_v25  ;;  %v2930_v32 = vld [vmem:[#allocation2 + $0x152] sm:$0xff] }
 0x2f0   :  { %v3579_v24 = vmul.f32 %v7047_v23, %v3535_v19  ;;  %5074 = vmatprep.mubr.msk.f32.mxu1 %vm2588_vm3, %v3662_v62  ;;  %v3234_v38 = vmul.f32 %v7033_v16, %v2928_v15  ;;  %v3408_v14 = vmul.f32 %v7039_v35, %v7803_v60  ;;  %v3097_v42 = vadd.f32 %v3057_v29, %v7783_v6 }
 0x2f1   :  { %v3360_v57 = vadd.f32 %v3320_v3, %v3272_v33  ;;  %v2587_v50 = vmax.f32 %v2539_v52, 0.0  ;;  %v2538_v58 = vadd.f32 %v6976_v30, %v2486_v55  ;;  %v2889_v56 = vadd.f32 %v2849_v0, %v2725_v26 }
 0x2f2   :  { %v3623_v7 = vadd.f32 %v7055_v10, %v3579_v24  ;;  %v3496_v48 = vmul.f32 %v7834_v47, %v2928_v15  ;;  %v2973_v34 = vmul.f32 %v7021_v40, %v2929_v53  ;;  %v3185_v4 = vadd.f32 %v3145_v37, %v3097_v42 }
 0x2f3   :  { %v3448_v46 = vadd.f32 %v3408_v14, %v3360_v57  ;;  %2636 = vst.msk [vmem:[#allocation2 + $0x178] sm:$0xff] %vm2588_vm3, %v2587_v50  ;;  %v2586_v28 = vmax.f32 %v2538_v58, 0.0  ;;  %v3059_v6 = vmul.f32 %v7026_v43, %v2681_v25  ;;  %v2726_v29 = vmul.f32 %v7018_v12, %v2682_v41  ;;  %v2807_v63 = vld [vmem:[#allocation2 + $0x159] sm:$0xff] }
 0x2f4   :  { %v3663_v60 = vmax.f32 %v3623_v7, 0.0  ;;  %v3273_v30 = vadd.f32 %v3233_v21, %v3185_v4  ;;  %v3321_v27 = vmul.f32 %v7036_v36, %v2681_v25  ;;  %v2850_v5 = vmul.f32 %v7011_v45, %v2806_v31  ;;  %v2931_v26 = vld [vmem:[#allocation2 + $0x15a] sm:$0xff] }
 0x2f5   :  { %v3536_v51 = vadd.f32 %v3496_v48, %v3448_v46  ;;  %2635 = vst.msk [vmem:[#allocation2 + $0x170] sm:$0xff] %vm2588_vm3, %v2586_v28  ;;  %v3013_v37 = vadd.f32 %v2973_v34, %v2889_v56  ;;  %v3147_v15 = vmul.f32 %v7029_v59, %v7826_v61  ;;  %v3235_v49 = vmul.f32 %v7033_v16, %v2929_v53  ;;  %v3018_v34 = vld [vmem:[#allocation2 + $0x160] sm:$0xff] }
 0x2f6   :  { %5075 = vmatmul.mubr.msk.f32.gmra.mxu1 %vm2588_vm3, %v3663_v60  ;;  %v3098_v8 = vadd.f32 %v3058_v17, %v7793_v44  ;;  %v3361_v25 = vadd.f32 %v3321_v27, %v3273_v30  ;;  %v3409_v20 = vmul.f32 %v7039_v35, %v7826_v61  ;;  %v3497_v19 = vmul.f32 %v7834_v47, %v2929_v53  ;;  %v3106_v27 = vld [vmem:[#allocation2 + $0x161] sm:$0xff] }
 0x2f7   :  { %v3580_v21 = vmul.f32 %v7047_v23, %v3536_v51  ;;  %v2890_v0 = vadd.f32 %v2850_v5, %v2726_v29  ;;  %v2974_v39 = vmul.f32 %v7021_v40, %v2930_v32  ;;  %v3060_v62 = vmul.f32 %v7026_v43, %v2682_v41 }
 0x2f8   :  { %v3186_v33 = vadd.f32 %v3146_v18, %v3098_v8  ;;  %v3449_v52 = vadd.f32 %v3409_v20, %v3361_v25  ;;  %v2727_v44 = vmul.f32 %v7018_v12, %v2683_v1  ;;  %v2851_v17 = vmul.f32 %v7011_v45, %v2807_v63 }
 0x2f9   :  { %v3624_v3 = vadd.f32 %v7055_v10, %v3580_v21  ;;  %v3148_v55 = vmul.f32 %v7029_v59, %v2806_v31  ;;  %v3322_v61 = vmul.f32 %v7036_v36, %v2682_v41  ;;  %v3099_v53 = vadd.f32 %v3059_v6, %v7831_v9 }
 0x2fa   :  { %v3274_v24 = vadd.f32 %v3234_v38, %v3186_v33  ;;  %v3537_v14 = vadd.f32 %v3497_v19, %v3449_v52  ;;  %v3236_v42 = vmul.f32 %v7033_v16, %v2930_v32  ;;  %v2891_v18 = vadd.f32 %v2851_v17, %v2727_v44  ;;  %v3019_v19 = vld [vmem:[#allocation2 + $0x168] sm:$0xff] }
 0x2fb   :  { %v3664_v57 = vmax.f32 %v3624_v3, 0.0  ;;  %v3410_v58 = vmul.f32 %v7039_v35, %v2806_v31  ;;  %v3498_v12 = vmul.f32 %v7834_v47, %v2930_v32  ;;  %v3187_v7 = vadd.f32 %v3147_v15, %v3099_v53  ;;  %v4412_v31 = vld [vmem:[%s8117_s6 + $0x48] sm:$0xff] }
 0x2fc   :  { %v3362_v50 = vadd.f32 %v3322_v61, %v3274_v24  ;;  %v3581_v45 = vmul.f32 %v7047_v23, %v3537_v14  ;;  %v3014_v38 = vadd.f32 %v2974_v39, %v2890_v0  ;;  %v2975_v41 = vmul.f32 %v7021_v40, %v2931_v26  ;;  %5102 = vmatpush3.msra.mxu0 %v4412_v31  ;;  %v3194_v32 = vld [vmem:[#allocation2 + $0x162] sm:$0xff]  ;;  %v3195_v24 = vld [vmem:[#allocation2 + $0x16a] sm:$0xff] }
 0x2fd   :  { %5077 = vmatprep.mubr.msk.f32.mxu1 %vm2588_vm3, %v3664_v57  ;;  %v3061_v9 = vmul.f32 %v7026_v43, %v2683_v1  ;;  %v3275_v46 = vadd.f32 %v3235_v49, %v3187_v7  ;;  %v3323_v48 = vmul.f32 %v7036_v36, %v2683_v1  ;;  %v3100_v4 = vadd.f32 %v3060_v62, %v7847_v22 }
 0x2fe   :  { %v3450_v56 = vadd.f32 %v3410_v58, %v3362_v50  ;;  %v3625_v28 = vadd.f32 %v7055_v10, %v3581_v45  ;;  %v3015_v60 = vadd.f32 %v2975_v41, %v2891_v18  ;;  %v3149_v6 = vmul.f32 %v7029_v59, %v2807_v63  ;;  %5103 = vmatprep.subr.mxu0 %v8135_v13  ;;  %v3282_v50 = vld [vmem:[#allocation2 + $0x170] sm:$0xff] }
 0x2ff   :  { %v3237_v40 = vmul.f32 %v7033_v16, %v2931_v26  ;;  %v3363_v51 = vadd.f32 %v3323_v48, %v3275_v46  ;;  %v3411_v30 = vmul.f32 %v7039_v35, %v2807_v63  ;;  %v3188_v5 = vadd.f32 %v3148_v55, %v3100_v4  ;;  %v4411_v63 = vld [vmem:[%s8117_s6 + $0x40] sm:$0xff]  ;;  %v3370_v45 = vld [vmem:[#allocation2 + $0x171] sm:$0xff] }
 0x300   :  { %v3538_v29 = vadd.f32 %v3498_v12, %v3450_v56  ;;  %v3665_v22 = vmax.f32 %v3625_v28, 0.0  ;;  %v3499_v15 = vmul.f32 %v7834_v47, %v2931_v26  ;;  %v3062_v49 = vmul.f32 %v7026_v43, %v3018_v34  ;;  %5104 = vmatpush3.msra.mxu0 %v4411_v63  ;;  %v3283_v46 = vld [vmem:[#allocation2 + $0x178] sm:$0xff] }
 0x301   :  { %v3101_v8 = vadd.f32 %v3061_v9, %v3013_v37  ;;  %v3451_v21 = vadd.f32 %v3411_v30, %v3363_v51  ;;  %v3276_v25 = vadd.f32 %v3236_v42, %v3188_v5  ;;  %v3324_v20 = vmul.f32 %v7036_v36, %v3018_v34  ;;  %v3107_v37 = vld [vmem:[#allocation2 + $0x169] sm:$0xff]  ;;  %5105 = vmatprep.subr.mxu0 %v8135_v13  ;;  %v3458_v4 = vld [vmem:[#allocation2 + $0x172] sm:$0xff] }
 0x302   :  { %v3582_v1 = vmul.f32 %v7047_v23, %v3538_v29  ;;  %5078 = vmatmul.mubr.msk.f32.gmra.mxu1 %vm2588_vm3, %v3665_v22  ;;  %v3150_v0 = vmul.f32 %v7029_v59, %v3106_v27  ;;  %v3238_v39 = vmul.f32 %v7033_v16, %v3194_v32  ;;  %v3412_v62 = vmul.f32 %v7039_v35, %v3106_v27 }
 0x303   :  { %v3189_v33 = vadd.f32 %v3149_v6, %v3101_v8  ;;  %v3539_v52 = vadd.f32 %v3499_v15, %v3451_v21  ;;  %v3364_v44 = vadd.f32 %v3324_v20, %v3276_v25  ;;  %v3500_v17 = vmul.f32 %v7834_v47, %v3194_v32  ;;  %v3459_v32 = vld [vmem:[#allocation2 + $0x17a] sm:$0xff] }
 0x304   :  { %v3626_v3 = vadd.f32 %v7055_v10, %v3582_v1  ;;  %v3063_v55 = vmul.f32 %v7026_v43, %v3019_v19  ;;  %v3325_v26 = vmul.f32 %v7036_v36, %v3019_v19  ;;  %v3102_v53 = vadd.f32 %v3062_v49, %v3014_v38 }
 0x305   :  { %v3277_v61 = vadd.f32 %v3237_v40, %v3189_v33  ;;  %v3583_v14 = vmul.f32 %v7047_v23, %v3539_v52  ;;  %v3452_v42 = vadd.f32 %v3412_v62, %v3364_v44  ;;  %v3151_v18 = vmul.f32 %v7029_v59, %v3107_v37  ;;  %v3371_v40 = vld [vmem:[#allocation2 + $0x179] sm:$0xff]  ;;  %v4408_v52 = vld [vmem:[%s8117_s6 + $0x28] sm:$0xff] }
 0x306   :  { %v3666_v57 = vmax.f32 %v3626_v3, 0.0  ;;  %v3413_v12 = vmul.f32 %v7039_v35, %v3107_v37  ;;  %v3190_v7 = vadd.f32 %v3150_v0, %v3102_v53  ;;  %v3103_v43 = vadd.f32 %v3063_v55, %v3015_v60  ;;  %v4409_v3 = vld [vmem:[%s8117_s6 + $0x30] sm:$0xff] }
 0x307   :  { %v3365_v58 = vadd.f32 %v3325_v26, %v3277_v61  ;;  %v3627_v41 = vadd.f32 %v7055_v10, %v3583_v14  ;;  %v3540_v38 = vadd.f32 %v3500_v17, %v3452_v42  ;;  %v3239_v9 = vmul.f32 %v7033_v16, %v3195_v24  ;;  %v4407_v61 = vld [vmem:[%s8117_s6 + $0x20] sm:$0xff]  ;;  %v4406_v42 = vld [vmem:[%s8117_s6 + $0x18] sm:$0xff] }
 0x308   :  { %5080 = vmatprep.mubr.msk.f32.mxu1 %vm2588_vm3, %v3666_v57  ;;  %v3501_v56 = vmul.f32 %v7834_v47, %v3195_v24  ;;  %v3278_v34 = vadd.f32 %v3238_v39, %v3190_v7  ;;  %v3326_v59 = vmul.f32 %v7036_v36, %v3282_v50  ;;  %v3191_v31 = vadd.f32 %v3151_v18, %v3103_v43  ;;  %v4404_v7 = vld [vmem:[%s8117_s6 + $0x8] sm:$0xff] }
 0x309   :  { %v3453_v48 = vadd.f32 %v3413_v12, %v3365_v58  ;;  %v3667_v28 = vmax.f32 %v3627_v41, 0.0  ;;  %v3584_v6 = vmul.f32 %v7047_v23, %v3540_v38  ;;  %v3414_v60 = vmul.f32 %v7039_v35, %v3370_v45  ;;  %v4405_v12 = vld [vmem:[%s8117_s6 + $0x10] sm:$0xff]  ;;  %v4403_v45 = vld [vmem:[%s8117_s6] sm:$0xff] }
 0x30a   :  { %v3366_v51 = vadd.f32 %v3326_v59, %v3278_v34  ;;  %v3279_v30 = vadd.f32 %v3239_v9, %v3191_v31  ;;  %v3327_v16 = vmul.f32 %v7036_v36, %v3283_v46  ;;  %v3502_v5 = vmul.f32 %v7834_v47, %v3458_v4  ;;  %v5143_v46 = vld [vmem:[#allocation12] sm:$0xff]  ;;  %v8005_v59 = vld [vmem:[#allocation12 + $0x8] sm:$0x3] }
 0x30b   :  { %v3541_v29 = vadd.f32 %v3501_v56, %v3453_v48  ;;  %5081 = vmatmul.mubr.msk.f32.gmra.mxu1 %vm2588_vm3, %v3667_v28  ;;  %v3628_v27 = vadd.f32 %v7055_v10, %v3584_v6  ;;  %v3415_v8 = vmul.f32 %v7039_v35, %v3371_v40  ;;  %v3503_v36 = vmul.f32 %v7834_v47, %v3459_v32  ;;  %v4410_v47 = vld [vmem:[%s8117_s6 + $0x38] sm:$0xff]  ;;  %s5305_s6 = smov [#allocation14]  }
 0x30c   :  { %v3454_v15 = vadd.f32 %v3414_v60, %v3366_v51  ;;  %v3367_v49 = vadd.f32 %v3327_v16, %v3279_v30  ;;  %5106 = vmatpush3.msra.mxu0 %v4410_v47  ;;  %v8001_v48 = vrot.slane %v5143_v46, %v8134_v54  ;;  %v8011_v31 = vrot.slane %v8005_v59, %v5460_v2  ;;  %s4505_s12 = sshll.u32 %s5305_s6, 4  ;;  %s4506_s12 = int_to_ptr.vmem [resolvable:$true] %s4505_s12 }
 0x30d   :  { %v3585_v22 = vmul.f32 %v7047_v23, %v3541_v29  ;;  %v3668_v1 = vmax.f32 %v3628_v27, 0.0  ;;  %5107 = vmatprep.subr.mxu0 %v8135_v13  ;;  %s5264_s13 = scalar_lea.vmem %s4506_s12, 32  ;;  %p5269_p3 = scmp.lt.s32.totalorder %s4506_s12, %s4506_s12 }
 0x30e   :  { %v3542_v25 = vadd.f32 %v3502_v5, %v3454_v15  ;;  %v3455_v20 = vadd.f32 %v3415_v8, %v3367_v49  ;;  %5108 = vmatpush3.msra.mxu0 %v4409_v3  ;;  %p5265_p2 = scmp.ne.s32.totalorder %s4506_s12, %s5264_s13  ;;  %p5270_p4 = scmp.lt.s32.totalorder %s5264_s13, %s5264_s13 }
 0x30f   :  { %v3629_v21 = vadd.f32 %v7055_v10, %v3585_v22  ;;  %5083 = vmatprep.mubr.msk.f32.mxu1 %vm2588_vm3, %v3668_v1  ;;  %5109 = vmatprep.subr.mxu0 %v8135_v13 }
 0x310   :  { %v3586_v63 = vmul.f32 %v7047_v23, %v3542_v25  ;;  %v3543_v0 = vadd.f32 %v3503_v36, %v3455_v20  ;;  %5110 = vmatpush3.msra.mxu0 %v4408_v52  ;;  %p5271_p5 = por %p5270_p4, %p5269_p3 }
 0x311   :  { %v3669_v19 = vmax.f32 %v3629_v21, 0.0  ;;  %5111 = vmatprep.subr.mxu0 %v8135_v13 }
 0x312   :  { %v3630_v39 = vadd.f32 %v7055_v10, %v3586_v63  ;;  %v3587_v62 = vmul.f32 %v7047_v23, %v3543_v0  ;;  %v5031_v23 = vpop.f32.mrf.mxu1  ;;  %5112 = vmatpush3.msra.mxu0 %v4407_v61  ;;  %p5272_p6 = pnand %p5271_p5, %p5265_p2 }
 0x313   :  { %5084 = vmatmul.mubr.msk.f32.gmra.mxu1 %vm2588_vm3, %v3669_v19  ;;  %5113 = vmatprep.subr.mxu0 %v8135_v13 }
 0x314   :  { %v3670_v35 = vmax.f32 %v3630_v39, 0.0  ;;  %v3631_v37 = vadd.f32 %v7055_v10, %v3587_v62  ;;  %v3866_v10 = vpop.f32.mrf.mxu1  ;;  %5114 = vmatpush3.msra.mxu0 %v4406_v42 }
 0x315   :  { %5115 = vmatprep.subr.mxu0 %v8135_v13  ;;  %v4069_v4 = vmul.f32 %v8001_v48, %v3866_v10 }
 0x316   :  { %5086 = vmatprep.mubr.msk.f32.mxu1 %vm2588_vm3, %v3670_v35  ;;  %v3671_v33 = vmax.f32 %v3631_v37, 0.0  ;;  %v5034_v44 = vpop.f32.mrf.mxu1  ;;  %5116 = vmatpush3.msra.mxu0 %v4405_v12 }
 0x317   :  { %5117 = vmatprep.subr.mxu0 %v8135_v13  ;;  %v4113_v60 = vadd.f32 %v8011_v31, %v4069_v4  ;;  %v4072_v16 = vmul.f32 %v5034_v44, %v8001_v48 }
 0x318   :  { %5087 = vmatmul.mubr.msk.f32.gmra.mxu1 %vm2588_vm3, %v3671_v33  ;;  %v3876_v17 = vpop.f32.mrf.mxu1  ;;  %5118 = vmatpush3.msra.mxu0 %v4404_v7 }
 0x319   :  { %5119 = vmatprep.subr.mxu0 %v8135_v13  ;;  %v4070_v13 = vmul.f32 %v5031_v23, %v8001_v48  ;;  %v4071_v28 = vmul.f32 %v8001_v48, %v3876_v17  ;;  %v4153_v30 = vmax.f32 %v4113_v60, 0.0  ;;  %v4116_v8 = vadd.f32 %v8011_v31, %v4072_v16 }
 0x31a   :  { %5120 = vmatpush3.msra.mxu0 %v4403_v45 }
 0x31b   :  { %v4114_v29 = vadd.f32 %v8011_v31, %v4070_v13  ;;  %v4115_v51 = vadd.f32 %v8011_v31, %v4071_v28  ;;  %v4156_v36 = vmax.f32 %v4116_v8, 0.0 }
 0x31d   :  { %v4154_v5 = vmax.f32 %v4114_v29, 0.0  ;;  %v4155_v32 = vmax.f32 %v4115_v51, 0.0 }
 0x31f   :  { %v5037_v55 = vpop.f32.mrf.mxu1 }
 0x320   :  { %v4074_v63 = vmul.f32 %v5037_v55, %v8001_v48 }
 0x321   :  { %v3886_v24 = vpop.f32.mrf.mxu1 }
 0x322   :  { %v4216_v40 = vpop.permute.xlu0 %4215  ;;  %v4073_v2 = vmul.f32 %v8001_v48, %v3886_v24  ;;  %v4118_v10 = vadd.f32 %v8011_v31, %v4074_v63 }
 0x323   :  { %v4313_v49 = vmul.f32 %v4216_v40, %v4153_v30 }
 0x324   :  { %v4226_v22 = vpop.permute.xlu1 %4225  ;;  %v4117_v20 = vadd.f32 %v8011_v31, %v4073_v2 }
 0x325   :  { %v4315_v25 = vmul.f32 %v4226_v22, %v4155_v32 }
 0x326   :  { %v4221_v15 = vpop.permute.xlu0 %4220  ;;  %v4157_v37 = vmax.f32 %v4117_v20, 0.0 }
 0x327   :  { %v4314_v21 = vmul.f32 %v4221_v15, %v4154_v5 }
 0x328   :  { %v7961_v26 = vpop.f32.mrf.mxu1  ;;  %v4231_v39 = vpop.permute.xlu1 %4230 }
 0x329   :  { %v4353_v19 = vadd.f32 %v4314_v21, %v4313_v49  ;;  %v4316_v52 = vmul.f32 %v4231_v39, %v4156_v36  ;;  %v4076_v7 = vmul.f32 %v7961_v26, %v8001_v48 }
 0x32a   :  { %v3896_v53 = vpop.f32.mrf.mxu1  ;;  %v4236_v47 = vpop.permute.xlu0 %4235 }
 0x32b   :  { %v4354_v35 = vadd.f32 %v4353_v19, %v4315_v25  ;;  %v4075_v33 = vmul.f32 %v8001_v48, %v3896_v53  ;;  %v4317_v61 = vmul.f32 %v4236_v47, %v4157_v37  ;;  %v4158_v53 = vmax.f32 %v4118_v10, 0.0 }
 0x32d   :  { %v4355_v55 = vadd.f32 %v4354_v35, %v4316_v52  ;;  %v4119_v24 = vadd.f32 %v8011_v31, %v4075_v33  ;;  %v4241_v46 = vpop.permute.xlu1 %4240 }
 0x32e   :  { %v4318_v5 = vmul.f32 %v4241_v46, %v4158_v53 }
 0x32f   :  { %v4159_v28 = vmax.f32 %v4119_v24, 0.0  ;;  %v4356_v60 = vadd.f32 %v4355_v55, %v4317_v61 }
 0x330   :  { %v4246_v29 = vpop.permute.xlu0 %4245 }
 0x331   :  { %v4319_v8 = vmul.f32 %v4246_v29, %v4159_v28  ;;  %v4251_v63 = vpop.permute.xlu1 %4250 }
 0x335   :  { %v7964_v57 = vpop.f32.mrf.mxu1 }
 0x336   :  { %v4078_v36 = vmul.f32 %v7964_v57, %v8001_v48 }
 0x337   :  { %v7966_v14 = vpop.f32.mrf.mxu1 }
 0x338   :  { %v4122_v10 = vadd.f32 %v8011_v31, %v4078_v36 }
 0x33a   :  { %v4162_v53 = vmax.f32 %v4122_v10, 0.0 }
 0x340   :  { %v7972_v18 = vpop.f32.mrf.mxu1 }
 0x342   :  { %v7974_v50 = vpop.f32.mrf.mxu1 }
 0x343   :  { %v4079_v33 = vmul.f32 %v8001_v48, %v7974_v50 }
 0x345   :  { %v4123_v55 = vadd.f32 %v8011_v31, %v4079_v33 }
 0x347   :  { %v4163_v28 = vmax.f32 %v4123_v55, 0.0 }
 0x34c   :  { %v7976_v58 = vpop.f32.mrf.mxu1 }
 0x34e   :  { %v7989_v43 = vpop.f32.mrf.mxu1 }
 0x357   :  { %v7992_v41 = vpop.f32.mrf.mxu1 }
 0x359   :  { %v7994_v38 = vpop.f32.mrf.mxu1 }
 0x360   :  { %v7996_v9 = vpop.f32.mrf.mxu1 }
 0x362   :  { %v7998_v56 = vpop.f32.mrf.mxu1 }
 0x365   :  { %v8003_v34 = vpop.f32.mrf.mxu1 }
 0x367   :  { %v8014_v6 = vpop.f32.mrf.mxu1 }
 0x379   :  { %v5061_v54 = vpop.f32.mrf.mxu1 }
 0x37a   :  { %v4090_v3 = vmul.f32 %v5061_v54, %v8001_v48  ;;  %v4077_v54 = vmul.f32 %v8001_v48, %v7966_v14 }
 0x37b   :  { %v3966_v27 = vpop.f32.mrf.mxu1 }
 0x37c   :  { %v4089_v62 = vmul.f32 %v8001_v48, %v3966_v27  ;;  %v4134_v42 = vadd.f32 %v8011_v31, %v4090_v3  ;;  %v4120_v27 = vadd.f32 %v8011_v31, %v4076_v7  ;;  %v4121_v49 = vadd.f32 %v8011_v31, %v4077_v54  ;;  %v4256_v3 = vpop.permute.xlu0 %4255 }
 0x37d   :  { %v4080_v7 = vmul.f32 %v7972_v18, %v8001_v48  ;;  %v4081_v54 = vmul.f32 %v8001_v48, %v7989_v43 }
 0x37e   :  { %v4133_v17 = vadd.f32 %v8011_v31, %v4089_v62  ;;  %v4174_v51 = vmax.f32 %v4134_v42, 0.0  ;;  %v4160_v20 = vmax.f32 %v4120_v27, 0.0  ;;  %v4161_v35 = vmax.f32 %v4121_v49, 0.0 }
 0x37f   :  { %v4124_v27 = vadd.f32 %v8011_v31, %v4080_v7 }
 0x380   :  { %v4173_v4 = vmax.f32 %v4133_v17, 0.0  ;;  %v4334_v21 = vmul.f32 %v4221_v15, %v4174_v51  ;;  %v4320_v52 = vmul.f32 %v4251_v63, %v4160_v20  ;;  %v4321_v24 = vmul.f32 %v4256_v3, %v4161_v35  ;;  %v4266_v51 = vpop.permute.xlu0 %4265 }
 0x381   :  { %v4164_v43 = vmax.f32 %v4124_v27, 0.0 }
 0x382   :  { %v4333_v26 = vmul.f32 %v4216_v40, %v4173_v4 }
 0x384   :  { %v5064_v1 = vpop.f32.mrf.mxu1 }
 0x385   :  { %v4092_v13 = vmul.f32 %v5064_v1, %v8001_v48  ;;  %v4357_v1 = vadd.f32 %v4356_v60, %v4318_v5 }
 0x386   :  { %v3976_v0 = vpop.f32.mrf.mxu1 }
 0x387   :  { %v4091_v23 = vmul.f32 %v8001_v48, %v3976_v0  ;;  %v4136_v2 = vadd.f32 %v8011_v31, %v4092_v13  ;;  %v4378_v0 = vadd.f32 %v4334_v21, %v4333_v26  ;;  %v4358_v37 = vadd.f32 %v4357_v1, %v4319_v8 }
 0x389   :  { %v4135_v12 = vadd.f32 %v8011_v31, %v4091_v23  ;;  %v4176_v62 = vmax.f32 %v4136_v2, 0.0  ;;  %v4125_v2 = vadd.f32 %v8011_v31, %v4081_v54 }
 0x38b   :  { %v4175_v30 = vmax.f32 %v4135_v12, 0.0  ;;  %v4336_v57 = vmul.f32 %v4231_v39, %v4176_v62  ;;  %v4083_v62 = vmul.f32 %v8001_v48, %v7994_v38 }
 0x38d   :  { %v4335_v25 = vmul.f32 %v4226_v22, %v4175_v30 }
 0x38f   :  { %v4379_v15 = vadd.f32 %v4378_v0, %v4335_v25  ;;  %v4082_v25 = vmul.f32 %v7976_v58, %v8001_v48 }
 0x391   :  { %v5067_v44 = vpop.f32.mrf.mxu1  ;;  %v4380_v42 = vadd.f32 %v4379_v15, %v4336_v57  ;;  %v4127_v57 = vadd.f32 %v8011_v31, %v4083_v62  ;;  %v4088_v62 = vmul.f32 %v8003_v34, %v8001_v48 }
 0x392   :  { %v4094_v40 = vmul.f32 %v5067_v44, %v8001_v48  ;;  %v4359_v44 = vadd.f32 %v4358_v37, %v4320_v52  ;;  %v4126_v37 = vadd.f32 %v8011_v31, %v4082_v25 }
 0x393   :  { %v3986_v45 = vpop.f32.mrf.mxu1 }
 0x394   :  { %v4093_v16 = vmul.f32 %v8001_v48, %v3986_v45  ;;  %v4138_v17 = vadd.f32 %v8011_v31, %v4094_v40  ;;  %v4261_v45 = vpop.permute.xlu1 %4260  ;;  %v4360_v60 = vadd.f32 %v4359_v44, %v4321_v24  ;;  %v4276_v40 = vpop.permute.xlu0 %4275  ;;  %v4166_v24 = vmax.f32 %v4126_v37, 0.0 }
 0x395   :  { %v4322_v5 = vmul.f32 %v4261_v45, %v4162_v53  ;;  %v4084_v44 = vmul.f32 %v7992_v41, %v8001_v48  ;;  %v4085_v53 = vmul.f32 %v8001_v48, %v7998_v56  ;;  %v4086_v56 = vmul.f32 %v7996_v9, %v8001_v48 }
 0x396   :  { %v4137_v14 = vadd.f32 %v8011_v31, %v4093_v16  ;;  %v4178_v4 = vmax.f32 %v4138_v17, 0.0 }
 0x397   :  { %v4361_v49 = vadd.f32 %v4360_v60, %v4322_v5  ;;  %v4129_v41 = vadd.f32 %v8011_v31, %v4085_v53 }
 0x398   :  { %v4177_v22 = vmax.f32 %v4137_v14, 0.0  ;;  %v4338_v26 = vmul.f32 %v4241_v46, %v4178_v4  ;;  %v4271_v14 = vpop.permute.xlu1 %4270 }
 0x399   :  { %v4324_v33 = vmul.f32 %v4271_v14, %v4164_v43 }
 0x39a   :  { %v4337_v61 = vmul.f32 %v4236_v47, %v4177_v22 }
 0x39c   :  { %v4381_v47 = vadd.f32 %v4380_v42, %v4337_v61  ;;  %v4281_v61 = vpop.permute.xlu1 %4280 }
 0x39e   :  { %v5070_v32 = vpop.f32.mrf.mxu1  ;;  %v4382_v1 = vadd.f32 %v4381_v47, %v4338_v26 }
 0x39f   :  { %v4096_v13 = vmul.f32 %v5070_v32, %v8001_v48  ;;  %v4323_v32 = vmul.f32 %v4266_v51, %v4163_v28 }
 0x3a0   :  { %v3996_v19 = vpop.f32.mrf.mxu1  ;;  %v4291_v26 = vpop.permute.xlu1 %4290 }
 0x3a1   :  { %v4095_v23 = vmul.f32 %v8001_v48, %v3996_v19  ;;  %v4140_v18 = vadd.f32 %v8011_v31, %v4096_v13  ;;  %v4165_v19 = vmax.f32 %v4125_v2, 0.0  ;;  %v4362_v46 = vadd.f32 %v4361_v49, %v4323_v32 }
 0x3a2   :  { %v4326_v13 = vmul.f32 %v4281_v61, %v4166_v24 }
 0x3a3   :  { %v4139_v12 = vadd.f32 %v8011_v31, %v4095_v23  ;;  %v4180_v20 = vmax.f32 %v4140_v18, 0.0  ;;  %v4325_v10 = vmul.f32 %v4276_v40, %v4165_v19  ;;  %v4363_v52 = vadd.f32 %v4362_v46, %v4324_v33 }
 0x3a4   :  { %v4087_v18 = vmul.f32 %v8001_v48, %v8014_v6 }
 0x3a5   :  { %v4179_v30 = vmax.f32 %v4139_v12, 0.0  ;;  %v4340_v22 = vmul.f32 %v4251_v63, %v4180_v20  ;;  %v4364_v12 = vadd.f32 %v4363_v52, %v4325_v10  ;;  %v4130_v20 = vadd.f32 %v8011_v31, %v4086_v56 }
 0x3a6   :  { %v4131_v9 = vadd.f32 %v8011_v31, %v4087_v18 }
 0x3a7   :  { %v4339_v8 = vmul.f32 %v4246_v29, %v4179_v30  ;;  %v4365_v54 = vadd.f32 %v4364_v12, %v4326_v13  ;;  %v4170_v33 = vmax.f32 %v4130_v20, 0.0 }
 0x3a9   :  { %v4383_v35 = vadd.f32 %v4382_v1, %v4339_v8  ;;  %v4169_v8 = vmax.f32 %v4129_v41, 0.0 }
 0x3ab   :  { %v5073_v50 = vpop.f32.mrf.mxu1  ;;  %v4384_v55 = vadd.f32 %v4383_v35, %v4340_v22  ;;  %v4171_v22 = vmax.f32 %v4131_v9, 0.0 }
 0x3ac   :  { %v4098_v36 = vmul.f32 %v5073_v50, %v8001_v48  ;;  %v4167_v50 = vmax.f32 %v4127_v57, 0.0  ;;  %v4132_v57 = vadd.f32 %v8011_v31, %v4088_v62 }
 0x3ad   :  { %v4006_v39 = vpop.f32.mrf.mxu1 }
 0x3ae   :  { %v4097_v16 = vmul.f32 %v8001_v48, %v4006_v39  ;;  %v4142_v58 = vadd.f32 %v8011_v31, %v4098_v36  ;;  %v4286_v39 = vpop.permute.xlu0 %4285 }
 0x3af   :  { %v4327_v47 = vmul.f32 %v4286_v39, %v4167_v50 }
 0x3b0   :  { %v4141_v21 = vadd.f32 %v8011_v31, %v4097_v16  ;;  %v4182_v42 = vmax.f32 %v4142_v58, 0.0 }
 0x3b1   :  { %v4366_v1 = vadd.f32 %v4365_v54, %v4327_v47 }
 0x3b2   :  { %v4181_v29 = vmax.f32 %v4141_v21, 0.0  ;;  %v4342_v28 = vmul.f32 %v4261_v45, %v4182_v42  ;;  %v4296_v43 = vpop.permute.xlu0 %4295  ;;  %v4172_v42 = vmax.f32 %v4132_v57, 0.0 }
 0x3b3   :  { %v4329_v46 = vmul.f32 %v4296_v43, %v4169_v8 }
 0x3b4   :  { %v4341_v17 = vmul.f32 %v4256_v3, %v4181_v29  ;;  %v4128_v3 = vadd.f32 %v8011_v31, %v4084_v44 }
 0x3b6   :  { %v5076_v0 = vpop.f32.mrf.mxu1  ;;  %v4385_v7 = vadd.f32 %v4384_v55, %v4341_v17  ;;  %v4168_v5 = vmax.f32 %v4128_v3, 0.0  ;;  %v4306_v10 = vpop.permute.xlu0 %4305 }
 0x3b7   :  { %v4100_v63 = vmul.f32 %v5076_v0, %v8001_v48  ;;  %v4331_v24 = vmul.f32 %v4306_v10, %v4171_v22 }
 0x3b8   :  { %v4016_v15 = vpop.f32.mrf.mxu1  ;;  %v4386_v16 = vadd.f32 %v4385_v7, %v4342_v28 }
 0x3b9   :  { %v4099_v23 = vmul.f32 %v8001_v48, %v4016_v15  ;;  %v4144_v60 = vadd.f32 %v8011_v31, %v4100_v63  ;;  %v4301_v15 = vpop.permute.xlu1 %4300 }
 0x3ba   :  { %v4330_v34 = vmul.f32 %v4301_v15, %v4170_v33 }
 0x3bb   :  { %v4143_v38 = vadd.f32 %v8011_v31, %v4099_v23  ;;  %v4184_v2 = vmax.f32 %v4144_v60, 0.0 }
 0x3bd   :  { %v4183_v4 = vmax.f32 %v4143_v38, 0.0  ;;  %v4344_v36 = vmul.f32 %v4271_v14, %v4184_v2  ;;  %v4311_v7 = vpop.permute.xlu1 %4310 }
 0x3be   :  { %v4332_v47 = vmul.f32 %v4311_v7, %v4172_v42 }
 0x3bf   :  { %v4343_v30 = vmul.f32 %v4266_v51, %v4183_v4  ;;  %v4328_v51 = vmul.f32 %v4291_v26, %v4168_v5 }
 0x3c1   :  { %v4387_v21 = vadd.f32 %v4386_v16, %v4343_v30  ;;  %v4367_v0 = vadd.f32 %v4366_v1, %v4328_v51 }
 0x3c2   :  { %v5079_v27 = vpop.f32.mrf.mxu1 }
 0x3c3   :  { %v4102_v45 = vmul.f32 %v5079_v27, %v8001_v48  ;;  %v4388_v35 = vadd.f32 %v4387_v21, %v4344_v36  ;;  %v4368_v14 = vadd.f32 %v4367_v0, %v4329_v46 }
 0x3c4   :  { %v4026_v32 = vpop.f32.mrf.mxu1 }
 0x3c5   :  { %v4101_v49 = vmul.f32 %v8001_v48, %v4026_v32  ;;  %v4146_v6 = vadd.f32 %v8011_v31, %v4102_v45  ;;  %v4369_v63 = vadd.f32 %v4368_v14, %v4330_v34 }
 0x3c7   :  { %v4145_v25 = vadd.f32 %v8011_v31, %v4101_v49  ;;  %v4186_v58 = vmax.f32 %v4146_v6, 0.0  ;;  %v4370_v13 = vadd.f32 %v4369_v63, %v4331_v24 }
 0x3c9   :  { %v4185_v19 = vmax.f32 %v4145_v25, 0.0  ;;  %v4371_v27 = vadd.f32 %v4370_v13, %v4332_v47 }
 0x3cb   :  { %v4345_v29 = vmul.f32 %v4276_v40, %v4185_v19  ;;  %v5082_v37 = vpop.f32.mrf.mxu1  ;;  %v4346_v40 = vmul.f32 %v4281_v61, %v4186_v58  ;;  %v4372_v1 = vrot.slane %v4371_v27, 4 }
 0x3cc   :  { %v4104_v23 = vmul.f32 %v5082_v37, %v8001_v48 }
 0x3cd   :  { %v4036_v52 = vpop.f32.mrf.mxu1  ;;  %v4389_v17 = vadd.f32 %v4388_v35, %v4345_v29  ;;  %v4373_v36 = vadd.f32 %v4372_v1, %v4371_v27 }
 0x3ce   :  { %v4103_v55 = vmul.f32 %v8001_v48, %v4036_v52  ;;  %v4148_v38 = vadd.f32 %v8011_v31, %v4104_v23  ;;  %v4422_v23 = vrot.slane %v8005_v59, %v5470_v11 }
 0x3cf   :  { %v4390_v50 = vadd.f32 %v4389_v17, %v4346_v40  ;;  %v4374_v0 = vrot.slane %v4373_v36, 2 }
 0x3d0   :  { %v4147_v44 = vadd.f32 %v8011_v31, %v4103_v55  ;;  %v4188_v4 = vmax.f32 %v4148_v38, 0.0 }
 0x3d2   :  { %v4187_v12 = vmax.f32 %v4147_v44, 0.0  ;;  %v4348_v30 = vmul.f32 %v4291_v26, %v4188_v4 }
 0x3d3   :  { %v5085_v53 = vpop.f32.mrf.mxu1 }
 0x3d4   :  { %v4106_v3 = vmul.f32 %v5085_v53, %v8001_v48  ;;  %v4347_v28 = vmul.f32 %v4286_v39, %v4187_v12 }
 0x3d5   :  { %v4046_v60 = vpop.f32.mrf.mxu1 }
 0x3d6   :  { %v4150_v54 = vadd.f32 %v8011_v31, %v4106_v3  ;;  %v4105_v41 = vmul.f32 %v8001_v48, %v4046_v60  ;;  %v4391_v61 = vadd.f32 %v4390_v50, %v4347_v28 }
 0x3d8   :  { %v4149_v16 = vadd.f32 %v8011_v31, %v4105_v41  ;;  %v5088_v5 = vpop.f32.mrf.mxu1  ;;  %v4190_v56 = vmax.f32 %v4150_v54, 0.0  ;;  %v4392_v2 = vadd.f32 %v4391_v61, %v4348_v30 }
 0x3d9   :  { %v4108_v45 = vmul.f32 %v5088_v5, %v8001_v48 }
 0x3da   :  { %v4189_v18 = vmax.f32 %v4149_v16, 0.0  ;;  %v4056_v32 = vpop.f32.mrf.mxu1  ;;  %v4350_v21 = vmul.f32 %v4301_v15, %v4190_v56 }
 0x3db   :  { %v4152_v39 = vadd.f32 %v8011_v31, %v4108_v45  ;;  %v4107_v8 = vmul.f32 %v8001_v48, %v4056_v32 }
 0x3dc   :  { %v4349_v49 = vmul.f32 %v4296_v43, %v4189_v18  ;;  %v4375_v43 = vadd.f32 %v4374_v0, %v4373_v36 }
 0x3dd   :  { %v4151_v26 = vadd.f32 %v8011_v31, %v4107_v8  ;;  %v4192_v25 = vmax.f32 %v4152_v39, 0.0 }
 0x3de   :  { %v4393_v51 = vadd.f32 %v4392_v2, %v4349_v49  ;;  %v4376_v33 = vrot.slane %v4375_v43, 1 }
 0x3df   :  { %v4191_v20 = vmax.f32 %v4151_v26, 0.0  ;;  %v4352_v19 = vmul.f32 %v4311_v7, %v4192_v25 }
 0x3e0   :  { %v4394_v9 = vadd.f32 %v4393_v51, %v4350_v21  ;;  %v4377_v15 = vadd.f32 %v4376_v33, %v4375_v43 }
 0x3e1   :  { %v4351_v6 = vmul.f32 %v4306_v10, %v4191_v20 }
 0x3e3   :  { %v4395_v46 = vadd.f32 %v4394_v9, %v4351_v6 }
 0x3e5   :  { %v4396_v62 = vadd.f32 %v4395_v46, %v4352_v19 }
 0x3e7   :  { %v4397_v35 = vrot.slane %v4396_v62, 4 }
 0x3e9   :  { %v4398_v29 = vadd.f32 %v4397_v35, %v4396_v62 }
 0x3eb   :  { %v4399_v37 = vrot.slane %v4398_v29, 2 }
 0x3ed   :  { %v4400_v48 = vadd.f32 %v4399_v37, %v4398_v29 }
 0x3ef   :  { %v4401_v22 = vrot.slane %v4400_v48, 1 }
 0x3f1   :  { %v4402_v58 = vadd.f32 %v4401_v22, %v4400_v48 }
 0x3f3   :  { %v4426_v31 = vsel %vm4425_vm5, %v4402_v58, %v4377_v15 }
 0x3f4   :  { %5122 = vmatmul.mubr.f32.vlgmr.msra.gmra.mxu0 %v4426_v31 }
 0x4b4   :  { %v4494_v10 = vpop.f32.mrf.mxu0 }
 0x4b5   :  { %v4495_v52 = vadd.f32 %v4494_v10, %v4422_v23 }
 0x4b6   :  { %v5123_v14 = vpop.f32.mrf.mxu0 }
 0x4b7   :  { %4498 = vst [vmem:[#allocation14] sm:$0x3] %v4495_v52 }
 0x4b8   :  { %5275 = shalt.err (!%p5272_p6)
}
 0x4b9   :  { %4508 = dma.vmem_to_hbm [thread:$0]  %s4506_s12, 32, %s8120_s9, [#allocation5]  }
 0x4ba   :  { %5292 = dma.done.wait [#allocation5], 32  }
 0x4bb   :  { %5293 = vsyncadd [#allocation5], 4294967264 }
 0x4bc   :  { %4512 = vsyncpa [#allocation4], 1 }
 0x4bd   :  { %4513 = vsyncpa [#allocation7], 1 }
 0x4be   :  { %4514 = vsyncpa [#allocation10], 1 }
 0x4bf   :  { %4515 = vsyncpa [#allocation13], 1 }
 0x4c0   :  { %4516 = vsyncpa [#allocation5], 1 }

</bundles_post_ra>
